<compile_context>
chip_gen: v6e
topology: v6e:2x2x1
jax: 0.10.0
libtpu: 0.0.40
codegen_flags: <defaults>
</compile_context>

<pallas_src>
import functools

import jax
import jax.numpy as jnp
from jax.experimental import pallas as pl
from jax.experimental.pallas import tpu as pltpu

# ---------------- small synthetic config (in place of the HF checkpoint) ----------------
CONV_DIM = (32, 32, 32)
CONV_KERNEL = (10, 3, 2)
CONV_STRIDE = (5, 2, 2)
HIDDEN = 64
HEADS = 4
HEAD_DIM = HIDDEN // HEADS
FFN = 128
NUM_LAYERS = 2
POS_K = 8          # positional conv kernel (even -> SamePad drops last frame)
PROJ = 32          # classifier_proj_size
NUM_CLASSES = 7
EPS = 1e-5


def _vmem_specs(n):
    return [pl.BlockSpec(memory_space=pltpu.MemorySpace.VMEM) for _ in range(n)]


# ---------------------------------- in-kernel helpers ----------------------------------
def _gelu(x):
    # TODO(synk): HF uses exact (erf) GELU; tanh approximation used here.
    return jax.nn.gelu(x, approximate=True)


def _layer_norm(x, g, b, eps):
    mu = jnp.mean(x, axis=-1, keepdims=True)
    var = jnp.mean(jnp.square(x - mu), axis=-1, keepdims=True)
    return (x - mu) * jax.lax.rsqrt(var + eps) * g + b


def _mm(x, w):
    # bf16 MXU inputs, f32 accumulation (bf16-native MXU on v6e/v7x; also fine on v5e).
    return jnp.dot(x.astype(jnp.bfloat16), w.astype(jnp.bfloat16),
                   preferred_element_type=jnp.float32)


# ---------------------------------- Pallas kernels ----------------------------------
def _matmul_bias_kernel(x_ref, w_ref, b_ref, o_ref, *, activation):
    y = _mm(x_ref[...], w_ref[...]) + b_ref[...]
    if activation == "gelu":
        y = _gelu(y)
    o_ref[...] = y.astype(o_ref.dtype)


def _rownorm_kernel(x_ref, g_ref, b_ref, o_ref, *, eps, activation):
    # Per-row norm over last axis; covers GroupNorm(num_groups=C, num_channels=C) over time
    # (g,b = (M,1) per (batch, channel) row) with optional fused GELU.
    y = _layer_norm(x_ref[...].astype(jnp.float32), g_ref[...], b_ref[...], eps)
    if activation == "gelu":
        y = _gelu(y)
    o_ref[...] = y.astype(o_ref.dtype)


def _ln_matmul_kernel(x_ref, g_ref, bln_ref, w_ref, b_ref, o_ref, *, eps):
    # feature projection: LayerNorm + Linear fused
    z = _layer_norm(x_ref[...].astype(jnp.float32), g_ref[...], bln_ref[...], eps)
    o_ref[...] = (_mm(z, w_ref[...]) + b_ref[...]).astype(o_ref.dtype)


def _add_ln_kernel(x_ref, res_ref, g_ref, b_ref, o_ref, *, eps):
    s = x_ref[...].astype(jnp.float32) + res_ref[...].astype(jnp.float32)
    o_ref[...] = _layer_norm(s, g_ref[...], b_ref[...], eps).astype(o_ref.dtype)


def _matmul_residual_ln_kernel(a_ref, w_ref, b_ref, res_ref, g_ref, bln_ref, o_ref, *, eps):
    # attention output projection + residual add + post-LN fused
    y = _mm(a_ref[...], w_ref[...]) + b_ref[...]
    s = y + res_ref[...].astype(jnp.float32)
    o_ref[...] = _layer_norm(s, g_ref[...], bln_ref[...], eps).astype(o_ref.dtype)


def _ffn_residual_ln_kernel(x_ref, w1_ref, b1_ref, w2_ref, b2_ref, g_ref, bln_ref, o_ref, *, eps):
    # ff1 + GELU + ff2 + residual add + post-LN fused (FFN intermediate stays in VMEM)
    x = x_ref[...].astype(jnp.float32)
    h = _gelu(_mm(x, w1_ref[...]) + b1_ref[...])
    y = _mm(h, w2_ref[...]) + b2_ref[...]
    o_ref[...] = _layer_norm(y + x, g_ref[...], bln_ref[...], eps).astype(o_ref.dtype)


def _attention_kernel(q_ref, kT_ref, v_ref, o_ref):
    # one (batch*head) slice per grid step; attention scale is folded into the Q weights,
    # K arrives pre-transposed (Dh, Ts) so the score matmul needs no in-kernel transpose.
    q = q_ref[0]                                   # (Ts, Dh)
    kT = kT_ref[0]                                 # (Dh, Ts)
    v = v_ref[0]                                   # (Ts, Dh)
    s = _mm(q, kT)                                 # (Ts, Ts) f32
    s = s - jnp.max(s, axis=-1, keepdims=True)
    p = jnp.exp(s)
    inv = pl.reciprocal(jnp.sum(p, axis=-1, keepdims=True), approx=True)
    p = p * inv
    o_ref[0] = _mm(p, v).astype(o_ref.dtype)


def _head_kernel(h_ref, pw_ref, pb_ref, cw_ref, cb_ref, o_ref, *, batch, tsteps):
    # projector -> mean pool over time (as a small pooling matmul) -> classifier, fused
    proj = _mm(h_ref[...], pw_ref[...]) + pb_ref[...]                  # (B*Ts, PROJ)
    rows = jax.lax.broadcasted_iota(jnp.int32, (batch, batch * tsteps), 0)
    cols = jax.lax.broadcasted_iota(jnp.int32, (batch, batch * tsteps), 1)
    in_batch = (cols >= rows * tsteps) & (cols < (rows + 1) * tsteps)
    pool = jnp.where(in_batch, 1.0 / tsteps, 0.0).astype(jnp.float32)  # (B, B*Ts)
    pooled = jnp.dot(pool, proj, preferred_element_type=jnp.float32)   # (B, PROJ)
    o_ref[...] = (jnp.dot(pooled, cw_ref[...], preferred_element_type=jnp.float32)
                  + cb_ref[...]).astype(o_ref.dtype)


# ---------------------------------- wrappers ----------------------------------
def pallas_matmul_bias(x, w, b, activation=None):
    M, N = x.shape[0], w.shape[1]
    return pl.pallas_call(
        functools.partial(_matmul_bias_kernel, activation=activation),
        out_shape=jax.ShapeDtypeStruct((M, N), jnp.float32),
        in_specs=_vmem_specs(3),
        out_specs=pl.BlockSpec(memory_space=pltpu.MemorySpace.VMEM),
    )(x, w, b.reshape(1, N))


def pallas_rownorm(x, g, b, eps=EPS, activation=None):
    return pl.pallas_call(
        functools.partial(_rownorm_kernel, eps=eps, activation=activation),
        out_shape=jax.ShapeDtypeStruct(x.shape, jnp.float32),
        in_specs=_vmem_specs(3),
        out_specs=pl.BlockSpec(memory_space=pltpu.MemorySpace.VMEM),
    )(x, g, b)


def pallas_ln_matmul(x, g, bln, w, b, eps=EPS):
    M, D = x.shape
    N = w.shape[1]
    return pl.pallas_call(
        functools.partial(_ln_matmul_kernel, eps=eps),
        out_shape=jax.ShapeDtypeStruct((M, N), jnp.float32),
        in_specs=_vmem_specs(5),
        out_specs=pl.BlockSpec(memory_space=pltpu.MemorySpace.VMEM),
    )(x, g.reshape(1, D), bln.reshape(1, D), w, b.reshape(1, N))


def pallas_add_ln(x, res, g, b, eps=EPS):
    M, D = x.shape
    return pl.pallas_call(
        functools.partial(_add_ln_kernel, eps=eps),
        out_shape=jax.ShapeDtypeStruct((M, D), jnp.float32),
        in_specs=_vmem_specs(4),
        out_specs=pl.BlockSpec(memory_space=pltpu.MemorySpace.VMEM),
    )(x, res, g.reshape(1, D), b.reshape(1, D))


def pallas_matmul_residual_ln(a, w, b, res, g, bln, eps=EPS):
    M = a.shape[0]
    N = w.shape[1]
    return pl.pallas_call(
        functools.partial(_matmul_residual_ln_kernel, eps=eps),
        out_shape=jax.ShapeDtypeStruct((M, N), jnp.float32),
        in_specs=_vmem_specs(6),
        out_specs=pl.BlockSpec(memory_space=pltpu.MemorySpace.VMEM),
    )(a, w, b.reshape(1, N), res, g.reshape(1, N), bln.reshape(1, N))


def pallas_ffn_residual_ln(x, w1, b1, w2, b2, g, bln, eps=EPS):
    M, D = x.shape
    F = w1.shape[1]
    return pl.pallas_call(
        functools.partial(_ffn_residual_ln_kernel, eps=eps),
        out_shape=jax.ShapeDtypeStruct((M, D), jnp.float32),
        in_specs=_vmem_specs(7),
        out_specs=pl.BlockSpec(memory_space=pltpu.MemorySpace.VMEM),
    )(x, w1, b1.reshape(1, F), w2, b2.reshape(1, D), g.reshape(1, D), bln.reshape(1, D))


def pallas_attention(q, kT, v):
    # grid over batch*heads, marked "parallel" so megacore parts (v7x 2 TCs) shard it.
    # TODO(synk): at real wav2vec2 sizes (T~1500, D=768) this must become a tiled
    # flash-style kernel (KV grid axis + online softmax) to fit VMEM.
    BH, Ts, Dh = q.shape
    return pl.pallas_call(
        _attention_kernel,
        out_shape=jax.ShapeDtypeStruct((BH, Ts, Dh), jnp.float32),
        grid=(BH,),
        in_specs=[
            pl.BlockSpec((1, Ts, Dh), lambda i: (i, 0, 0)),
            pl.BlockSpec((1, Dh, Ts), lambda i: (i, 0, 0)),
            pl.BlockSpec((1, Ts, Dh), lambda i: (i, 0, 0)),
        ],
        out_specs=pl.BlockSpec((1, Ts, Dh), lambda i: (i, 0, 0)),
        compiler_params=pltpu.CompilerParams(dimension_semantics=("parallel",)),
    )(q, kT, v)


def pallas_head(h2d, pw, pb, cw, cb, batch, tsteps):
    return pl.pallas_call(
        functools.partial(_head_kernel, batch=batch, tsteps=tsteps),
        out_shape=jax.ShapeDtypeStruct((batch, cw.shape[1]), jnp.float32),
        in_specs=_vmem_specs(5),
        out_specs=pl.BlockSpec(memory_space=pltpu.MemorySpace.VMEM),
    )(h2d, pw, pb.reshape(1, -1), cw, cb.reshape(1, -1))


def conv1d(x_bct, w_oik, stride, bias=None, activation=None):
    """PyTorch-style Conv1d (no padding) via im2col (glue) + Pallas matmul (hot path)."""
    # TODO(synk): at real 16kHz input lengths the im2col gather should move inside the
    # kernel (strided pl.ds window over a grid on T_out) to avoid K-times HBM expansion.
    B, Cin, T = x_bct.shape
    Cout, _, K = w_oik.shape
    Tout = (T - K) // stride + 1
    idx = jnp.arange(Tout)[:, None] * stride + jnp.arange(K)[None, :]
    patches = x_bct[:, :, idx]                                  # (B, Cin, Tout, K)
    patches = patches.transpose(0, 2, 1, 3).reshape(B * Tout, Cin * K)
    w2 = w_oik.reshape(Cout, Cin * K).T                          # (Cin*K, Cout)
    if bias is None:
        bias = jnp.zeros((Cout,), jnp.float32)
    y = pallas_matmul_bias(patches, w2, bias, activation=activation)
    return y.reshape(B, Tout, Cout).transpose(0, 2, 1)           # (B, Cout, Tout)


# ---------------------------------- parameters ----------------------------------
def init_params(key):
    keys = iter(jax.random.split(key, 128))

    def nrm(shape, scale=0.02):
        return jax.random.normal(next(keys), shape, dtype=jnp.float32) * scale

    ones = lambda n: jnp.ones((n,), jnp.float32)
    zeros = lambda n: jnp.zeros((n,), jnp.float32)

    p = {}
    # feature extractor (conv_bias=False as in HF default)
    in_dims = (1,) + CONV_DIM[:-1]
    p["conv_w"] = [nrm((CONV_DIM[i], in_dims[i], CONV_KERNEL[i])) for i in range(len(CONV_DIM))]
    p["gn_g"], p["gn_b"] = ones(CONV_DIM[0]), zeros(CONV_DIM[0])
    # feature projection
    p["fp_ln_g"], p["fp_ln_b"] = ones(CONV_DIM[-1]), zeros(CONV_DIM[-1])
    p["fp_w"], p["fp_b"] = nrm((CONV_DIM[-1], HIDDEN)), zeros(HIDDEN)
    # positional conv embedding
    # TODO(synk): HF uses groups=16 + weight_norm on this conv; implemented as a plain conv.
    p["pos_w"], p["pos_b"] = nrm((HIDDEN, HIDDEN, POS_K)), zeros(HIDDEN)
    p["enc_ln_g"], p["enc_ln_b"] = ones(HIDDEN), zeros(HIDDEN)
    # encoder layers
    layers = []
    for _ in range(NUM_LAYERS):
        layers.append(dict(
            q_w=nrm((HIDDEN, HIDDEN)), q_b=zeros(HIDDEN),
            k_w=nrm((HIDDEN, HIDDEN)), k_b=zeros(HIDDEN),
            v_w=nrm((HIDDEN, HIDDEN)), v_b=zeros(HIDDEN),
            o_w=nrm((HIDDEN, HIDDEN)), o_b=zeros(HIDDEN),
            ln1_g=ones(HIDDEN), ln1_b=zeros(HIDDEN),
            ff1_w=nrm((HIDDEN, FFN)), ff1_b=zeros(FFN),
            ff2_w=nrm((FFN, HIDDEN)), ff2_b=zeros(HIDDEN),
            ln2_g=ones(HIDDEN), ln2_b=zeros(HIDDEN),
        ))
    p["layers"] = layers
    # classification head
    p["proj_w"], p["proj_b"] = nrm((HIDDEN, PROJ)), zeros(PROJ)
    p["cls_w"], p["cls_b"] = nrm((PROJ, NUM_CLASSES)), zeros(NUM_CLASSES)
    return p


# ---------------------------------- forward ----------------------------------
def forward(params, x):
    B = x.shape[0]
    h = x[:, None, :]  # (B, 1, T) - torch Conv1d input layout

    # --- feature extractor ---
    for i in range(len(CONV_DIM)):
        h = conv1d(h, params["conv_w"][i], CONV_STRIDE[i],
                   activation=None if i == 0 else "gelu")
        if i == 0:
            # GroupNorm(num_groups=C, num_channels=C): per-(batch, channel) norm over time + GELU
            _, C0, T0 = h.shape
            gg = jnp.tile(params["gn_g"], (B,)).reshape(B * C0, 1)
            gb = jnp.tile(params["gn_b"], (B,)).reshape(B * C0, 1)
            h = pallas_rownorm(h.reshape(B * C0, T0), gg, gb, eps=EPS,
                               activation="gelu").reshape(B, C0, T0)

    ef = h.transpose(0, 2, 1)            # extract_features: (B, Ts, C)
    _, Ts, C = ef.shape

    # --- feature projection: LayerNorm + Linear fused into one kernel ---
    hid = pallas_ln_matmul(ef.reshape(B * Ts, C), params["fp_ln_g"], params["fp_ln_b"],
                           params["fp_w"], params["fp_b"]).reshape(B, Ts, HIDDEN)

    # --- positional conv embedding, then fused add + LayerNorm ---
    hp = jnp.pad(hid.transpose(0, 2, 1), ((0, 0), (0, 0), (POS_K // 2, POS_K // 2)))
    pos = conv1d(hp, params["pos_w"], 1, bias=params["pos_b"], activation="gelu")
    pos = pos[:, :, :-1]                 # SamePadLayer: drop last frame (even kernel)
    x2 = pallas_add_ln(hid.reshape(B * Ts, HIDDEN),
                       pos.transpose(0, 2, 1).reshape(B * Ts, HIDDEN),
                       params["enc_ln_g"], params["enc_ln_b"])          # (B*Ts, HIDDEN)

    # --- transformer encoder (post-LN, as in wav2vec2-base; dropout = no-op in eval) ---
    scale = HEAD_DIM ** -0.5

    def split_heads(t):
        return t.reshape(B, Ts, HEADS, HEAD_DIM).transpose(0, 2, 1, 3).reshape(
            B * HEADS, Ts, HEAD_DIM)

    def split_heads_t(t):   # K laid out (B*H, HEAD_DIM, Ts): no in-kernel transpose needed
        return t.reshape(B, Ts, HEADS, HEAD_DIM).transpose(0, 2, 3, 1).reshape(
            B * HEADS, HEAD_DIM, Ts)

    def merge_heads(t):
        return t.reshape(B, HEADS, Ts, HEAD_DIM).transpose(0, 2, 1, 3).reshape(B * Ts, HIDDEN)

    for lp in params["layers"]:
        # fused QKV projection (attention scale folded into the Q slice -> 192-wide output)
        qkv_w = jnp.concatenate([lp["q_w"] * scale, lp["k_w"], lp["v_w"]], axis=1)
        qkv_b = jnp.concatenate([lp["q_b"] * scale, lp["k_b"], lp["v_b"]], axis=0)
        qkv = pallas_matmul_bias(x2, qkv_w, qkv_b)                      # (B*Ts, 3*HIDDEN)
        q = qkv[:, :HIDDEN]
        k = qkv[:, HIDDEN:2 * HIDDEN]
        v = qkv[:, 2 * HIDDEN:]
        a = pallas_attention(split_heads(q), split_heads_t(k), split_heads(v))
        # attention output projection + residual + LayerNorm fused
        h1 = pallas_matmul_residual_ln(merge_heads(a), lp["o_w"], lp["o_b"], x2,
                                       lp["ln1_g"], lp["ln1_b"])
        # FFN (ff1 + GELU + ff2) + residual + LayerNorm fused
        x2 = pallas_ffn_residual_ln(h1, lp["ff1_w"], lp["ff1_b"], lp["ff2_w"], lp["ff2_b"],
                                    lp["ln2_g"], lp["ln2_b"])

    # --- classification head: projector -> mean pool over time -> classifier (one kernel) ---
    logits = pallas_head(x2, params["proj_w"], params["proj_b"],
                         params["cls_w"], params["cls_b"], B, Ts)       # (B, NUM_CLASSES)
    return logits


# ---------------------------------- main ----------------------------------
if __name__ == "__main__":
    key = jax.random.PRNGKey(0)
    pkey, xkey = jax.random.split(key)
    params = init_params(pkey)

    # Small raw-waveform input: batch=2, 400 samples -> 19 frames after the conv stack.
    x = jax.random.normal(xkey, (2, 400), dtype=jnp.float32)

    logits = jax.jit(forward)(params, x)
    logits = jax.block_until_ready(logits)
    assert logits.shape == (2, NUM_CLASSES)
    assert bool(jnp.all(jnp.isfinite(logits)))
    print("KERNEL_OK")
</pallas_src>

<mosaic_0001>
module attributes {stable_mosaic.version = 11 : i64} {
  func.func @_matmul_bias_kernel(%arg0: memref<158x10xf32, #tpu.memory_space<vmem>>, %arg1: memref<10x32xf32, #tpu.memory_space<vmem>>, %arg2: memref<1x32xf32, #tpu.memory_space<vmem>>, %arg3: memref<158x32xf32, #tpu.memory_space<vmem>>) attributes {dimension_semantics = [], scalar_prefetch = 0 : i64, scratch_operands = 0 : i64, tpu.core_type = #tpu.core_type<tc>} {
    %c0 = arith.constant 0 : index
    %c0_0 = arith.constant 0 : index
    %0 = vector.load %arg0[%c0, %c0_0] : memref<158x10xf32, #tpu.memory_space<vmem>>, vector<158x10xf32>
    %c0_1 = arith.constant 0 : index
    %c0_2 = arith.constant 0 : index
    %1 = vector.load %arg1[%c0_1, %c0_2] : memref<10x32xf32, #tpu.memory_space<vmem>>, vector<10x32xf32>
    %2 = arith.truncf %0 : vector<158x10xf32> to vector<158x10xbf16>
    %3 = arith.truncf %1 : vector<10x32xf32> to vector<10x32xbf16>
    %cst = arith.constant dense<0.000000e+00> : vector<158x32xf32>
    %4 = tpu.matmul %2, %3, %cst {dimension_numbers = #tpu.dot_dimension_numbers<[1], [0], [0], [1], [0, 0, 1, 1], [], []>} : vector<158x10xbf16>, vector<10x32xbf16>, vector<158x32xf32> -> vector<158x32xf32>
    %c0_3 = arith.constant 0 : index
    %c0_4 = arith.constant 0 : index
    %5 = vector.load %arg2[%c0_3, %c0_4] : memref<1x32xf32, #tpu.memory_space<vmem>>, vector<1x32xf32>
    %6 = vector.broadcast %5 : vector<1x32xf32> to vector<158x32xf32>
    %7 = arith.addf %4, %6 : vector<158x32xf32>
    %c0_5 = arith.constant 0 : index
    %c0_6 = arith.constant 0 : index
    %8 = vector.load %arg3[%c0_5, %c0_6] : memref<158x32xf32, #tpu.memory_space<vmem>>, vector<158x32xf32>
    tpu.vector_store %arg3[%c0_5, %c0_6], %7 {strides = array<i32>} : memref<158x32xf32, #tpu.memory_space<vmem>>, vector<158x32xf32>,
    return
  }
}

module attributes {stable_mosaic.version = 11 : i64} {
  func.func @_rownorm_kernel(%arg0: memref<64x79xf32, #tpu.memory_space<vmem>>, %arg1: memref<64x1xf32, #tpu.memory_space<vmem>>, %arg2: memref<64x1xf32, #tpu.memory_space<vmem>>, %arg3: memref<64x79xf32, #tpu.memory_space<vmem>>) attributes {dimension_semantics = [], scalar_prefetch = 0 : i64, scratch_operands = 0 : i64, tpu.core_type = #tpu.core_type<tc>} {
    %c0 = arith.constant 0 : index
    %c0_0 = arith.constant 0 : index
    %0 = vector.load %arg0[%c0, %c0_0] : memref<64x79xf32, #tpu.memory_space<vmem>>, vector<64x79xf32>
    %c0_1 = arith.constant 0 : index
    %c0_2 = arith.constant 0 : index
    %1 = vector.load %arg1[%c0_1, %c0_2] : memref<64x1xf32, #tpu.memory_space<vmem>>, vector<64x1xf32>
    %c0_3 = arith.constant 0 : index
    %c0_4 = arith.constant 0 : index
    %2 = vector.load %arg2[%c0_3, %c0_4] : memref<64x1xf32, #tpu.memory_space<vmem>>, vector<64x1xf32>
    %cst = arith.constant dense<0.000000e+00> : vector<64xf32>
    %3 = vector.multi_reduction <add>, %0, %cst [1] : vector<64x79xf32> to vector<64xf32>
    %4 = vector.shape_cast %3 : vector<64xf32> to vector<64x1xf32>
    %cst_5 = arith.constant 7.900000e+01 : f32
    %5 = vector.broadcast %cst_5 : f32 to vector<64x1xf32>
    %6 = arith.divf %4, %5 : vector<64x1xf32>
    %7 = vector.broadcast %6 : vector<64x1xf32> to vector<64x79xf32>
    %8 = arith.subf %0, %7 : vector<64x79xf32>
    %9 = arith.mulf %8, %8 : vector<64x79xf32>
    %cst_6 = arith.constant dense<0.000000e+00> : vector<64xf32>
    %10 = vector.multi_reduction <add>, %9, %cst_6 [1] : vector<64x79xf32> to vector<64xf32>
    %11 = vector.shape_cast %10 : vector<64xf32> to vector<64x1xf32>
    %cst_7 = arith.constant 7.900000e+01 : f32
    %12 = vector.broadcast %cst_7 : f32 to vector<64x1xf32>
    %13 = arith.divf %11, %12 : vector<64x1xf32>
    %14 = vector.broadcast %6 : vector<64x1xf32> to vector<64x79xf32>
    %15 = arith.subf %0, %14 : vector<64x79xf32>
    %cst_8 = arith.constant 9.99999974E-6 : f32
    %16 = vector.broadcast %cst_8 : f32 to vector<64x1xf32>
    %17 = arith.addf %13, %16 : vector<64x1xf32>
    %18 = math.rsqrt %17 : vector<64x1xf32>
    %19 = vector.broadcast %18 : vector<64x1xf32> to vector<64x79xf32>
    %20 = arith.mulf %15, %19 : vector<64x79xf32>
    %21 = vector.broadcast %1 : vector<64x1xf32> to vector<64x79xf32>
    %22 = arith.mulf %20, %21 : vector<64x79xf32>
    %23 = vector.broadcast %2 : vector<64x1xf32> to vector<64x79xf32>
    %24 = arith.addf %22, %23 : vector<64x79xf32>
    %25 = arith.mulf %24, %24 : vector<64x79xf32>
    %26 = arith.mulf %24, %25 : vector<64x79xf32>
    %cst_9 = arith.constant 4.471500e-02 : f32
    %27 = vector.broadcast %cst_9 : f32 to vector<64x79xf32>
    %28 = arith.mulf %27, %26 : vector<64x79xf32>
    %29 = arith.addf %24, %28 : vector<64x79xf32>
    %cst_10 = arith.constant 0.797884583 : f32
    %30 = vector.broadcast %cst_10 : f32 to vector<64x79xf32>
    %31 = arith.mulf %30, %29 : vector<64x79xf32>
    %32 = math.tanh %31 : vector<64x79xf32>
    %cst_11 = arith.constant 1.000000e+00 : f32
    %33 = vector.broadcast %cst_11 : f32 to vector<64x79xf32>
    %34 = arith.addf %33, %32 : vector<64x79xf32>
    %cst_12 = arith.constant 5.000000e-01 : f32
    %35 = vector.broadcast %cst_12 : f32 to vector<64x79xf32>
    %36 = arith.mulf %35, %34 : vector<64x79xf32>
    %37 = arith.mulf %24, %36 : vector<64x79xf32>
    %c0_13 = arith.constant 0 : index
    %c0_14 = arith.constant 0 : index
    %38 = vector.load %arg3[%c0_13, %c0_14] : memref<64x79xf32, #tpu.memory_space<vmem>>, vector<64x79xf32>
    tpu.vector_store %arg3[%c0_13, %c0_14], %37 {strides = array<i32>} : memref<64x79xf32, #tpu.memory_space<vmem>>, vector<64x79xf32>,
    return
  }
}

module attributes {stable_mosaic.version = 11 : i64} {
  func.func @_ln_matmul_kernel(%arg0: memref<38x32xf32, #tpu.memory_space<vmem>>, %arg1: memref<1x32xf32, #tpu.memory_space<vmem>>, %arg2: memref<1x32xf32, #tpu.memory_space<vmem>>, %arg3: memref<32x64xf32, #tpu.memory_space<vmem>>, %arg4: memref<1x64xf32, #tpu.memory_space<vmem>>, %arg5: memref<38x64xf32, #tpu.memory_space<vmem>>) attributes {dimension_semantics = [], scalar_prefetch = 0 : i64, scratch_operands = 0 : i64, tpu.core_type = #tpu.core_type<tc>} {
    %c0 = arith.constant 0 : index
    %c0_0 = arith.constant 0 : index
    %0 = vector.load %arg0[%c0, %c0_0] : memref<38x32xf32, #tpu.memory_space<vmem>>, vector<38x32xf32>
    %c0_1 = arith.constant 0 : index
    %c0_2 = arith.constant 0 : index
    %1 = vector.load %arg1[%c0_1, %c0_2] : memref<1x32xf32, #tpu.memory_space<vmem>>, vector<1x32xf32>
    %c0_3 = arith.constant 0 : index
    %c0_4 = arith.constant 0 : index
    %2 = vector.load %arg2[%c0_3, %c0_4] : memref<1x32xf32, #tpu.memory_space<vmem>>, vector<1x32xf32>
    %cst = arith.constant dense<0.000000e+00> : vector<38xf32>
    %3 = vector.multi_reduction <add>, %0, %cst [1] : vector<38x32xf32> to vector<38xf32>
    %4 = vector.shape_cast %3 : vector<38xf32> to vector<38x1xf32>
    %cst_5 = arith.constant 3.200000e+01 : f32
    %5 = vector.broadcast %cst_5 : f32 to vector<38x1xf32>
    %6 = arith.divf %4, %5 : vector<38x1xf32>
    %7 = vector.broadcast %6 : vector<38x1xf32> to vector<38x32xf32>
    %8 = arith.subf %0, %7 : vector<38x32xf32>
    %9 = arith.mulf %8, %8 : vector<38x32xf32>
    %cst_6 = arith.constant dense<0.000000e+00> : vector<38xf32>
    %10 = vector.multi_reduction <add>, %9, %cst_6 [1] : vector<38x32xf32> to vector<38xf32>
    %11 = vector.shape_cast %10 : vector<38xf32> to vector<38x1xf32>
    %cst_7 = arith.constant 3.200000e+01 : f32
    %12 = vector.broadcast %cst_7 : f32 to vector<38x1xf32>
    %13 = arith.divf %11, %12 : vector<38x1xf32>
    %14 = vector.broadcast %6 : vector<38x1xf32> to vector<38x32xf32>
    %15 = arith.subf %0, %14 : vector<38x32xf32>
    %cst_8 = arith.constant 9.99999974E-6 : f32
    %16 = vector.broadcast %cst_8 : f32 to vector<38x1xf32>
    %17 = arith.addf %13, %16 : vector<38x1xf32>
    %18 = math.rsqrt %17 : vector<38x1xf32>
    %19 = vector.broadcast %18 : vector<38x1xf32> to vector<38x32xf32>
    %20 = arith.mulf %15, %19 : vector<38x32xf32>
    %21 = vector.broadcast %1 : vector<1x32xf32> to vector<38x32xf32>
    %22 = arith.mulf %20, %21 : vector<38x32xf32>
    %23 = vector.broadcast %2 : vector<1x32xf32> to vector<38x32xf32>
    %24 = arith.addf %22, %23 : vector<38x32xf32>
    %c0_9 = arith.constant 0 : index
    %c0_10 = arith.constant 0 : index
    %25 = vector.load %arg3[%c0_9, %c0_10] : memref<32x64xf32, #tpu.memory_space<vmem>>, vector<32x64xf32>
    %26 = arith.truncf %24 : vector<38x32xf32> to vector<38x32xbf16>
    %27 = arith.truncf %25 : vector<32x64xf32> to vector<32x64xbf16>
    %cst_11 = arith.constant dense<0.000000e+00> : vector<38x64xf32>
    %28 = tpu.matmul %26, %27, %cst_11 {dimension_numbers = #tpu.dot_dimension_numbers<[1], [0], [0], [1], [0, 0, 1, 1], [], []>} : vector<38x32xbf16>, vector<32x64xbf16>, vector<38x64xf32> -> vector<38x64xf32>
    %c0_12 = arith.constant 0 : index
    %c0_13 = arith.constant 0 : index
    %29 = vector.load %arg4[%c0_12, %c0_13] : memref<1x64xf32, #tpu.memory_space<vmem>>, vector<1x64xf32>
    %30 = vector.broadcast %29 : vector<1x64xf32> to vector<38x64xf32>
    %31 = arith.addf %28, %30 : vector<38x64xf32>
    %c0_14 = arith.constant 0 : index
    %c0_15 = arith.constant 0 : index
    %32 = vector.load %arg5[%c0_14, %c0_15] : memref<38x64xf32, #tpu.memory_space<vmem>>, vector<38x64xf32>
    tpu.vector_store %arg5[%c0_14, %c0_15], %31 {strides = array<i32>} : memref<38x64xf32, #tpu.memory_space<vmem>>, vector<38x64xf32>,
    return
  }
}

module attributes {stable_mosaic.version = 11 : i64} {
  func.func @_matmul_bias_kernel(%arg0: memref<78x96xf32, #tpu.memory_space<vmem>>, %arg1: memref<96x32xf32, #tpu.memory_space<vmem>>, %arg2: memref<1x32xf32, #tpu.memory_space<vmem>>, %arg3: memref<78x32xf32, #tpu.memory_space<vmem>>) attributes {dimension_semantics = [], scalar_prefetch = 0 : i64, scratch_operands = 0 : i64, tpu.core_type = #tpu.core_type<tc>} {
    %c0 = arith.constant 0 : index
    %c0_0 = arith.constant 0 : index
    %0 = vector.load %arg0[%c0, %c0_0] : memref<78x96xf32, #tpu.memory_space<vmem>>, vector<78x96xf32>
    %c0_1 = arith.constant 0 : index
    %c0_2 = arith.constant 0 : index
    %1 = vector.load %arg1[%c0_1, %c0_2] : memref<96x32xf32, #tpu.memory_space<vmem>>, vector<96x32xf32>
    %2 = arith.truncf %0 : vector<78x96xf32> to vector<78x96xbf16>
    %3 = arith.truncf %1 : vector<96x32xf32> to vector<96x32xbf16>
    %cst = arith.constant dense<0.000000e+00> : vector<78x32xf32>
    %4 = tpu.matmul %2, %3, %cst {dimension_numbers = #tpu.dot_dimension_numbers<[1], [0], [0], [1], [0, 0, 1, 1], [], []>} : vector<78x96xbf16>, vector<96x32xbf16>, vector<78x32xf32> -> vector<78x32xf32>
    %c0_3 = arith.constant 0 : index
    %c0_4 = arith.constant 0 : index
    %5 = vector.load %arg2[%c0_3, %c0_4] : memref<1x32xf32, #tpu.memory_space<vmem>>, vector<1x32xf32>
    %6 = vector.broadcast %5 : vector<1x32xf32> to vector<78x32xf32>
    %7 = arith.addf %4, %6 : vector<78x32xf32>
    %8 = arith.mulf %7, %7 : vector<78x32xf32>
    %9 = arith.mulf %7, %8 : vector<78x32xf32>
    %cst_5 = arith.constant 4.471500e-02 : f32
    %10 = vector.broadcast %cst_5 : f32 to vector<78x32xf32>
    %11 = arith.mulf %10, %9 : vector<78x32xf32>
    %12 = arith.addf %7, %11 : vector<78x32xf32>
    %cst_6 = arith.constant 0.797884583 : f32
    %13 = vector.broadcast %cst_6 : f32 to vector<78x32xf32>
    %14 = arith.mulf %13, %12 : vector<78x32xf32>
    %15 = math.tanh %14 : vector<78x32xf32>
    %cst_7 = arith.constant 1.000000e+00 : f32
    %16 = vector.broadcast %cst_7 : f32 to vector<78x32xf32>
    %17 = arith.addf %16, %15 : vector<78x32xf32>
    %cst_8 = arith.constant 5.000000e-01 : f32
    %18 = vector.broadcast %cst_8 : f32 to vector<78x32xf32>
    %19 = arith.mulf %18, %17 : vector<78x32xf32>
    %20 = arith.mulf %7, %19 : vector<78x32xf32>
    %c0_9 = arith.constant 0 : index
    %c0_10 = arith.constant 0 : index
    %21 = vector.load %arg3[%c0_9, %c0_10] : memref<78x32xf32, #tpu.memory_space<vmem>>, vector<78x32xf32>
    tpu.vector_store %arg3[%c0_9, %c0_10], %20 {strides = array<i32>} : memref<78x32xf32, #tpu.memory_space<vmem>>, vector<78x32xf32>,
    return
  }
}

module attributes {stable_mosaic.version = 11 : i64} {
  func.func @_matmul_bias_kernel(%arg0: memref<38x64xf32, #tpu.memory_space<vmem>>, %arg1: memref<64x32xf32, #tpu.memory_space<vmem>>, %arg2: memref<1x32xf32, #tpu.memory_space<vmem>>, %arg3: memref<38x32xf32, #tpu.memory_space<vmem>>) attributes {dimension_semantics = [], scalar_prefetch = 0 : i64, scratch_operands = 0 : i64, tpu.core_type = #tpu.core_type<tc>} {
    %c0 = arith.constant 0 : index
    %c0_0 = arith.constant 0 : index
    %0 = vector.load %arg0[%c0, %c0_0] : memref<38x64xf32, #tpu.memory_space<vmem>>, vector<38x64xf32>
    %c0_1 = arith.constant 0 : index
    %c0_2 = arith.constant 0 : index
    %1 = vector.load %arg1[%c0_1, %c0_2] : memref<64x32xf32, #tpu.memory_space<vmem>>, vector<64x32xf32>
    %2 = arith.truncf %0 : vector<38x64xf32> to vector<38x64xbf16>
    %3 = arith.truncf %1 : vector<64x32xf32> to vector<64x32xbf16>
    %cst = arith.constant dense<0.000000e+00> : vector<38x32xf32>
    %4 = tpu.matmul %2, %3, %cst {dimension_numbers = #tpu.dot_dimension_numbers<[1], [0], [0], [1], [0, 0, 1, 1], [], []>} : vector<38x64xbf16>, vector<64x32xbf16>, vector<38x32xf32> -> vector<38x32xf32>
    %c0_3 = arith.constant 0 : index
    %c0_4 = arith.constant 0 : index
    %5 = vector.load %arg2[%c0_3, %c0_4] : memref<1x32xf32, #tpu.memory_space<vmem>>, vector<1x32xf32>
    %6 = vector.broadcast %5 : vector<1x32xf32> to vector<38x32xf32>
    %7 = arith.addf %4, %6 : vector<38x32xf32>
    %8 = arith.mulf %7, %7 : vector<38x32xf32>
    %9 = arith.mulf %7, %8 : vector<38x32xf32>
    %cst_5 = arith.constant 4.471500e-02 : f32
    %10 = vector.broadcast %cst_5 : f32 to vector<38x32xf32>
    %11 = arith.mulf %10, %9 : vector<38x32xf32>
    %12 = arith.addf %7, %11 : vector<38x32xf32>
    %cst_6 = arith.constant 0.797884583 : f32
    %13 = vector.broadcast %cst_6 : f32 to vector<38x32xf32>
    %14 = arith.mulf %13, %12 : vector<38x32xf32>
    %15 = math.tanh %14 : vector<38x32xf32>
    %cst_7 = arith.constant 1.000000e+00 : f32
    %16 = vector.broadcast %cst_7 : f32 to vector<38x32xf32>
    %17 = arith.addf %16, %15 : vector<38x32xf32>
    %cst_8 = arith.constant 5.000000e-01 : f32
    %18 = vector.broadcast %cst_8 : f32 to vector<38x32xf32>
    %19 = arith.mulf %18, %17 : vector<38x32xf32>
    %20 = arith.mulf %7, %19 : vector<38x32xf32>
    %c0_9 = arith.constant 0 : index
    %c0_10 = arith.constant 0 : index
    %21 = vector.load %arg3[%c0_9, %c0_10] : memref<38x32xf32, #tpu.memory_space<vmem>>, vector<38x32xf32>
    tpu.vector_store %arg3[%c0_9, %c0_10], %20 {strides = array<i32>} : memref<38x32xf32, #tpu.memory_space<vmem>>, vector<38x32xf32>,
    return
  }
}

module attributes {stable_mosaic.version = 11 : i64} {
  func.func @_matmul_bias_kernel(%arg0: memref<40x512xf32, #tpu.memory_space<vmem>>, %arg1: memref<512x64xf32, #tpu.memory_space<vmem>>, %arg2: memref<1x64xf32, #tpu.memory_space<vmem>>, %arg3: memref<40x64xf32, #tpu.memory_space<vmem>>) attributes {dimension_semantics = [], scalar_prefetch = 0 : i64, scratch_operands = 0 : i64, tpu.core_type = #tpu.core_type<tc>} {
    %c0 = arith.constant 0 : index
    %c0_0 = arith.constant 0 : index
    %0 = vector.load %arg0[%c0, %c0_0] : memref<40x512xf32, #tpu.memory_space<vmem>>, vector<40x512xf32>
    %c0_1 = arith.constant 0 : index
    %c0_2 = arith.constant 0 : index
    %1 = vector.load %arg1[%c0_1, %c0_2] : memref<512x64xf32, #tpu.memory_space<vmem>>, vector<512x64xf32>
    %2 = arith.truncf %0 : vector<40x512xf32> to vector<40x512xbf16>
    %3 = arith.truncf %1 : vector<512x64xf32> to vector<512x64xbf16>
    %cst = arith.constant dense<0.000000e+00> : vector<40x64xf32>
    %4 = tpu.matmul %2, %3, %cst {dimension_numbers = #tpu.dot_dimension_numbers<[1], [0], [0], [1], [0, 0, 1, 1], [], []>} : vector<40x512xbf16>, vector<512x64xbf16>, vector<40x64xf32> -> vector<40x64xf32>
    %c0_3 = arith.constant 0 : index
    %c0_4 = arith.constant 0 : index
    %5 = vector.load %arg2[%c0_3, %c0_4] : memref<1x64xf32, #tpu.memory_space<vmem>>, vector<1x64xf32>
    %6 = vector.broadcast %5 : vector<1x64xf32> to vector<40x64xf32>
    %7 = arith.addf %4, %6 : vector<40x64xf32>
    %8 = arith.mulf %7, %7 : vector<40x64xf32>
    %9 = arith.mulf %7, %8 : vector<40x64xf32>
    %cst_5 = arith.constant 4.471500e-02 : f32
    %10 = vector.broadcast %cst_5 : f32 to vector<40x64xf32>
    %11 = arith.mulf %10, %9 : vector<40x64xf32>
    %12 = arith.addf %7, %11 : vector<40x64xf32>
    %cst_6 = arith.constant 0.797884583 : f32
    %13 = vector.broadcast %cst_6 : f32 to vector<40x64xf32>
    %14 = arith.mulf %13, %12 : vector<40x64xf32>
    %15 = math.tanh %14 : vector<40x64xf32>
    %cst_7 = arith.constant 1.000000e+00 : f32
    %16 = vector.broadcast %cst_7 : f32 to vector<40x64xf32>
    %17 = arith.addf %16, %15 : vector<40x64xf32>
    %cst_8 = arith.constant 5.000000e-01 : f32
    %18 = vector.broadcast %cst_8 : f32 to vector<40x64xf32>
    %19 = arith.mulf %18, %17 : vector<40x64xf32>
    %20 = arith.mulf %7, %19 : vector<40x64xf32>
    %c0_9 = arith.constant 0 : index
    %c0_10 = arith.constant 0 : index
    %21 = vector.load %arg3[%c0_9, %c0_10] : memref<40x64xf32, #tpu.memory_space<vmem>>, vector<40x64xf32>
    tpu.vector_store %arg3[%c0_9, %c0_10], %20 {strides = array<i32>} : memref<40x64xf32, #tpu.memory_space<vmem>>, vector<40x64xf32>,
    return
  }
}

module attributes {stable_mosaic.version = 11 : i64} {
  func.func @_add_ln_kernel(%arg0: memref<38x64xf32, #tpu.memory_space<vmem>>, %arg1: memref<38x64xf32, #tpu.memory_space<vmem>>, %arg2: memref<1x64xf32, #tpu.memory_space<vmem>>, %arg3: memref<1x64xf32, #tpu.memory_space<vmem>>, %arg4: memref<38x64xf32, #tpu.memory_space<vmem>>) attributes {dimension_semantics = [], scalar_prefetch = 0 : i64, scratch_operands = 0 : i64, tpu.core_type = #tpu.core_type<tc>} {
    %c0 = arith.constant 0 : index
    %c0_0 = arith.constant 0 : index
    %0 = vector.load %arg0[%c0, %c0_0] : memref<38x64xf32, #tpu.memory_space<vmem>>, vector<38x64xf32>
    %c0_1 = arith.constant 0 : index
    %c0_2 = arith.constant 0 : index
    %1 = vector.load %arg1[%c0_1, %c0_2] : memref<38x64xf32, #tpu.memory_space<vmem>>, vector<38x64xf32>
    %2 = arith.addf %0, %1 : vector<38x64xf32>
    %c0_3 = arith.constant 0 : index
    %c0_4 = arith.constant 0 : index
    %3 = vector.load %arg2[%c0_3, %c0_4] : memref<1x64xf32, #tpu.memory_space<vmem>>, vector<1x64xf32>
    %c0_5 = arith.constant 0 : index
    %c0_6 = arith.constant 0 : index
    %4 = vector.load %arg3[%c0_5, %c0_6] : memref<1x64xf32, #tpu.memory_space<vmem>>, vector<1x64xf32>
    %cst = arith.constant dense<0.000000e+00> : vector<38xf32>
    %5 = vector.multi_reduction <add>, %2, %cst [1] : vector<38x64xf32> to vector<38xf32>
    %6 = vector.shape_cast %5 : vector<38xf32> to vector<38x1xf32>
    %cst_7 = arith.constant 6.400000e+01 : f32
    %7 = vector.broadcast %cst_7 : f32 to vector<38x1xf32>
    %8 = arith.divf %6, %7 : vector<38x1xf32>
    %9 = vector.broadcast %8 : vector<38x1xf32> to vector<38x64xf32>
    %10 = arith.subf %2, %9 : vector<38x64xf32>
    %11 = arith.mulf %10, %10 : vector<38x64xf32>
    %cst_8 = arith.constant dense<0.000000e+00> : vector<38xf32>
    %12 = vector.multi_reduction <add>, %11, %cst_8 [1] : vector<38x64xf32> to vector<38xf32>
    %13 = vector.shape_cast %12 : vector<38xf32> to vector<38x1xf32>
    %cst_9 = arith.constant 6.400000e+01 : f32
    %14 = vector.broadcast %cst_9 : f32 to vector<38x1xf32>
    %15 = arith.divf %13, %14 : vector<38x1xf32>
    %16 = vector.broadcast %8 : vector<38x1xf32> to vector<38x64xf32>
    %17 = arith.subf %2, %16 : vector<38x64xf32>
    %cst_10 = arith.constant 9.99999974E-6 : f32
    %18 = vector.broadcast %cst_10 : f32 to vector<38x1xf32>
    %19 = arith.addf %15, %18 : vector<38x1xf32>
    %20 = math.rsqrt %19 : vector<38x1xf32>
    %21 = vector.broadcast %20 : vector<38x1xf32> to vector<38x64xf32>
    %22 = arith.mulf %17, %21 : vector<38x64xf32>
    %23 = vector.broadcast %3 : vector<1x64xf32> to vector<38x64xf32>
    %24 = arith.mulf %22, %23 : vector<38x64xf32>
    %25 = vector.broadcast %4 : vector<1x64xf32> to vector<38x64xf32>
    %26 = arith.addf %24, %25 : vector<38x64xf32>
    %c0_11 = arith.constant 0 : index
    %c0_12 = arith.constant 0 : index
    %27 = vector.load %arg4[%c0_11, %c0_12] : memref<38x64xf32, #tpu.memory_space<vmem>>, vector<38x64xf32>
    tpu.vector_store %arg4[%c0_11, %c0_12], %26 {strides = array<i32>} : memref<38x64xf32, #tpu.memory_space<vmem>>, vector<38x64xf32>,
    return
  }
}

module attributes {stable_mosaic.version = 11 : i64} {
  func.func @_matmul_bias_kernel(%arg0: memref<38x64xf32, #tpu.memory_space<vmem>>, %arg1: memref<64x192xf32, #tpu.memory_space<vmem>>, %arg2: memref<1x192xf32, #tpu.memory_space<vmem>>, %arg3: memref<38x192xf32, #tpu.memory_space<vmem>>) attributes {dimension_semantics = [], scalar_prefetch = 0 : i64, scratch_operands = 0 : i64, tpu.core_type = #tpu.core_type<tc>} {
    %c0 = arith.constant 0 : index
    %c0_0 = arith.constant 0 : index
    %0 = vector.load %arg0[%c0, %c0_0] : memref<38x64xf32, #tpu.memory_space<vmem>>, vector<38x64xf32>
    %c0_1 = arith.constant 0 : index
    %c0_2 = arith.constant 0 : index
    %1 = vector.load %arg1[%c0_1, %c0_2] : memref<64x192xf32, #tpu.memory_space<vmem>>, vector<64x192xf32>
    %2 = arith.truncf %0 : vector<38x64xf32> to vector<38x64xbf16>
    %3 = arith.truncf %1 : vector<64x192xf32> to vector<64x192xbf16>
    %cst = arith.constant dense<0.000000e+00> : vector<38x192xf32>
    %4 = tpu.matmul %2, %3, %cst {dimension_numbers = #tpu.dot_dimension_numbers<[1], [0], [0], [1], [0, 0, 1, 1], [], []>} : vector<38x64xbf16>, vector<64x192xbf16>, vector<38x192xf32> -> vector<38x192xf32>
    %c0_3 = arith.constant 0 : index
    %c0_4 = arith.constant 0 : index
    %5 = vector.load %arg2[%c0_3, %c0_4] : memref<1x192xf32, #tpu.memory_space<vmem>>, vector<1x192xf32>
    %6 = vector.broadcast %5 : vector<1x192xf32> to vector<38x192xf32>
    %7 = arith.addf %4, %6 : vector<38x192xf32>
    %c0_5 = arith.constant 0 : index
    %c0_6 = arith.constant 0 : index
    %8 = vector.load %arg3[%c0_5, %c0_6] : memref<38x192xf32, #tpu.memory_space<vmem>>, vector<38x192xf32>
    tpu.vector_store %arg3[%c0_5, %c0_6], %7 {strides = array<i32>} : memref<38x192xf32, #tpu.memory_space<vmem>>, vector<38x192xf32>,
    return
  }
}

module attributes {stable_mosaic.version = 11 : i64} {
  func.func @_attention_kernel(%arg0: i32, %arg1: memref<1x19x16xf32, #tpu.memory_space<vmem>>, %arg2: memref<1x16x19xf32, #tpu.memory_space<vmem>>, %arg3: memref<1x19x16xf32, #tpu.memory_space<vmem>>, %arg4: memref<1x19x16xf32, #tpu.memory_space<vmem>>) attributes {dimension_semantics = [#tpu.dimension_semantics<parallel>], iteration_bounds = array<i64: 8>, scalar_prefetch = 0 : i64, scratch_operands = 0 : i64, tpu.core_type = #tpu.core_type<tc>, window_params = [{transform_indices = @transform_0, window_bounds = array<i64: 1, 19, 16>}, {transform_indices = @transform_1, window_bounds = array<i64: 1, 16, 19>}, {transform_indices = @transform_2, window_bounds = array<i64: 1, 19, 16>}, {transform_indices = @transform_3, window_bounds = array<i64: 1, 19, 16>}]} {
    %c0 = arith.constant 0 : index
    %c0_0 = arith.constant 0 : index
    %c0_1 = arith.constant 0 : index
    %0 = vector.load %arg1[%c0, %c0_0, %c0_1] : memref<1x19x16xf32, #tpu.memory_space<vmem>>, vector<1x19x16xf32>
    %1 = vector.shape_cast %0 : vector<1x19x16xf32> to vector<19x16xf32>
    %c0_2 = arith.constant 0 : index
    %c0_3 = arith.constant 0 : index
    %c0_4 = arith.constant 0 : index
    %2 = vector.load %arg2[%c0_2, %c0_3, %c0_4] : memref<1x16x19xf32, #tpu.memory_space<vmem>>, vector<1x16x19xf32>
    %3 = vector.shape_cast %2 : vector<1x16x19xf32> to vector<16x19xf32>
    %c0_5 = arith.constant 0 : index
    %c0_6 = arith.constant 0 : index
    %c0_7 = arith.constant 0 : index
    %4 = vector.load %arg3[%c0_5, %c0_6, %c0_7] : memref<1x19x16xf32, #tpu.memory_space<vmem>>, vector<1x19x16xf32>
    %5 = vector.shape_cast %4 : vector<1x19x16xf32> to vector<19x16xf32>
    %6 = arith.truncf %1 : vector<19x16xf32> to vector<19x16xbf16>
    %7 = arith.truncf %3 : vector<16x19xf32> to vector<16x19xbf16>
    %cst = arith.constant dense<0.000000e+00> : vector<19x19xf32>
    %8 = tpu.matmul %6, %7, %cst {dimension_numbers = #tpu.dot_dimension_numbers<[1], [0], [0], [1], [0, 0, 1, 1], [], []>} : vector<19x16xbf16>, vector<16x19xbf16>, vector<19x19xf32> -> vector<19x19xf32>
    %cst_8 = arith.constant dense<0xFF800000> : vector<19xf32>
    %9 = vector.multi_reduction <maximumf>, %8, %cst_8 [1] : vector<19x19xf32> to vector<19xf32>
    %10 = vector.shape_cast %9 : vector<19xf32> to vector<19x1xf32>
    %11 = vector.broadcast %10 : vector<19x1xf32> to vector<19x19xf32>
    %12 = arith.subf %8, %11 : vector<19x19xf32>
    %13 = math.exp %12 : vector<19x19xf32>
    %cst_9 = arith.constant dense<0.000000e+00> : vector<19xf32>
    %14 = vector.multi_reduction <add>, %13, %cst_9 [1] : vector<19x19xf32> to vector<19xf32>
    %15 = vector.shape_cast %14 : vector<19xf32> to vector<19x1xf32>
    %16 = tpu.reciprocal %15 {approx = true} : vector<19x1xf32> -> vector<19x1xf32>
    %17 = vector.broadcast %16 : vector<19x1xf32> to vector<19x19xf32>
    %18 = arith.mulf %13, %17 : vector<19x19xf32>
    %19 = arith.truncf %18 : vector<19x19xf32> to vector<19x19xbf16>
    %20 = arith.truncf %5 : vector<19x16xf32> to vector<19x16xbf16>
    %cst_10 = arith.constant dense<0.000000e+00> : vector<19x16xf32>
    %21 = tpu.matmul %19, %20, %cst_10 {dimension_numbers = #tpu.dot_dimension_numbers<[1], [0], [0], [1], [0, 0, 1, 1], [], []>} : vector<19x19xbf16>, vector<19x16xbf16>, vector<19x16xf32> -> vector<19x16xf32>
    %c0_11 = arith.constant 0 : index
    %c0_12 = arith.constant 0 : index
    %c0_13 = arith.constant 0 : index
    %22 = vector.load %arg4[%c0_11, %c0_12, %c0_13] : memref<1x19x16xf32, #tpu.memory_space<vmem>>, vector<1x19x16xf32>
    %23 = vector.shape_cast %22 : vector<1x19x16xf32> to vector<19x16xf32>
    %24 = vector.shape_cast %21 : vector<19x16xf32> to vector<1x19x16xf32>
    tpu.vector_store %arg4[%c0_11, %c0_12, %c0_13], %24 {strides = array<i32>} : memref<1x19x16xf32, #tpu.memory_space<vmem>>, vector<1x19x16xf32>,
    return
  }
  func.func @transform_0(%arg0: i32) -> (i32, i32, i32) {
    %c0_i32 = arith.constant 0 : i32
    %c0_i32_0 = arith.constant 0 : i32
    %c0_i32_1 = arith.constant 0 : i32
    return %arg0, %c0_i32, %c0_i32_0 : i32, i32, i32
  }
  func.func @transform_1(%arg0: i32) -> (i32, i32, i32) {
    %c0_i32 = arith.constant 0 : i32
    %c0_i32_0 = arith.constant 0 : i32
    %c0_i32_1 = arith.constant 0 : i32
    return %arg0, %c0_i32, %c0_i32_0 : i32, i32, i32
  }
  func.func @transform_2(%arg0: i32) -> (i32, i32, i32) {
    %c0_i32 = arith.constant 0 : i32
    %c0_i32_0 = arith.constant 0 : i32
    %c0_i32_1 = arith.constant 0 : i32
    return %arg0, %c0_i32, %c0_i32_0 : i32, i32, i32
  }
  func.func @transform_3(%arg0: i32) -> (i32, i32, i32) {
    %c0_i32 = arith.constant 0 : i32
    %c0_i32_0 = arith.constant 0 : i32
    %c0_i32_1 = arith.constant 0 : i32
    return %arg0, %c0_i32, %c0_i32_0 : i32, i32, i32
  }
}

module attributes {stable_mosaic.version = 11 : i64} {
  func.func @_head_kernel(%arg0: memref<38x64xf32, #tpu.memory_space<vmem>>, %arg1: memref<64x32xf32, #tpu.memory_space<vmem>>, %arg2: memref<1x32xf32, #tpu.memory_space<vmem>>, %arg3: memref<32x7xf32, #tpu.memory_space<vmem>>, %arg4: memref<1x7xf32, #tpu.memory_space<vmem>>, %arg5: memref<2x7xf32, #tpu.memory_space<vmem>>) attributes {dimension_semantics = [], scalar_prefetch = 0 : i64, scratch_operands = 0 : i64, tpu.core_type = #tpu.core_type<tc>} {
    %c0 = arith.constant 0 : index
    %c0_0 = arith.constant 0 : index
    %0 = vector.load %arg0[%c0, %c0_0] : memref<38x64xf32, #tpu.memory_space<vmem>>, vector<38x64xf32>
    %c0_1 = arith.constant 0 : index
    %c0_2 = arith.constant 0 : index
    %1 = vector.load %arg1[%c0_1, %c0_2] : memref<64x32xf32, #tpu.memory_space<vmem>>, vector<64x32xf32>
    %2 = arith.truncf %0 : vector<38x64xf32> to vector<38x64xbf16>
    %3 = arith.truncf %1 : vector<64x32xf32> to vector<64x32xbf16>
    %cst = arith.constant dense<0.000000e+00> : vector<38x32xf32>
    %4 = tpu.matmul %2, %3, %cst {dimension_numbers = #tpu.dot_dimension_numbers<[1], [0], [0], [1], [0, 0, 1, 1], [], []>} : vector<38x64xbf16>, vector<64x32xbf16>, vector<38x32xf32> -> vector<38x32xf32>
    %c0_3 = arith.constant 0 : index
    %c0_4 = arith.constant 0 : index
    %5 = vector.load %arg2[%c0_3, %c0_4] : memref<1x32xf32, #tpu.memory_space<vmem>>, vector<1x32xf32>
    %6 = vector.broadcast %5 : vector<1x32xf32> to vector<38x32xf32>
    %7 = arith.addf %4, %6 : vector<38x32xf32>
    %8 = tpu.iota {dimensions = array<i32: 0>} : vector<2x38xi32>
    %9 = tpu.iota {dimensions = array<i32: 1>} : vector<2x38xi32>
    %c19_i32 = arith.constant 19 : i32
    %10 = vector.broadcast %c19_i32 : i32 to vector<2x38xi32>
    %11 = arith.muli %8, %10 : vector<2x38xi32>
    %12 = arith.cmpi sge, %9, %11 : vector<2x38xi32>
    %c1_i32 = arith.constant 1 : i32
    %13 = vector.broadcast %c1_i32 : i32 to vector<2x38xi32>
    %14 = arith.addi %8, %13 : vector<2x38xi32>
    %c19_i32_5 = arith.constant 19 : i32
    %15 = vector.broadcast %c19_i32_5 : i32 to vector<2x38xi32>
    %16 = arith.muli %14, %15 : vector<2x38xi32>
    %17 = arith.cmpi slt, %9, %16 : vector<2x38xi32>
    %18 = arith.andi %12, %17 : vector<2x38xi1>
    %cst_6 = arith.constant 0.0526315793 : f32
    %cst_7 = arith.constant 0.000000e+00 : f32
    %19 = vector.broadcast %cst_6 : f32 to vector<2x38xf32>
    %20 = vector.broadcast %cst_7 : f32 to vector<2x38xf32>
    %21 = arith.select %18, %19, %20 : vector<2x38xi1>, vector<2x38xf32>
    %cst_8 = arith.constant dense<0.000000e+00> : vector<2x32xf32>
    %22 = tpu.matmul %21, %7, %cst_8 {dimension_numbers = #tpu.dot_dimension_numbers<[1], [0], [0], [1], [0, 0, 1, 1], [], []>} : vector<2x38xf32>, vector<38x32xf32>, vector<2x32xf32> -> vector<2x32xf32>
    %c0_9 = arith.constant 0 : index
    %c0_10 = arith.constant 0 : index
    %23 = vector.load %arg3[%c0_9, %c0_10] : memref<32x7xf32, #tpu.memory_space<vmem>>, vector<32x7xf32>
    %cst_11 = arith.constant dense<0.000000e+00> : vector<2x7xf32>
    %24 = tpu.matmul %22, %23, %cst_11 {dimension_numbers = #tpu.dot_dimension_numbers<[1], [0], [0], [1], [0, 0, 1, 1], [], []>} : vector<2x32xf32>, vector<32x7xf32>, vector<2x7xf32> -> vector<2x7xf32>
    %c0_12 = arith.constant 0 : index
    %c0_13 = arith.constant 0 : index
    %25 = vector.load %arg4[%c0_12, %c0_13] : memref<1x7xf32, #tpu.memory_space<vmem>>, vector<1x7xf32>
    %26 = vector.broadcast %25 : vector<1x7xf32> to vector<2x7xf32>
    %27 = arith.addf %24, %26 : vector<2x7xf32>
    %c0_14 = arith.constant 0 : index
    %c0_15 = arith.constant 0 : index
    %28 = vector.load %arg5[%c0_14, %c0_15] : memref<2x7xf32, #tpu.memory_space<vmem>>, vector<2x7xf32>
    tpu.vector_store %arg5[%c0_14, %c0_15], %27 {strides = array<i32>} : memref<2x7xf32, #tpu.memory_space<vmem>>, vector<2x7xf32>,
    return
  }
}

module attributes {stable_mosaic.version = 11 : i64} {
  func.func @_matmul_residual_ln_kernel(%arg0: memref<38x64xf32, #tpu.memory_space<vmem>>, %arg1: memref<64x64xf32, #tpu.memory_space<vmem>>, %arg2: memref<1x64xf32, #tpu.memory_space<vmem>>, %arg3: memref<38x64xf32, #tpu.memory_space<vmem>>, %arg4: memref<1x64xf32, #tpu.memory_space<vmem>>, %arg5: memref<1x64xf32, #tpu.memory_space<vmem>>, %arg6: memref<38x64xf32, #tpu.memory_space<vmem>>) attributes {dimension_semantics = [], scalar_prefetch = 0 : i64, scratch_operands = 0 : i64, tpu.core_type = #tpu.core_type<tc>} {
    %c0 = arith.constant 0 : index
    %c0_0 = arith.constant 0 : index
    %0 = vector.load %arg0[%c0, %c0_0] : memref<38x64xf32, #tpu.memory_space<vmem>>, vector<38x64xf32>
    %c0_1 = arith.constant 0 : index
    %c0_2 = arith.constant 0 : index
    %1 = vector.load %arg1[%c0_1, %c0_2] : memref<64x64xf32, #tpu.memory_space<vmem>>, vector<64x64xf32>
    %2 = arith.truncf %0 : vector<38x64xf32> to vector<38x64xbf16>
    %3 = arith.truncf %1 : vector<64x64xf32> to vector<64x64xbf16>
    %cst = arith.constant dense<0.000000e+00> : vector<38x64xf32>
    %4 = tpu.matmul %2, %3, %cst {dimension_numbers = #tpu.dot_dimension_numbers<[1], [0], [0], [1], [0, 0, 1, 1], [], []>} : vector<38x64xbf16>, vector<64x64xbf16>, vector<38x64xf32> -> vector<38x64xf32>
    %c0_3 = arith.constant 0 : index
    %c0_4 = arith.constant 0 : index
    %5 = vector.load %arg2[%c0_3, %c0_4] : memref<1x64xf32, #tpu.memory_space<vmem>>, vector<1x64xf32>
    %6 = vector.broadcast %5 : vector<1x64xf32> to vector<38x64xf32>
    %7 = arith.addf %4, %6 : vector<38x64xf32>
    %c0_5 = arith.constant 0 : index
    %c0_6 = arith.constant 0 : index
    %8 = vector.load %arg3[%c0_5, %c0_6] : memref<38x64xf32, #tpu.memory_space<vmem>>, vector<38x64xf32>
    %9 = arith.addf %7, %8 : vector<38x64xf32>
    %c0_7 = arith.constant 0 : index
    %c0_8 = arith.constant 0 : index
    %10 = vector.load %arg4[%c0_7, %c0_8] : memref<1x64xf32, #tpu.memory_space<vmem>>, vector<1x64xf32>
    %c0_9 = arith.constant 0 : index
    %c0_10 = arith.constant 0 : index
    %11 = vector.load %arg5[%c0_9, %c0_10] : memref<1x64xf32, #tpu.memory_space<vmem>>, vector<1x64xf32>
    %cst_11 = arith.constant dense<0.000000e+00> : vector<38xf32>
    %12 = vector.multi_reduction <add>, %9, %cst_11 [1] : vector<38x64xf32> to vector<38xf32>
    %13 = vector.shape_cast %12 : vector<38xf32> to vector<38x1xf32>
    %cst_12 = arith.constant 6.400000e+01 : f32
    %14 = vector.broadcast %cst_12 : f32 to vector<38x1xf32>
    %15 = arith.divf %13, %14 : vector<38x1xf32>
    %16 = vector.broadcast %15 : vector<38x1xf32> to vector<38x64xf32>
    %17 = arith.subf %9, %16 : vector<38x64xf32>
    %18 = arith.mulf %17, %17 : vector<38x64xf32>
    %cst_13 = arith.constant dense<0.000000e+00> : vector<38xf32>
    %19 = vector.multi_reduction <add>, %18, %cst_13 [1] : vector<38x64xf32> to vector<38xf32>
    %20 = vector.shape_cast %19 : vector<38xf32> to vector<38x1xf32>
    %cst_14 = arith.constant 6.400000e+01 : f32
    %21 = vector.broadcast %cst_14 : f32 to vector<38x1xf32>
    %22 = arith.divf %20, %21 : vector<38x1xf32>
    %23 = vector.broadcast %15 : vector<38x1xf32> to vector<38x64xf32>
    %24 = arith.subf %9, %23 : vector<38x64xf32>
    %cst_15 = arith.constant 9.99999974E-6 : f32
    %25 = vector.broadcast %cst_15 : f32 to vector<38x1xf32>
    %26 = arith.addf %22, %25 : vector<38x1xf32>
    %27 = math.rsqrt %26 : vector<38x1xf32>
    %28 = vector.broadcast %27 : vector<38x1xf32> to vector<38x64xf32>
    %29 = arith.mulf %24, %28 : vector<38x64xf32>
    %30 = vector.broadcast %10 : vector<1x64xf32> to vector<38x64xf32>
    %31 = arith.mulf %29, %30 : vector<38x64xf32>
    %32 = vector.broadcast %11 : vector<1x64xf32> to vector<38x64xf32>
    %33 = arith.addf %31, %32 : vector<38x64xf32>
    %c0_16 = arith.constant 0 : index
    %c0_17 = arith.constant 0 : index
    %34 = vector.load %arg6[%c0_16, %c0_17] : memref<38x64xf32, #tpu.memory_space<vmem>>, vector<38x64xf32>
    tpu.vector_store %arg6[%c0_16, %c0_17], %33 {strides = array<i32>} : memref<38x64xf32, #tpu.memory_space<vmem>>, vector<38x64xf32>,
    return
  }
}

module attributes {stable_mosaic.version = 11 : i64} {
  func.func @_ffn_residual_ln_kernel(%arg0: memref<38x64xf32, #tpu.memory_space<vmem>>, %arg1: memref<64x128xf32, #tpu.memory_space<vmem>>, %arg2: memref<1x128xf32, #tpu.memory_space<vmem>>, %arg3: memref<128x64xf32, #tpu.memory_space<vmem>>, %arg4: memref<1x64xf32, #tpu.memory_space<vmem>>, %arg5: memref<1x64xf32, #tpu.memory_space<vmem>>, %arg6: memref<1x64xf32, #tpu.memory_space<vmem>>, %arg7: memref<38x64xf32, #tpu.memory_space<vmem>>) attributes {dimension_semantics = [], scalar_prefetch = 0 : i64, scratch_operands = 0 : i64, tpu.core_type = #tpu.core_type<tc>} {
    %c0 = arith.constant 0 : index
    %c0_0 = arith.constant 0 : index
    %0 = vector.load %arg0[%c0, %c0_0] : memref<38x64xf32, #tpu.memory_space<vmem>>, vector<38x64xf32>
    %c0_1 = arith.constant 0 : index
    %c0_2 = arith.constant 0 : index
    %1 = vector.load %arg1[%c0_1, %c0_2] : memref<64x128xf32, #tpu.memory_space<vmem>>, vector<64x128xf32>
    %2 = arith.truncf %0 : vector<38x64xf32> to vector<38x64xbf16>
    %3 = arith.truncf %1 : vector<64x128xf32> to vector<64x128xbf16>
    %cst = arith.constant dense<0.000000e+00> : vector<38x128xf32>
    %4 = tpu.matmul %2, %3, %cst {dimension_numbers = #tpu.dot_dimension_numbers<[1], [0], [0], [1], [0, 0, 1, 1], [], []>} : vector<38x64xbf16>, vector<64x128xbf16>, vector<38x128xf32> -> vector<38x128xf32>
    %c0_3 = arith.constant 0 : index
    %c0_4 = arith.constant 0 : index
    %5 = vector.load %arg2[%c0_3, %c0_4] : memref<1x128xf32, #tpu.memory_space<vmem>>, vector<1x128xf32>
    %6 = vector.broadcast %5 : vector<1x128xf32> to vector<38x128xf32>
    %7 = arith.addf %4, %6 : vector<38x128xf32>
    %8 = arith.mulf %7, %7 : vector<38x128xf32>
    %9 = arith.mulf %7, %8 : vector<38x128xf32>
    %cst_5 = arith.constant 4.471500e-02 : f32
    %10 = vector.broadcast %cst_5 : f32 to vector<38x128xf32>
    %11 = arith.mulf %10, %9 : vector<38x128xf32>
    %12 = arith.addf %7, %11 : vector<38x128xf32>
    %cst_6 = arith.constant 0.797884583 : f32
    %13 = vector.broadcast %cst_6 : f32 to vector<38x128xf32>
    %14 = arith.mulf %13, %12 : vector<38x128xf32>
    %15 = math.tanh %14 : vector<38x128xf32>
    %cst_7 = arith.constant 1.000000e+00 : f32
    %16 = vector.broadcast %cst_7 : f32 to vector<38x128xf32>
    %17 = arith.addf %16, %15 : vector<38x128xf32>
    %cst_8 = arith.constant 5.000000e-01 : f32
    %18 = vector.broadcast %cst_8 : f32 to vector<38x128xf32>
    %19 = arith.mulf %18, %17 : vector<38x128xf32>
    %20 = arith.mulf %7, %19 : vector<38x128xf32>
    %c0_9 = arith.constant 0 : index
    %c0_10 = arith.constant 0 : index
    %21 = vector.load %arg3[%c0_9, %c0_10] : memref<128x64xf32, #tpu.memory_space<vmem>>, vector<128x64xf32>
    %22 = arith.truncf %20 : vector<38x128xf32> to vector<38x128xbf16>
    %23 = arith.truncf %21 : vector<128x64xf32> to vector<128x64xbf16>
    %cst_11 = arith.constant dense<0.000000e+00> : vector<38x64xf32>
    %24 = tpu.matmul %22, %23, %cst_11 {dimension_numbers = #tpu.dot_dimension_numbers<[1], [0], [0], [1], [0, 0, 1, 1], [], []>} : vector<38x128xbf16>, vector<128x64xbf16>, vector<38x64xf32> -> vector<38x64xf32>
    %c0_12 = arith.constant 0 : index
    %c0_13 = arith.constant 0 : index
    %25 = vector.load %arg4[%c0_12, %c0_13] : memref<1x64xf32, #tpu.memory_space<vmem>>, vector<1x64xf32>
    %26 = vector.broadcast %25 : vector<1x64xf32> to vector<38x64xf32>
    %27 = arith.addf %24, %26 : vector<38x64xf32>
    %28 = arith.addf %27, %0 : vector<38x64xf32>
    %c0_14 = arith.constant 0 : index
    %c0_15 = arith.constant 0 : index
    %29 = vector.load %arg5[%c0_14, %c0_15] : memref<1x64xf32, #tpu.memory_space<vmem>>, vector<1x64xf32>
    %c0_16 = arith.constant 0 : index
    %c0_17 = arith.constant 0 : index
    %30 = vector.load %arg6[%c0_16, %c0_17] : memref<1x64xf32, #tpu.memory_space<vmem>>, vector<1x64xf32>
    %cst_18 = arith.constant dense<0.000000e+00> : vector<38xf32>
    %31 = vector.multi_reduction <add>, %28, %cst_18 [1] : vector<38x64xf32> to vector<38xf32>
    %32 = vector.shape_cast %31 : vector<38xf32> to vector<38x1xf32>
    %cst_19 = arith.constant 6.400000e+01 : f32
    %33 = vector.broadcast %cst_19 : f32 to vector<38x1xf32>
    %34 = arith.divf %32, %33 : vector<38x1xf32>
    %35 = vector.broadcast %34 : vector<38x1xf32> to vector<38x64xf32>
    %36 = arith.subf %28, %35 : vector<38x64xf32>
    %37 = arith.mulf %36, %36 : vector<38x64xf32>
    %cst_20 = arith.constant dense<0.000000e+00> : vector<38xf32>
    %38 = vector.multi_reduction <add>, %37, %cst_20 [1] : vector<38x64xf32> to vector<38xf32>
    %39 = vector.shape_cast %38 : vector<38xf32> to vector<38x1xf32>
    %cst_21 = arith.constant 6.400000e+01 : f32
    %40 = vector.broadcast %cst_21 : f32 to vector<38x1xf32>
    %41 = arith.divf %39, %40 : vector<38x1xf32>
    %42 = vector.broadcast %34 : vector<38x1xf32> to vector<38x64xf32>
    %43 = arith.subf %28, %42 : vector<38x64xf32>
    %cst_22 = arith.constant 9.99999974E-6 : f32
    %44 = vector.broadcast %cst_22 : f32 to vector<38x1xf32>
    %45 = arith.addf %41, %44 : vector<38x1xf32>
    %46 = math.rsqrt %45 : vector<38x1xf32>
    %47 = vector.broadcast %46 : vector<38x1xf32> to vector<38x64xf32>
    %48 = arith.mulf %43, %47 : vector<38x64xf32>
    %49 = vector.broadcast %29 : vector<1x64xf32> to vector<38x64xf32>
    %50 = arith.mulf %48, %49 : vector<38x64xf32>
    %51 = vector.broadcast %30 : vector<1x64xf32> to vector<38x64xf32>
    %52 = arith.addf %50, %51 : vector<38x64xf32>
    %c0_23 = arith.constant 0 : index
    %c0_24 = arith.constant 0 : index
    %53 = vector.load %arg7[%c0_23, %c0_24] : memref<38x64xf32, #tpu.memory_space<vmem>>, vector<38x64xf32>
    tpu.vector_store %arg7[%c0_23, %c0_24], %52 {strides = array<i32>} : memref<38x64xf32, #tpu.memory_space<vmem>>, vector<38x64xf32>,
    return
  }
}

</mosaic_0001>

<bundles_post_ra>
// kernel: tile.13
= control target key start
LH: loop header
LB: loop body
LE: loop exit
PB: predicated region body
PF: predicated region fallthrough
CT: control target
= control target key end

     0   :  { %s22_s0 = inlined_call_operand.vmem [shape: f32[32], index: 0, kind: input, shape index: {}]   ;;  %s23_s1 = inlined_call_operand.vmem [shape: f32[2,32], index: 1, kind: output, shape index: {}]  }
   0x1   :  { %v4_v0 = vld [vmem:[%s22_s0] ss:$0 sm:$0xff] }
   0x2   :  { %5 = vst [vmem:[%s23_s1] sm:$0x3] %v4_v0 }

// kernel: tile.0
= control target key start
LH: loop header
LB: loop body
LE: loop exit
PB: predicated region body
PF: predicated region fallthrough
CT: control target
= control target key end

     0   :  { %s355_s8 = smov 125   ;;  %s356_s9 = smov 126   ;;  %vm8_vm0 = vcmask 7168   ;;  %s654_s0 = inlined_call_operand.vmem [shape: f32[2,32], index: 0, kind: input, shape index: {}]   ;;  %s655_s1 = inlined_call_operand.vmem [shape: f32[64,1], index: 1, kind: output, shape index: {}]  }
   0x1   :  { %v5_v0 = vld [vmem:[%s654_s0] sm:$0x3]  ;;  %s354_s0 = smov 127   ;;  %s357_s10 = smov 124  }
   0x2   :  { %6 = vst [vmem:[#allocation0] sm:$0x3] %v5_v0  ;;  %s358_s11 = smov 123   ;;  %s359_s12 = smov 122  }
   0x3   :  { %s360_s13 = smov 121   ;;  %s361_s14 = smov 120  }
   0x4   :  { %s362_s15 = smov 119   ;;  %s363_s16 = smov 118  }
   0x5   :  { %s364_s17 = smov 117   ;;  %s365_s18 = smov 116  }
   0x6   :  { %s366_s19 = smov 115   ;;  %s367_s20 = smov 114  }
   0x7   :  { %s368_s21 = smov 113   ;;  %s369_s22 = smov 112  }
   0x8   :  { %s370_s23 = smov 111   ;;  %s371_s24 = smov 110  }
   0x9   :  { %v12_v1 = vld [vmem:[#allocation0] sm:$0x3]   ;;  %s372_s25 = smov 109   ;;  %s373_s26 = smov 108  }
   0xa   :  { %v28_v2 = vld [vmem:[#allocation0] sm:$0x3]   ;;  %13 = vrot.lane.b32.xlu0 %v12_v1, %s354_s0  ;;  %s374_s27 = smov 107   ;;  %s375_s28 = smov 106  }
   0xb   :  { %29 = vrot.lane.b32.xlu1 %v28_v2, %s355_s8  ;;  %v20_v3 = vld [vmem:[#allocation0] sm:$0x3]   ;;  %s376_s29 = smov 105   ;;  %s377_s30 = smov 104  }
   0xc   :  { %v36_v4 = vld [vmem:[#allocation0] sm:$0x3]   ;;  %s378_s6 = smov 103   ;;  %s379_s7 = smov 102  }
   0xd   :  { %v44_v5 = vld [vmem:[#allocation0] sm:$0x3]   ;;  %s380_s0 = smov 101   ;;  %s381_s8 = smov 100  }
   0xe   :  { %21 = vrot.lane.b32.xlu0 %v20_v3, %s356_s9  ;;  %v52_v6 = vld [vmem:[#allocation0] sm:$0x3]   ;;  %s382_s9 = smov 99  }
   0xf   :  { %37 = vrot.lane.b32.xlu1 %v36_v4, %s357_s10  ;;  %v60_v7 = vld [vmem:[#allocation0] sm:$0x3]   ;;  %s383_s10 = smov 98  }
  0x10   :  { %v68_v8 = vld [vmem:[#allocation0] sm:$0x3]  }
  0x11   :  { %v76_v9 = vld [vmem:[#allocation0] sm:$0x3]  }
  0x12   :  { %45 = vrot.lane.b32.xlu0 %v44_v5, %s358_s11  ;;  %v84_v10 = vld [vmem:[#allocation0] sm:$0x3]   ;;  %s384_s11 = smov 97  }
  0x13   :  { %53 = vrot.lane.b32.xlu1 %v52_v6, %s359_s12  ;;  %v92_v11 = vld [vmem:[#allocation0] sm:$0x3]  }
  0x14   :  { %v100_v12 = vld [vmem:[#allocation0] sm:$0x3]  }
  0x15   :  { %v108_v13 = vld [vmem:[#allocation0] sm:$0x3]  }
  0x16   :  { %61 = vrot.lane.b32.xlu0 %v60_v7, %s360_s13  ;;  %v116_v14 = vld [vmem:[#allocation0] sm:$0x3]  }
  0x17   :  { %69 = vrot.lane.b32.xlu1 %v68_v8, %s361_s14  ;;  %v124_v15 = vld [vmem:[#allocation0] sm:$0x3]  }
  0x18   :  { %v132_v16 = vld [vmem:[#allocation0] sm:$0x3]  }
  0x19   :  { %v140_v17 = vld [vmem:[#allocation0] sm:$0x3]  }
  0x1a   :  { %77 = vrot.lane.b32.xlu0 %v76_v9, %s362_s15  ;;  %v148_v18 = vld [vmem:[#allocation0] sm:$0x3]  }
  0x1b   :  { %85 = vrot.lane.b32.xlu1 %v84_v10, %s363_s16  ;;  %v156_v19 = vld [vmem:[#allocation0] sm:$0x3]  }
  0x1c   :  { %v164_v20 = vld [vmem:[#allocation0] sm:$0x3]  }
  0x1d   :  { %v172_v21 = vld [vmem:[#allocation0] sm:$0x3]  }
  0x1e   :  { %93 = vrot.lane.b32.xlu0 %v92_v11, %s364_s17  ;;  %v180_v22 = vld [vmem:[#allocation0] sm:$0x3]  }
  0x1f   :  { %101 = vrot.lane.b32.xlu1 %v100_v12, %s365_s18  ;;  %v188_v23 = vld [vmem:[#allocation0] sm:$0x3]  }
  0x20   :  { %v196_v24 = vld [vmem:[#allocation0] sm:$0x3]  }
  0x21   :  { %v204_v25 = vld [vmem:[#allocation0] sm:$0x3]  }
  0x22   :  { %109 = vrot.lane.b32.xlu0 %v108_v13, %s366_s19  ;;  %v212_v26 = vld [vmem:[#allocation0] sm:$0x3]  }
  0x23   :  { %117 = vrot.lane.b32.xlu1 %v116_v14, %s367_s20  ;;  %v7_v27 = vld [vmem:[#allocation0] sm:$0x3]  }
  0x24   :  { %9 = vst.msk [vmem:[%s655_s1] sm:$0x1] %vm8_vm0, %v7_v27   ;;  %260 = vst.msk [vmem:[%s655_s1 + $0x1f] sm:$0x2] %vm8_vm0, %v7_v27   ;;  %v220_v28 = vld [vmem:[#allocation0] sm:$0x3]  }
  0x25   :  { %v228_v29 = vld [vmem:[#allocation0] sm:$0x3]  }
  0x26   :  { %125 = vrot.lane.b32.xlu0 %v124_v15, %s368_s21  ;;  %v236_v30 = vld [vmem:[#allocation0] sm:$0x3]  }
  0x27   :  { %133 = vrot.lane.b32.xlu1 %v132_v16, %s369_s22  ;;  %v244_v31 = vld [vmem:[#allocation0] sm:$0x3]  }
  0x28   :  { %v252_v32 = vld [vmem:[#allocation0] sm:$0x3]  }
  0x2a   :  { %141 = vrot.lane.b32.xlu0 %v140_v17, %s370_s23 }
  0x2b   :  { %149 = vrot.lane.b32.xlu1 %v148_v18, %s371_s24 }
  0x2e   :  { %157 = vrot.lane.b32.xlu0 %v156_v19, %s372_s25 }
  0x2f   :  { %165 = vrot.lane.b32.xlu1 %v164_v20, %s373_s26 }
  0x32   :  { %173 = vrot.lane.b32.xlu0 %v172_v21, %s374_s27 }
  0x33   :  { %181 = vrot.lane.b32.xlu1 %v180_v22, %s375_s28 }
  0x36   :  { %189 = vrot.lane.b32.xlu0 %v188_v23, %s376_s29 }
  0x37   :  { %197 = vrot.lane.b32.xlu1 %v196_v24, %s377_s30 }
  0x3a   :  { %205 = vrot.lane.b32.xlu0 %v204_v25, %s378_s6 }
  0x3b   :  { %213 = vrot.lane.b32.xlu1 %v212_v26, %s379_s7 }
  0x3e   :  { %221 = vrot.lane.b32.xlu0 %v220_v28, %s380_s0 }
  0x3f   :  { %229 = vrot.lane.b32.xlu1 %v228_v29, %s381_s8 }
  0x42   :  { %237 = vrot.lane.b32.xlu0 %v236_v30, %s382_s9 }
  0x43   :  { %245 = vrot.lane.b32.xlu1 %v244_v31, %s383_s10 }
  0x46   :  { %253 = vrot.lane.b32.xlu0 %v252_v32, %s384_s11 }
  0x7c   :  { %v14_v33 = vpop.permute.xlu0 %13  }
  0x7d   :  { %v30_v34 = vpop.permute.xlu1 %29   ;;  %261 = vst.msk [vmem:[%s655_s1 + $0x1] sm:$0x1] %vm8_vm0, %v14_v33   ;;  %262 = vst.msk [vmem:[%s655_s1 + $0x20] sm:$0x2] %vm8_vm0, %v14_v33  }
  0x7e   :  { %265 = vst.msk [vmem:[%s655_s1 + $0x3] sm:$0x1] %vm8_vm0, %v30_v34   ;;  %266 = vst.msk [vmem:[%s655_s1 + $0x22] sm:$0x2] %vm8_vm0, %v30_v34  }
  0x80   :  { %v22_v35 = vpop.permute.xlu0 %21  }
  0x81   :  { %v38_v36 = vpop.permute.xlu1 %37   ;;  %263 = vst.msk [vmem:[%s655_s1 + $0x2] sm:$0x1] %vm8_vm0, %v22_v35   ;;  %264 = vst.msk [vmem:[%s655_s1 + $0x21] sm:$0x2] %vm8_vm0, %v22_v35  }
  0x82   :  { %267 = vst.msk [vmem:[%s655_s1 + $0x4] sm:$0x1] %vm8_vm0, %v38_v36   ;;  %268 = vst.msk [vmem:[%s655_s1 + $0x23] sm:$0x2] %vm8_vm0, %v38_v36  }
  0x84   :  { %v46_v37 = vpop.permute.xlu0 %45  }
  0x85   :  { %v54_v38 = vpop.permute.xlu1 %53   ;;  %269 = vst.msk [vmem:[%s655_s1 + $0x5] sm:$0x1] %vm8_vm0, %v46_v37   ;;  %270 = vst.msk [vmem:[%s655_s1 + $0x24] sm:$0x2] %vm8_vm0, %v46_v37  }
  0x86   :  { %271 = vst.msk [vmem:[%s655_s1 + $0x6] sm:$0x1] %vm8_vm0, %v54_v38   ;;  %272 = vst.msk [vmem:[%s655_s1 + $0x25] sm:$0x2] %vm8_vm0, %v54_v38  }
  0x88   :  { %v62_v39 = vpop.permute.xlu0 %61  }
  0x89   :  { %v70_v40 = vpop.permute.xlu1 %69   ;;  %273 = vst.msk [vmem:[%s655_s1 + $0x7] sm:$0x1] %vm8_vm0, %v62_v39   ;;  %274 = vst.msk [vmem:[%s655_s1 + $0x26] sm:$0x2] %vm8_vm0, %v62_v39  }
  0x8a   :  { %275 = vst.msk [vmem:[%s655_s1 + $0x8] sm:$0x1] %vm8_vm0, %v70_v40   ;;  %276 = vst.msk [vmem:[%s655_s1 + $0x27] sm:$0x2] %vm8_vm0, %v70_v40  }
  0x8c   :  { %v78_v41 = vpop.permute.xlu0 %77  }
  0x8d   :  { %v86_v42 = vpop.permute.xlu1 %85   ;;  %277 = vst.msk [vmem:[%s655_s1 + $0x9] sm:$0x1] %vm8_vm0, %v78_v41   ;;  %278 = vst.msk [vmem:[%s655_s1 + $0x28] sm:$0x2] %vm8_vm0, %v78_v41  }
  0x8e   :  { %279 = vst.msk [vmem:[%s655_s1 + $0xa] sm:$0x1] %vm8_vm0, %v86_v42   ;;  %280 = vst.msk [vmem:[%s655_s1 + $0x29] sm:$0x2] %vm8_vm0, %v86_v42  }
  0x90   :  { %v94_v43 = vpop.permute.xlu0 %93  }
  0x91   :  { %v102_v44 = vpop.permute.xlu1 %101   ;;  %281 = vst.msk [vmem:[%s655_s1 + $0xb] sm:$0x1] %vm8_vm0, %v94_v43   ;;  %282 = vst.msk [vmem:[%s655_s1 + $0x2a] sm:$0x2] %vm8_vm0, %v94_v43  }
  0x92   :  { %283 = vst.msk [vmem:[%s655_s1 + $0xc] sm:$0x1] %vm8_vm0, %v102_v44   ;;  %284 = vst.msk [vmem:[%s655_s1 + $0x2b] sm:$0x2] %vm8_vm0, %v102_v44  }
  0x94   :  { %v110_v45 = vpop.permute.xlu0 %109  }
  0x95   :  { %v118_v46 = vpop.permute.xlu1 %117   ;;  %285 = vst.msk [vmem:[%s655_s1 + $0xd] sm:$0x1] %vm8_vm0, %v110_v45   ;;  %286 = vst.msk [vmem:[%s655_s1 + $0x2c] sm:$0x2] %vm8_vm0, %v110_v45  }
  0x96   :  { %287 = vst.msk [vmem:[%s655_s1 + $0xe] sm:$0x1] %vm8_vm0, %v118_v46   ;;  %288 = vst.msk [vmem:[%s655_s1 + $0x2d] sm:$0x2] %vm8_vm0, %v118_v46  }
  0x98   :  { %v126_v47 = vpop.permute.xlu0 %125  }
  0x99   :  { %v134_v48 = vpop.permute.xlu1 %133   ;;  %289 = vst.msk [vmem:[%s655_s1 + $0xf] sm:$0x1] %vm8_vm0, %v126_v47   ;;  %290 = vst.msk [vmem:[%s655_s1 + $0x2e] sm:$0x2] %vm8_vm0, %v126_v47  }
  0x9a   :  { %291 = vst.msk [vmem:[%s655_s1 + $0x10] sm:$0x1] %vm8_vm0, %v134_v48   ;;  %292 = vst.msk [vmem:[%s655_s1 + $0x2f] sm:$0x2] %vm8_vm0, %v134_v48  }
  0x9c   :  { %v142_v49 = vpop.permute.xlu0 %141  }
  0x9d   :  { %v150_v50 = vpop.permute.xlu1 %149   ;;  %293 = vst.msk [vmem:[%s655_s1 + $0x11] sm:$0x1] %vm8_vm0, %v142_v49   ;;  %294 = vst.msk [vmem:[%s655_s1 + $0x30] sm:$0x2] %vm8_vm0, %v142_v49  }
  0x9e   :  { %295 = vst.msk [vmem:[%s655_s1 + $0x12] sm:$0x1] %vm8_vm0, %v150_v50   ;;  %296 = vst.msk [vmem:[%s655_s1 + $0x31] sm:$0x2] %vm8_vm0, %v150_v50  }
  0xa0   :  { %v158_v51 = vpop.permute.xlu0 %157  }
  0xa1   :  { %v166_v52 = vpop.permute.xlu1 %165   ;;  %297 = vst.msk [vmem:[%s655_s1 + $0x13] sm:$0x1] %vm8_vm0, %v158_v51   ;;  %298 = vst.msk [vmem:[%s655_s1 + $0x32] sm:$0x2] %vm8_vm0, %v158_v51  }
  0xa2   :  { %299 = vst.msk [vmem:[%s655_s1 + $0x14] sm:$0x1] %vm8_vm0, %v166_v52   ;;  %300 = vst.msk [vmem:[%s655_s1 + $0x33] sm:$0x2] %vm8_vm0, %v166_v52  }
  0xa4   :  { %v174_v53 = vpop.permute.xlu0 %173  }
  0xa5   :  { %v182_v54 = vpop.permute.xlu1 %181   ;;  %301 = vst.msk [vmem:[%s655_s1 + $0x15] sm:$0x1] %vm8_vm0, %v174_v53   ;;  %302 = vst.msk [vmem:[%s655_s1 + $0x34] sm:$0x2] %vm8_vm0, %v174_v53  }
  0xa6   :  { %303 = vst.msk [vmem:[%s655_s1 + $0x16] sm:$0x1] %vm8_vm0, %v182_v54   ;;  %304 = vst.msk [vmem:[%s655_s1 + $0x35] sm:$0x2] %vm8_vm0, %v182_v54  }
  0xa8   :  { %v190_v55 = vpop.permute.xlu0 %189  }
  0xa9   :  { %v198_v56 = vpop.permute.xlu1 %197   ;;  %305 = vst.msk [vmem:[%s655_s1 + $0x17] sm:$0x1] %vm8_vm0, %v190_v55   ;;  %306 = vst.msk [vmem:[%s655_s1 + $0x36] sm:$0x2] %vm8_vm0, %v190_v55  }
  0xaa   :  { %307 = vst.msk [vmem:[%s655_s1 + $0x18] sm:$0x1] %vm8_vm0, %v198_v56   ;;  %308 = vst.msk [vmem:[%s655_s1 + $0x37] sm:$0x2] %vm8_vm0, %v198_v56  }
  0xac   :  { %v206_v57 = vpop.permute.xlu0 %205  }
  0xad   :  { %v214_v58 = vpop.permute.xlu1 %213   ;;  %309 = vst.msk [vmem:[%s655_s1 + $0x19] sm:$0x1] %vm8_vm0, %v206_v57   ;;  %310 = vst.msk [vmem:[%s655_s1 + $0x38] sm:$0x2] %vm8_vm0, %v206_v57  }
  0xae   :  { %311 = vst.msk [vmem:[%s655_s1 + $0x1a] sm:$0x1] %vm8_vm0, %v214_v58   ;;  %312 = vst.msk [vmem:[%s655_s1 + $0x39] sm:$0x2] %vm8_vm0, %v214_v58  }
  0xb0   :  { %v222_v59 = vpop.permute.xlu0 %221  }
  0xb1   :  { %v230_v60 = vpop.permute.xlu1 %229   ;;  %313 = vst.msk [vmem:[%s655_s1 + $0x1b] sm:$0x1] %vm8_vm0, %v222_v59   ;;  %314 = vst.msk [vmem:[%s655_s1 + $0x3a] sm:$0x2] %vm8_vm0, %v222_v59  }
  0xb2   :  { %315 = vst.msk [vmem:[%s655_s1 + $0x1c] sm:$0x1] %vm8_vm0, %v230_v60   ;;  %316 = vst.msk [vmem:[%s655_s1 + $0x3b] sm:$0x2] %vm8_vm0, %v230_v60  }
  0xb4   :  { %v238_v61 = vpop.permute.xlu0 %237  }
  0xb5   :  { %v246_v62 = vpop.permute.xlu1 %245   ;;  %317 = vst.msk [vmem:[%s655_s1 + $0x1d] sm:$0x1] %vm8_vm0, %v238_v61   ;;  %318 = vst.msk [vmem:[%s655_s1 + $0x3c] sm:$0x2] %vm8_vm0, %v238_v61  }
  0xb6   :  { %319 = vst.msk [vmem:[%s655_s1 + $0x1e] sm:$0x1] %vm8_vm0, %v246_v62   ;;  %320 = vst.msk [vmem:[%s655_s1 + $0x3d] sm:$0x2] %vm8_vm0, %v246_v62  }
  0xb8   :  { %v254_v63 = vpop.permute.xlu0 %253  }
  0xb9   :  { %321 = vst.msk [vmem:[%s655_s1 + $0x1f] sm:$0x1] %vm8_vm0, %v254_v63   ;;  %322 = vst.msk [vmem:[%s655_s1 + $0x3e] sm:$0x2] %vm8_vm0, %v254_v63  }

// kernel: forward.17
= control target key start
LH: loop header
LB: loop body
LE: loop exit
PB: predicated region body
PF: predicated region fallthrough
CT: control target
= control target key end

     0   :  { %vm38_vm0 = vcmask 646144   ;;  %v359_v3 = vmov 0   ;;  %s633_s0 = inlined_call_operand.vmem [shape: f32[64,79], index: 0, kind: input, shape index: {}]   ;;  %s634_s1 = inlined_call_operand.vmem [shape: f32[64,1], index: 1, kind: input, shape index: {}]   ;;  %s635_s2 = inlined_call_operand.vmem [shape: f32[64,1], index: 2, kind: input, shape index: {}]   ;;  %s636_s3 = inlined_call_operand.vmem [shape: f32[64,79], index: 3, kind: output, shape index: {}]  }
   0x1   :  { %v14_v0 = vld [vmem:[%s633_s0] sm:$0xff]  ;;  %v16_v1 = vld [vmem:[%s633_s0 + $0x10] sm:$0xff]  ;;  %v389_v2 = vld [vmem:[%s633_s0 + $0x8] sm:$0xff]  ;;  %326 = vset.pattern.permute.xlu1 %v359_v3  ;;  %325 = vset.pattern.permute.xlu0 %v359_v3 }
   0x2   :  { %v39_v4 = vsel %vm38_vm0, %v14_v0, 0.0  ;;  %v45_v5 = vsel %vm38_vm0, %v16_v1, 0.0  ;;  %v17_v6 = vld [vmem:[%s633_s0 + $0x18] sm:$0xff]  ;;  %v42_v7 = vsel %vm38_vm0, %v389_v2, 0.0  ;;  %v402_v9 = vld [vmem:[%s633_s0 + $0x20] sm:$0xff]  ;;  %v407_v10 = vld [vmem:[%s633_s0 + $0x28] sm:$0xff] }
   0x3   :  { %40 = vadd.xlane.f32.xlu0 %v39_v4  ;;  %46 = vadd.xlane.f32.xlu1 %v45_v5  ;;  %v48_v8 = vsel %vm38_vm0, %v17_v6, 0.0  ;;  %v51_v11 = vsel %vm38_vm0, %v402_v9, 0.0  ;;  %v54_v12 = vsel %vm38_vm0, %v407_v10, 0.0  ;;  %v416_v13 = vld [vmem:[%s633_s0 + $0x30] sm:$0xff]  ;;  %v421_v14 = vld [vmem:[%s633_s0 + $0x38] sm:$0xff]  ;;  %v23_v17 = vld [vmem:[%s634_s1 + $0x8] sm:$0xff] }
   0x4   :  { %v57_v15 = vsel %vm38_vm0, %v416_v13, 0.0  ;;  %v60_v16 = vsel %vm38_vm0, %v421_v14, 0.0  ;;  %v24_v18 = vld [vmem:[%s634_s1 + $0x10] sm:$0xff]  ;;  %v22_v19 = vld [vmem:[%s634_s1] sm:$0xff]  ;;  %v25_v20 = vld [vmem:[%s634_s1 + $0x18] sm:$0xff] }
   0x5   :  { %v31_v21 = vld [vmem:[%s635_s2 + $0x8] sm:$0xff]  ;;  %v26_v22 = vld [vmem:[%s634_s1 + $0x20] sm:$0xff]  ;;  %v33_v23 = vld [vmem:[%s635_s2 + $0x18] sm:$0xff] }
   0x6   :  { %v27_v24 = vld [vmem:[%s634_s1 + $0x28] sm:$0xff]  ;;  %v28_v26 = vld [vmem:[%s634_s1 + $0x30] sm:$0xff]  ;;  %v29_v27 = vld [vmem:[%s634_s1 + $0x38] sm:$0xff] }
   0x7   :  { %43 = vadd.xlane.f32.xlu0 %v42_v7  ;;  %49 = vadd.xlane.f32.xlu1 %v48_v8  ;;  %v35_v25 = vld [vmem:[%s635_s2 + $0x28] sm:$0xff]  ;;  %v30_v28 = vld [vmem:[%s635_s2] sm:$0xff]  ;;  %v32_v29 = vld [vmem:[%s635_s2 + $0x10] sm:$0xff] }
   0x8   :  { %v34_v30 = vld [vmem:[%s635_s2 + $0x20] sm:$0xff]  ;;  %v36_v7 = vld [vmem:[%s635_s2 + $0x30] sm:$0xff]  ;;  %v37_v8 = vld [vmem:[%s635_s2 + $0x38] sm:$0xff] }
   0xb   :  { %52 = vadd.xlane.f32.xlu0 %v51_v11  ;;  %55 = vadd.xlane.f32.xlu1 %v54_v12 }
   0xf   :  { %58 = vadd.xlane.f32.xlu0 %v57_v15  ;;  %61 = vadd.xlane.f32.xlu1 %v60_v16 }
  0x20   :  { %151 = vperm.xlu1 %326, %v23_v17  }
  0x24   :  { %156 = vperm.xlu1 %326, %v24_v18  }
  0x25   :  { %146 = vperm.xlu0 %325, %v22_v19  }
  0x28   :  { %161 = vperm.xlu1 %326, %v25_v20  }
  0x29   :  { %199 = vperm.xlu0 %325, %v31_v21  }
  0x2c   :  { %166 = vperm.xlu1 %326, %v26_v22  }
  0x2d   :  { %209 = vperm.xlu0 %325, %v33_v23  }
  0x30   :  { %171 = vperm.xlu1 %326, %v27_v24  }
  0x31   :  { %219 = vperm.xlu0 %325, %v35_v25  }
  0x34   :  { %176 = vperm.xlu1 %326, %v28_v26  }
  0x38   :  { %181 = vperm.xlu1 %326, %v29_v27  }
  0x3c   :  { %194 = vperm.xlu1 %326, %v30_v28  }
  0x40   :  { %204 = vperm.xlu1 %326, %v32_v29  }
  0x44   :  { %214 = vperm.xlu1 %326, %v34_v30  }
  0x8c   :  { %v41_v31 = vpop.xlane.xlu0 %40  ;;  %v47_v32 = vpop.xlane.xlu1 %46 }
  0x8d   :  { %v64_v33 = vmul.f32 0.012658228, %v41_v31  ;;  %v66_v34 = vmul.f32 0.012658228, %v47_v32 }
  0x8f   :  { %v469_v35 = vsub.f32 %v14_v0, %v64_v33  ;;  %v471_v36 = vsub.f32 %v16_v1, %v66_v34 }
  0x90   :  { %v44_v37 = vpop.xlane.xlu0 %43  ;;  %v50_v38 = vpop.xlane.xlu1 %49 }
  0x91   :  { %v65_v39 = vmul.f32 0.012658228, %v44_v37  ;;  %v67_v40 = vmul.f32 0.012658228, %v50_v38  ;;  %v80_v41 = vmul.f32 %v469_v35, %v469_v35  ;;  %v82_v42 = vmul.f32 %v471_v36, %v471_v36 }
  0x93   :  { %v478_v43 = vsub.f32 %v389_v2, %v65_v39  ;;  %v480_v44 = vsub.f32 %v17_v6, %v67_v40  ;;  %v88_v45 = vsel %vm38_vm0, %v80_v41, 0.0  ;;  %v94_v48 = vsel %vm38_vm0, %v82_v42, 0.0 }
  0x94   :  { %89 = vadd.xlane.f32.xlu0 %v88_v45  ;;  %v53_v46 = vpop.xlane.xlu0 %52  ;;  %v56_v47 = vpop.xlane.xlu1 %55 }
  0x95   :  { %v68_v49 = vmul.f32 0.012658228, %v53_v46  ;;  %v69_v50 = vmul.f32 0.012658228, %v56_v47  ;;  %v81_v51 = vmul.f32 %v478_v43, %v478_v43  ;;  %v83_v52 = vmul.f32 %v480_v44, %v480_v44 }
  0x97   :  { %v489_v53 = vsub.f32 %v402_v9, %v68_v49  ;;  %v492_v54 = vsub.f32 %v407_v10, %v69_v50  ;;  %v91_v55 = vsel %vm38_vm0, %v81_v51, 0.0  ;;  %v97_v58 = vsel %vm38_vm0, %v83_v52, 0.0 }
  0x98   :  { %95 = vadd.xlane.f32.xlu0 %v94_v48  ;;  %92 = vadd.xlane.f32.xlu1 %v91_v55  ;;  %v59_v56 = vpop.xlane.xlu0 %58  ;;  %v62_v57 = vpop.xlane.xlu1 %61 }
  0x99   :  { %v70_v59 = vmul.f32 0.012658228, %v59_v56  ;;  %v71_v60 = vmul.f32 0.012658228, %v62_v57  ;;  %v84_v61 = vmul.f32 %v489_v53, %v489_v53  ;;  %v85_v62 = vmul.f32 %v492_v54, %v492_v54 }
  0x9b   :  { %v501_v63 = vsub.f32 %v416_v13, %v70_v59  ;;  %v504_v0 = vsub.f32 %v421_v14, %v71_v60  ;;  %v100_v1 = vsel %vm38_vm0, %v84_v61, 0.0  ;;  %v103_v2 = vsel %vm38_vm0, %v85_v62, 0.0 }
  0x9c   :  { %98 = vadd.xlane.f32.xlu1 %v97_v58  ;;  %101 = vadd.xlane.f32.xlu0 %v100_v1  ;;  %v152_v9 = vpop.permute.xlu1 %151 }
  0x9d   :  { %v86_v3 = vmul.f32 %v501_v63, %v501_v63  ;;  %v87_v4 = vmul.f32 %v504_v0, %v504_v0 }
  0x9f   :  { %v106_v5 = vsel %vm38_vm0, %v86_v3, 0.0  ;;  %v109_v6 = vsel %vm38_vm0, %v87_v4, 0.0 }
  0xa0   :  { %104 = vadd.xlane.f32.xlu1 %v103_v2  ;;  %107 = vadd.xlane.f32.xlu0 %v106_v5  ;;  %v157_v10 = vpop.permute.xlu1 %156  ;;  %v147_v15 = vpop.permute.xlu0 %146 }
  0xa4   :  { %110 = vadd.xlane.f32.xlu1 %v109_v6  ;;  %v520_v11 = vpop.permute.xlu1 %161  ;;  %v200_v17 = vpop.permute.xlu0 %199 }
  0xa8   :  { %v522_v12 = vpop.permute.xlu1 %166  ;;  %v530_v19 = vpop.permute.xlu0 %209 }
  0xac   :  { %v524_v13 = vpop.permute.xlu1 %171  ;;  %v532_v21 = vpop.permute.xlu0 %219 }
  0xb0   :  { %v526_v14 = vpop.permute.xlu1 %176 }
  0xb4   :  { %v528_v16 = vpop.permute.xlu1 %181 }
  0xb5   :  { %224 = vperm.xlu1 %326, %v36_v7  }
  0xb6   :  { %229 = vperm.xlu0 %325, %v37_v8  }
  0xb8   :  { %v195_v18 = vpop.permute.xlu1 %194 }
  0xbc   :  { %v205_v20 = vpop.permute.xlu1 %204 }
  0xc0   :  { %v534_v22 = vpop.permute.xlu1 %214 }
 0x11d   :  { %v90_v23 = vpop.xlane.xlu0 %89 }
 0x11e   :  { %v112_v24 = vmul.f32 0.012658228, %v90_v23 }
 0x120   :  { %v120_v25 = vadd.f32 1e-05, %v112_v24 }
 0x121   :  { %v93_v26 = vpop.xlane.xlu1 %92  ;;  %v96_v27 = vpop.xlane.xlu0 %95 }
 0x122   :  { %327 = vrsqrt.f32 %v120_v25  ;;  %v113_v28 = vmul.f32 0.012658228, %v93_v26  ;;  %v114_v29 = vmul.f32 0.012658228, %v96_v27 }
 0x124   :  { %v121_v30 = vadd.f32 1e-05, %v113_v28  ;;  %v122_v31 = vadd.f32 1e-05, %v114_v29 }
 0x125   :  { %v99_v32 = vpop.xlane.xlu1 %98  ;;  %v102_v33 = vpop.xlane.xlu0 %101 }
 0x126   :  { %329 = vrsqrt.f32 %v121_v30  ;;  %v115_v34 = vmul.f32 0.012658228, %v99_v32  ;;  %v116_v37 = vmul.f32 0.012658228, %v102_v33 }
 0x127   :  { %331 = vrsqrt.f32 %v122_v31 }
 0x128   :  { %v123_v38 = vadd.f32 1e-05, %v115_v34  ;;  %v124_v39 = vadd.f32 1e-05, %v116_v37 }
 0x129   :  { %v105_v40 = vpop.xlane.xlu1 %104  ;;  %v108_v41 = vpop.xlane.xlu0 %107 }
 0x12a   :  { %333 = vrsqrt.f32 %v123_v38  ;;  %v117_v42 = vmul.f32 0.012658228, %v105_v40  ;;  %v118_v45 = vmul.f32 0.012658228, %v108_v41 }
 0x12b   :  { %335 = vrsqrt.f32 %v124_v39 }
 0x12c   :  { %v125_v46 = vadd.f32 1e-05, %v117_v42  ;;  %v126_v47 = vadd.f32 1e-05, %v118_v45 }
 0x12d   :  { %v111_v48 = vpop.xlane.xlu1 %110 }
 0x12e   :  { %337 = vrsqrt.f32 %v125_v46  ;;  %v119_v49 = vmul.f32 0.012658228, %v111_v48 }
 0x12f   :  { %v328_v50 = vpop.eup %327  ;;  %339 = vrsqrt.f32 %v126_v47 }
 0x130   :  { %v136_v51 = vmul.f32 %v328_v50, %v469_v35  ;;  %v127_v52 = vadd.f32 1e-05, %v119_v49 }
 0x131   :  { %v225_v31 = vpop.permute.xlu1 %224  ;;  %v230_v46 = vpop.permute.xlu0 %229 }
 0x132   :  { %v184_v55 = vmul.f32 %v147_v15, %v136_v51  ;;  %341 = vrsqrt.f32 %v127_v52 }
 0x133   :  { %v330_v56 = vpop.eup %329 }
 0x134   :  { %v332_v57 = vpop.eup %331  ;;  %v537_v58 = vadd.f32 %v195_v18, %v184_v55  ;;  %v137_v59 = vmul.f32 %v330_v56, %v478_v43 }
 0x135   :  { %v138_v60 = vmul.f32 %v332_v57, %v471_v36 }
 0x136   :  { %v240_v61 = vmul.f32 %v537_v58, %v537_v58  ;;  %v185_v62 = vmul.f32 %v152_v9, %v137_v59 }
 0x137   :  { %v334_v1 = vpop.eup %333  ;;  %v186_v2 = vmul.f32 %v157_v10, %v138_v60 }
 0x138   :  { %v336_v3 = vpop.eup %335  ;;  %v248_v35 = vmul.f32 %v240_v61, %v537_v58  ;;  %v544_v4 = vadd.f32 %v200_v17, %v185_v62  ;;  %v139_v5 = vmul.f32 %v334_v1, %v480_v44 }
 0x139   :  { %v547_v6 = vadd.f32 %v205_v20, %v186_v2  ;;  %v140_v7 = vmul.f32 %v336_v3, %v489_v53 }
 0x13a   :  { %v256_v43 = vmul.f32 0.044715, %v248_v35  ;;  %v241_v36 = vmul.f32 %v544_v4, %v544_v4  ;;  %v187_v8 = vmul.f32 %v520_v11, %v139_v5 }
 0x13b   :  { %v338_v9 = vpop.eup %337  ;;  %v242_v10 = vmul.f32 %v547_v6, %v547_v6  ;;  %v188_v15 = vmul.f32 %v522_v12, %v140_v7 }
 0x13c   :  { %v340_v17 = vpop.eup %339  ;;  %v264_v18 = vadd.f32 %v256_v43, %v537_v58  ;;  %v249_v44 = vmul.f32 %v241_v36, %v544_v4  ;;  %v559_v20 = vadd.f32 %v530_v19, %v187_v8  ;;  %v141_v53 = vmul.f32 %v338_v9, %v492_v54 }
 0x13d   :  { %v250_v23 = vmul.f32 %v242_v10, %v547_v6  ;;  %v564_v11 = vadd.f32 %v534_v22, %v188_v15  ;;  %v142_v24 = vmul.f32 %v340_v17, %v501_v63 }
 0x13e   :  { %v272_v25 = vmul.f32 0.7978846, %v264_v18  ;;  %v257_v26 = vmul.f32 0.044715, %v249_v44  ;;  %v243_v12 = vmul.f32 %v559_v20, %v559_v20  ;;  %v189_v27 = vmul.f32 %v524_v13, %v141_v53 }
 0x13f   :  { %v342_v28 = vpop.eup %341  ;;  %v258_v29 = vmul.f32 0.044715, %v250_v23  ;;  %v244_v19 = vmul.f32 %v564_v11, %v564_v11  ;;  %v190_v54 = vmul.f32 %v526_v14, %v142_v24 }
 0x140   :  { %343 = vtanh.f32 %v272_v25  ;;  %v265_v22 = vadd.f32 %v257_v26, %v544_v4  ;;  %v251_v30 = vmul.f32 %v243_v12, %v559_v20  ;;  %v576_v63 = vadd.f32 %v532_v21, %v189_v27 }
 0x141   :  { %v266_v32 = vadd.f32 %v258_v29, %v547_v6  ;;  %v252_v13 = vmul.f32 %v244_v19, %v564_v11  ;;  %v580_v33 = vadd.f32 %v225_v31, %v190_v54  ;;  %v143_v34 = vmul.f32 %v342_v28, %v504_v0 }
 0x142   :  { %v273_v37 = vmul.f32 0.7978846, %v265_v22  ;;  %v259_v38 = vmul.f32 0.044715, %v251_v30  ;;  %v245_v14 = vmul.f32 %v576_v63, %v576_v63 }
 0x143   :  { %v274_v39 = vmul.f32 0.7978846, %v266_v32  ;;  %v260_v40 = vmul.f32 0.044715, %v252_v13  ;;  %v246_v21 = vmul.f32 %v580_v33, %v580_v33  ;;  %v191_v41 = vmul.f32 %v528_v16, %v143_v34 }
 0x144   :  { %345 = vtanh.f32 %v273_v37  ;;  %v267_v42 = vadd.f32 %v259_v38, %v559_v20  ;;  %v253_v45 = vmul.f32 %v245_v14, %v576_v63 }
 0x145   :  { %347 = vtanh.f32 %v274_v39  ;;  %v268_v0 = vadd.f32 %v260_v40, %v564_v11  ;;  %v254_v47 = vmul.f32 %v246_v21, %v580_v33  ;;  %v239_v48 = vadd.f32 %v230_v46, %v191_v41 }
 0x146   :  { %v275_v49 = vmul.f32 0.7978846, %v267_v42  ;;  %v261_v50 = vmul.f32 0.044715, %v253_v45 }
 0x147   :  { %v276_v51 = vmul.f32 0.7978846, %v268_v0  ;;  %v262_v52 = vmul.f32 0.044715, %v254_v47  ;;  %v247_v55 = vmul.f32 %v239_v48, %v239_v48 }
 0x148   :  { %349 = vtanh.f32 %v275_v49  ;;  %v269_v16 = vadd.f32 %v261_v50, %v576_v63 }
 0x149   :  { %351 = vtanh.f32 %v276_v51  ;;  %v270_v56 = vadd.f32 %v262_v52, %v580_v33  ;;  %v255_v57 = vmul.f32 %v247_v55, %v239_v48 }
 0x14a   :  { %v277_v59 = vmul.f32 0.7978846, %v269_v16 }
 0x14b   :  { %v278_v60 = vmul.f32 0.7978846, %v270_v56  ;;  %v263_v61 = vmul.f32 0.044715, %v255_v57 }
 0x14c   :  { %353 = vtanh.f32 %v277_v59 }
 0x14d   :  { %v344_v62 = vpop.eup %343  ;;  %355 = vtanh.f32 %v278_v60  ;;  %v271_v1 = vadd.f32 %v263_v61, %v239_v48 }
 0x14e   :  { %v288_v2 = vadd.f32 1.0, %v344_v62 }
 0x14f   :  { %v279_v3 = vmul.f32 0.7978846, %v271_v1 }
 0x150   :  { %v296_v35 = vmul.f32 0.5, %v288_v2 }
 0x151   :  { %v346_v5 = vpop.eup %345  ;;  %357 = vtanh.f32 %v279_v3 }
 0x152   :  { %v348_v7 = vpop.eup %347  ;;  %v304_v43 = vmul.f32 %v296_v35, %v537_v58  ;;  %v289_v36 = vadd.f32 1.0, %v346_v5 }
 0x153   :  { %v290_v8 = vadd.f32 1.0, %v348_v7 }
 0x154   :  { %v297_v9 = vmul.f32 0.5, %v289_v36  ;;  %312 = vst.msk [vmem:[%s636_s3] sm:$0xff] %vm38_vm0, %v304_v43 }
 0x155   :  { %v350_v10 = vpop.eup %349  ;;  %v298_v15 = vmul.f32 0.5, %v290_v8 }
 0x156   :  { %v352_v17 = vpop.eup %351  ;;  %v305_v18 = vmul.f32 %v297_v9, %v544_v4  ;;  %v291_v44 = vadd.f32 1.0, %v350_v10 }
 0x157   :  { %v306_v53 = vmul.f32 %v298_v15, %v547_v6  ;;  %v292_v23 = vadd.f32 1.0, %v352_v17 }
 0x158   :  { %v299_v24 = vmul.f32 0.5, %v291_v44  ;;  %313 = vst.msk [vmem:[%s636_s3 + $0x8] sm:$0xff] %vm38_vm0, %v305_v18 }
 0x159   :  { %v354_v58 = vpop.eup %353  ;;  %v300_v25 = vmul.f32 0.5, %v292_v23  ;;  %314 = vst.msk [vmem:[%s636_s3 + $0x10] sm:$0xff] %vm38_vm0, %v306_v53 }
 0x15a   :  { %v356_v26 = vpop.eup %355  ;;  %v307_v4 = vmul.f32 %v299_v24, %v559_v20  ;;  %v293_v12 = vadd.f32 1.0, %v354_v58 }
 0x15b   :  { %v308_v6 = vmul.f32 %v300_v25, %v564_v11  ;;  %v294_v27 = vadd.f32 1.0, %v356_v26 }
 0x15c   :  { %v301_v28 = vmul.f32 0.5, %v293_v12  ;;  %315 = vst.msk [vmem:[%s636_s3 + $0x18] sm:$0xff] %vm38_vm0, %v307_v4 }
 0x15d   :  { %v302_v29 = vmul.f32 0.5, %v294_v27  ;;  %316 = vst.msk [vmem:[%s636_s3 + $0x20] sm:$0xff] %vm38_vm0, %v308_v6 }
 0x15e   :  { %v358_v19 = vpop.eup %357  ;;  %v309_v54 = vmul.f32 %v301_v28, %v576_v63 }
 0x15f   :  { %v310_v20 = vmul.f32 %v302_v29, %v580_v33  ;;  %v295_v22 = vadd.f32 1.0, %v358_v19 }
 0x160   :  { %317 = vst.msk [vmem:[%s636_s3 + $0x28] sm:$0xff] %vm38_vm0, %v309_v54 }
 0x161   :  { %318 = vst.msk [vmem:[%s636_s3 + $0x30] sm:$0xff] %vm38_vm0, %v310_v20  ;;  %v303_v11 = vmul.f32 0.5, %v295_v22 }
 0x163   :  { %v311_v30 = vmul.f32 %v303_v11, %v239_v48 }
 0x165   :  { %319 = vst.msk [vmem:[%s636_s3 + $0x38] sm:$0xff] %vm38_vm0, %v311_v30 }

// kernel: forward.16
= control target key start
LH: loop header
LB: loop body
LE: loop exit
PB: predicated region body
PF: predicated region fallthrough
CT: control target
= control target key end

     0   :  { %vm86_vm0 = vcmask 1044480   ;;  %vm55_vm1 = vcmask 80896   ;;  %vm203_vm2 = vcmask 261120   ;;  %vm223_vm3 = vcmask 259072   ;;  %s455_s1 = inlined_call_operand.vmem [shape: f32[10,32], index: 1, kind: input, shape index: {}]   ;;  %s456_s0 = inlined_call_operand.vmem [shape: f32[158,10], index: 0, kind: input, shape index: {}]   ;;  %s457_s2 = inlined_call_operand.vmem [shape: f32[1,32], index: 2, kind: input, shape index: {}]   ;;  %s458_s3 = inlined_call_operand.vmem [shape: f32[158,32], index: 3, kind: output, shape index: {}]  }
   0x1   :  { %v35_v0 = vld [vmem:[%s455_s1] sm:$0xff]  ;;  %v36_v1 = vld [vmem:[%s455_s1 + $0x8] sm:$0x3]  ;;  %v17_v5 = vld [vmem:[%s456_s0 + $0x10] sm:$0xff] }
   0x2   :  { %v15_v2 = vld [vmem:[%s456_s0] sm:$0xff]  ;;  %v47_v3 = vpack.c.bf16 %v36_v1, %v35_v0  ;;  %v16_v4 = vld [vmem:[%s456_s0 + $0x8] sm:$0xff]  ;;  %v18_v6 = vld [vmem:[%s456_s0 + $0x18] sm:$0xff] }
   0x3   :  { %v37_v7 = vpack.c.bf16 %v16_v4, %v15_v2  ;;  %v27_v8 = vld [vmem:[%s456_s0 + $0x60] sm:$0xff]  ;;  %v28_v9 = vld [vmem:[%s456_s0 + $0x68] sm:$0xff]  ;;  %v29_v10 = vld [vmem:[%s456_s0 + $0x70] sm:$0xff]  ;;  %v38_v12 = vpack.c.bf16 %v18_v6, %v17_v5 }
   0x4   :  { %275 = vmatprep.subr.msk.bf16.mxu0 %vm86_vm0, %v47_v3  ;;  %v88_v11 = vsel %vm86_vm0, %v47_v3, 0  ;;  %276 = vmatprep.subr.msk.bf16.mxu1 %vm86_vm0, %v47_v3  ;;  %v43_v13 = vpack.c.bf16 %v28_v9, %v27_v8  ;;  %v30_v14 = vld [vmem:[%s456_s0 + $0x78] sm:$0xff]  ;;  %v19_v15 = vld [vmem:[%s456_s0 + $0x20] sm:$0xff]  ;;  %v20_v16 = vld [vmem:[%s456_s0 + $0x28] sm:$0xff] }
   0x5   :  { %252 = vmatpush3.bf16.msra.mxu0 %v88_v11  ;;  %274 = vmatpush3.bf16.msra.mxu1 %v88_v11  ;;  %v44_v17 = vpack.c.bf16 %v30_v14, %v29_v10  ;;  %v39_v18 = vpack.c.bf16 %v20_v16, %v19_v15  ;;  %v31_v19 = vld [vmem:[%s456_s0 + $0x80] sm:$0xff]  ;;  %v32_v20 = vld [vmem:[%s456_s0 + $0x88] sm:$0xff]  ;;  %v21_v22 = vld [vmem:[%s456_s0 + $0x30] sm:$0xff] }
   0x6   :  { %253 = vmatprep.mubr.msk.bf16.mxu0 %vm55_vm1, %v37_v7  ;;  %265 = vmatprep.mubr.msk.bf16.mxu1 %vm55_vm1, %v43_v13  ;;  %v45_v21 = vpack.c.bf16 %v32_v20, %v31_v19  ;;  %v22_v23 = vld [vmem:[%s456_s0 + $0x38] sm:$0xff]  ;;  %v33_v24 = vld [vmem:[%s456_s0 + $0x90] sm:$0xff]  ;;  %v23_v26 = vld [vmem:[%s456_s0 + $0x40] sm:$0xff] }
   0x7   :  { %v34_v25 = vld [vmem:[%s456_s0 + $0x98] sm:$0x3f]  ;;  %v24_v27 = vld [vmem:[%s456_s0 + $0x48] sm:$0xff]  ;;  %v40_v28 = vpack.c.bf16 %v22_v23, %v21_v22  ;;  %v25_v31 = vld [vmem:[%s456_s0 + $0x50] sm:$0xff] }
   0x8   :  { %254 = vmatmul.mubr.msk.bf16.vlgmr.msra.gmra.mxu0 %vm55_vm1, %v38_v12  ;;  %266 = vmatmul.mubr.msk.bf16.vlgmr.msra.gmra.mxu1 %vm55_vm1, %v44_v17  ;;  %v46_v29 = vpack.c.bf16 %v34_v25, %v33_v24  ;;  %v41_v30 = vpack.c.bf16 %v24_v27, %v23_v26  ;;  %v26_v32 = vld [vmem:[%s456_s0 + $0x58] sm:$0xff]  ;;  %v229_v34 = vld [vmem:[%s457_s2] ss:$0 sm:$0xff] }
   0x9   :  { %257 = vmatprep.mubr.msk.bf16.mxu0 %vm55_vm1, %v39_v18  ;;  %269 = vmatprep.mubr.msk.bf16.mxu1 %vm55_vm1, %v45_v21  ;;  %v42_v33 = vpack.c.bf16 %v26_v32, %v25_v31 }
  0x10   :  { %258 = vmatmul.mubr.msk.bf16.gmra.mxu0 %vm55_vm1, %v40_v28  ;;  %270 = vmatmul.mubr.msk.bf16.gmra.mxu1 %vm55_vm1, %v46_v29 }
  0x11   :  { %261 = vmatprep.mubr.msk.bf16.mxu0 %vm55_vm1, %v41_v30 }
  0x18   :  { %262 = vmatmul.mubr.msk.bf16.gmra.mxu0 %vm55_vm1, %v42_v33 }
  0xc8   :  { %v255_v35 = vpop.f32.mrf.mxu0  ;;  %v267_v36 = vpop.f32.mrf.mxu1 }
  0xc9   :  { %v133_v37 = vadd.f32 %v255_v35, %v229_v34  ;;  %v181_v38 = vadd.f32 %v267_v36, %v229_v34 }
  0xca   :  { %v124_v39 = vpop.f32.mrf.mxu0  ;;  %v172_v40 = vpop.f32.mrf.mxu1 }
  0xcb   :  { %206 = vst.msk [vmem:[%s458_s3 + $0x10] sm:$0xff] %vm203_vm2, %v133_v37  ;;  %v125_v41 = vadd.f32 %v229_v34, %v124_v39  ;;  %218 = vst.msk [vmem:[%s458_s3 + $0x70] sm:$0xff] %vm203_vm2, %v181_v38  ;;  %v173_v42 = vadd.f32 %v229_v34, %v172_v40 }
  0xcc   :  { %v256_v43 = vpop.f32.mrf.mxu0  ;;  %v268_v44 = vpop.f32.mrf.mxu1 }
  0xcd   :  { %204 = vst.msk [vmem:[%s458_s3] sm:$0xff] %vm203_vm2, %v125_v41  ;;  %v136_v45 = vadd.f32 %v256_v43, %v229_v34  ;;  %216 = vst.msk [vmem:[%s458_s3 + $0x60] sm:$0xff] %vm203_vm2, %v173_v42  ;;  %v184_v46 = vadd.f32 %v268_v44, %v229_v34 }
  0xce   :  { %v127_v47 = vpop.f32.mrf.mxu0  ;;  %v175_v48 = vpop.f32.mrf.mxu1 }
  0xcf   :  { %207 = vst.msk [vmem:[%s458_s3 + $0x18] sm:$0xff] %vm203_vm2, %v136_v45  ;;  %v128_v49 = vadd.f32 %v229_v34, %v127_v47  ;;  %219 = vst.msk [vmem:[%s458_s3 + $0x78] sm:$0xff] %vm203_vm2, %v184_v46  ;;  %v176_v50 = vadd.f32 %v229_v34, %v175_v48 }
  0xd0   :  { %v259_v51 = vpop.f32.mrf.mxu0  ;;  %v271_v52 = vpop.f32.mrf.mxu1 }
  0xd1   :  { %205 = vst.msk [vmem:[%s458_s3 + $0x8] sm:$0xff] %vm203_vm2, %v128_v49  ;;  %v149_v53 = vadd.f32 %v259_v51, %v229_v34  ;;  %217 = vst.msk [vmem:[%s458_s3 + $0x68] sm:$0xff] %vm203_vm2, %v176_v50  ;;  %v197_v54 = vadd.f32 %v271_v52, %v229_v34 }
  0xd2   :  { %v140_v55 = vpop.f32.mrf.mxu0  ;;  %v188_v56 = vpop.f32.mrf.mxu1 }
  0xd3   :  { %210 = vst.msk [vmem:[%s458_s3 + $0x30] sm:$0xff] %vm203_vm2, %v149_v53  ;;  %v141_v57 = vadd.f32 %v229_v34, %v140_v55  ;;  %222 = vst.msk [vmem:[%s458_s3 + $0x90] sm:$0xff] %vm203_vm2, %v197_v54  ;;  %v189_v58 = vadd.f32 %v229_v34, %v188_v56 }
  0xd4   :  { %v260_v59 = vpop.f32.mrf.mxu0  ;;  %v272_v60 = vpop.f32.mrf.mxu1 }
  0xd5   :  { %208 = vst.msk [vmem:[%s458_s3 + $0x20] sm:$0xff] %vm203_vm2, %v141_v57  ;;  %v152_v61 = vadd.f32 %v260_v59, %v229_v34  ;;  %220 = vst.msk [vmem:[%s458_s3 + $0x80] sm:$0xff] %vm203_vm2, %v189_v58  ;;  %v200_v62 = vadd.f32 %v272_v60, %v229_v34 }
  0xd6   :  { %v143_v63 = vpop.f32.mrf.mxu0  ;;  %v191_v0 = vpop.f32.mrf.mxu1 }
  0xd7   :  { %211 = vst.msk [vmem:[%s458_s3 + $0x38] sm:$0xff] %vm203_vm2, %v152_v61  ;;  %v144_v1 = vadd.f32 %v229_v34, %v143_v63  ;;  %v192_v2 = vadd.f32 %v229_v34, %v191_v0 }
  0xd8   :  { %224 = vst.msk [vmem:[%s458_s3 + $0x98] sm:$0x3f] %vm223_vm3, %v200_v62  ;;  %v263_v3 = vpop.f32.mrf.mxu0 }
  0xd9   :  { %209 = vst.msk [vmem:[%s458_s3 + $0x28] sm:$0xff] %vm203_vm2, %v144_v1  ;;  %v165_v4 = vadd.f32 %v263_v3, %v229_v34  ;;  %221 = vst.msk [vmem:[%s458_s3 + $0x88] sm:$0xff] %vm203_vm2, %v192_v2 }
  0xda   :  { %v156_v5 = vpop.f32.mrf.mxu0 }
  0xdb   :  { %214 = vst.msk [vmem:[%s458_s3 + $0x50] sm:$0xff] %vm203_vm2, %v165_v4  ;;  %v157_v6 = vadd.f32 %v229_v34, %v156_v5 }
  0xdc   :  { %v264_v7 = vpop.f32.mrf.mxu0 }
  0xdd   :  { %212 = vst.msk [vmem:[%s458_s3 + $0x40] sm:$0xff] %vm203_vm2, %v157_v6  ;;  %v168_v8 = vadd.f32 %v264_v7, %v229_v34 }
  0xde   :  { %v159_v9 = vpop.f32.mrf.mxu0 }
  0xdf   :  { %215 = vst.msk [vmem:[%s458_s3 + $0x58] sm:$0xff] %vm203_vm2, %v168_v8  ;;  %v160_v10 = vadd.f32 %v229_v34, %v159_v9 }
  0xe1   :  { %213 = vst.msk [vmem:[%s458_s3 + $0x48] sm:$0xff] %vm203_vm2, %v160_v10 }

// kernel: forward.20
= control target key start
LH: loop header
LB: loop body
LE: loop exit
PB: predicated region body
PF: predicated region fallthrough
CT: control target
= control target key end

     0   :  { %vm28_vm0 = vcmask 261120   ;;  %vm41_vm1 = vcmask 259072   ;;  %v253_v35 = vmov 0.0   ;;  %vm254_vm2 = vmmov 0   ;;  %s388_s0 = inlined_call_operand.vmem [shape: f32[38,32], index: 0, kind: input, shape index: {}]   ;;  %s389_s3 = inlined_call_operand.vmem [shape: f32[32,64], index: 3, kind: input, shape index: {}]   ;;  %s390_s1 = inlined_call_operand.vmem [shape: f32[1,32], index: 1, kind: input, shape index: {}]   ;;  %s391_s2 = inlined_call_operand.vmem [shape: f32[1,32], index: 2, kind: input, shape index: {}]   ;;  %s392_s4 = inlined_call_operand.vmem [shape: f32[1,64], index: 4, kind: input, shape index: {}]   ;;  %s393_s5 = inlined_call_operand.vmem [shape: f32[38,64], index: 5, kind: output, shape index: {}]  }
   0x1   :  { %v23_v0 = vld [vmem:[%s388_s0 + $0x10] sm:$0xff]  ;;  %v24_v1 = vld [vmem:[%s388_s0 + $0x18] sm:$0xff]  ;;  %v21_v2 = vld [vmem:[%s388_s0] sm:$0xff]  ;;  %237 = vmatprep.subr.bf16.mxu1 %v253_v35  ;;  %221 = vmatprep.subr.bf16.mxu0 %v253_v35  ;;  %vm199_vm3 = vcmask 523264   ;;  %vm204_vm4 = vcmask 521216  }
   0x2   :  { %v35_v3 = vsel %vm28_vm0, %v23_v0, 0.0  ;;  %v29_v4 = vsel %vm28_vm0, %v21_v2, 0.0  ;;  %v22_v5 = vld [vmem:[%s388_s0 + $0x8] sm:$0xff]  ;;  %v38_v6 = vsel %vm28_vm0, %v24_v1, 0.0  ;;  %v25_v8 = vld [vmem:[%s388_s0 + $0x20] sm:$0x3f]  ;;  %229 = vmatprep.mubr.msk.bf16.mxu1 %vm254_vm2, %v253_v35  ;;  %225 = vmatprep.mubr.msk.bf16.mxu0 %vm254_vm2, %v253_v35 }
   0x3   :  { %36 = vadd.xlane.f32.xlu0 %v35_v3  ;;  %30 = vadd.xlane.f32.xlu1 %v29_v4  ;;  %v32_v7 = vsel %vm28_vm0, %v22_v5, 0.0  ;;  %v42_v9 = vsel %vm41_vm1, %v25_v8, 0.0  ;;  %v120_v36 = vld [vmem:[%s389_s3 + $0x10] sm:$0xff]  ;;  %v121_v37 = vld [vmem:[%s389_s3 + $0x18] sm:$0xff]  ;;  %v118_v38 = vld [vmem:[%s389_s3] sm:$0xff] }
   0x4   :  { %v126_v39 = vpack.c.bf16 %v121_v37, %v120_v36  ;;  %v119_v40 = vld [vmem:[%s389_s3 + $0x8] sm:$0xff]  ;;  %v210_v59 = vld [vmem:[%s390_s1] ss:$0 sm:$0xff] }
   0x5   :  { %v125_v41 = vpack.c.bf16 %v119_v40, %v118_v38 }
   0x6   :  { %239 = vmatpush3.bf16.msra.mxu1 %v126_v39  ;;  %222 = vmatpush3.bf16.msra.mxu0 %v126_v39 }
   0x7   :  { %39 = vadd.xlane.f32.xlu0 %v38_v6  ;;  %33 = vadd.xlane.f32.xlu1 %v32_v7 }
   0x8   :  { %238 = vmatprep.subr.bf16.mxu1 %v253_v35  ;;  %223 = vmatprep.subr.bf16.mxu0 %v253_v35 }
   0xa   :  { %240 = vmatpush3.bf16.msra.mxu1 %v125_v41  ;;  %224 = vmatpush3.bf16.msra.mxu0 %v125_v41 }
   0xb   :  { %43 = vadd.xlane.f32.xlu0 %v42_v9 }
  0x8c   :  { %v37_v10 = vpop.xlane.xlu0 %36  ;;  %v31_v11 = vpop.xlane.xlu1 %30 }
  0x8d   :  { %v48_v12 = vmul.f32 0.03125, %v37_v10  ;;  %v46_v13 = vmul.f32 0.03125, %v31_v11 }
  0x8f   :  { %v305_v14 = vsub.f32 %v23_v0, %v48_v12  ;;  %v307_v15 = vsub.f32 %v21_v2, %v46_v13  ;;  %v211_v0 = vld [vmem:[%s391_s2] ss:$0 sm:$0xff] }
  0x90   :  { %v40_v16 = vpop.xlane.xlu0 %39  ;;  %v34_v17 = vpop.xlane.xlu1 %33 }
  0x91   :  { %v49_v18 = vmul.f32 0.03125, %v40_v16  ;;  %v58_v19 = vmul.f32 %v305_v14, %v305_v14  ;;  %v47_v20 = vmul.f32 0.03125, %v34_v17  ;;  %v56_v21 = vmul.f32 %v307_v15, %v307_v15 }
  0x93   :  { %v313_v22 = vsub.f32 %v24_v1, %v49_v18  ;;  %v67_v23 = vsel %vm28_vm0, %v58_v19, 0.0  ;;  %v316_v24 = vsub.f32 %v22_v5, %v47_v20  ;;  %v61_v28 = vsel %vm28_vm0, %v56_v21, 0.0  ;;  %v212_v18 = vld [vmem:[%s392_s4] ss:$0 sm:$0xff] }
  0x94   :  { %v44_v25 = vpop.xlane.xlu0 %43  ;;  %68 = vadd.xlane.f32.xlu1 %v67_v23 }
  0x95   :  { %v50_v26 = vmul.f32 0.03125, %v44_v25  ;;  %v59_v27 = vmul.f32 %v313_v22, %v313_v22  ;;  %v57_v29 = vmul.f32 %v316_v24, %v316_v24 }
  0x97   :  { %v323_v30 = vsub.f32 %v25_v8, %v50_v26  ;;  %v70_v31 = vsel %vm28_vm0, %v59_v27, 0.0  ;;  %v64_v33 = vsel %vm28_vm0, %v57_v29, 0.0 }
  0x98   :  { %71 = vadd.xlane.f32.xlu0 %v70_v31  ;;  %62 = vadd.xlane.f32.xlu1 %v61_v28 }
  0x99   :  { %v60_v32 = vmul.f32 %v323_v30, %v323_v30 }
  0x9b   :  { %v73_v34 = vsel %vm41_vm1, %v60_v32, 0.0 }
  0x9c   :  { %74 = vadd.xlane.f32.xlu1 %v73_v34  ;;  %65 = vadd.xlane.f32.xlu0 %v64_v33 }
 0x11d   :  { %v69_v42 = vpop.xlane.xlu1 %68 }
 0x11e   :  { %v78_v43 = vmul.f32 0.03125, %v69_v42 }
 0x120   :  { %v83_v44 = vadd.f32 1e-05, %v78_v43 }
 0x121   :  { %v72_v45 = vpop.xlane.xlu0 %71  ;;  %v63_v46 = vpop.xlane.xlu1 %62 }
 0x122   :  { %243 = vrsqrt.f32 %v83_v44  ;;  %v79_v47 = vmul.f32 0.03125, %v72_v45  ;;  %v76_v48 = vmul.f32 0.03125, %v63_v46 }
 0x124   :  { %v84_v49 = vadd.f32 1e-05, %v79_v47  ;;  %v81_v50 = vadd.f32 1e-05, %v76_v48 }
 0x125   :  { %v66_v51 = vpop.xlane.xlu0 %65  ;;  %v75_v52 = vpop.xlane.xlu1 %74 }
 0x126   :  { %245 = vrsqrt.f32 %v84_v49  ;;  %v77_v53 = vmul.f32 0.03125, %v66_v51  ;;  %v80_v54 = vmul.f32 0.03125, %v75_v52 }
 0x127   :  { %247 = vrsqrt.f32 %v81_v50 }
 0x128   :  { %v82_v55 = vadd.f32 1e-05, %v77_v53  ;;  %v85_v56 = vadd.f32 1e-05, %v80_v54 }
 0x12a   :  { %249 = vrsqrt.f32 %v82_v55 }
 0x12b   :  { %251 = vrsqrt.f32 %v85_v56 }
 0x12f   :  { %v244_v57 = vpop.eup %243 }
 0x130   :  { %v93_v58 = vmul.f32 %v244_v57, %v305_v14 }
 0x132   :  { %v104_v63 = vmul.f32 %v210_v59, %v93_v58 }
 0x133   :  { %v246_v60 = vpop.eup %245 }
 0x134   :  { %v248_v61 = vpop.eup %247  ;;  %v94_v62 = vmul.f32 %v246_v60, %v313_v22  ;;  %v115_v5 = vadd.f32 %v211_v0, %v104_v63 }
 0x135   :  { %v91_v1 = vmul.f32 %v248_v61, %v307_v15 }
 0x136   :  { %v105_v2 = vmul.f32 %v210_v59, %v94_v62 }
 0x137   :  { %v250_v3 = vpop.eup %249  ;;  %v102_v8 = vmul.f32 %v210_v59, %v91_v1 }
 0x138   :  { %v252_v4 = vpop.eup %251  ;;  %v116_v6 = vadd.f32 %v211_v0, %v105_v2  ;;  %v92_v7 = vmul.f32 %v250_v3, %v316_v24 }
 0x139   :  { %v95_v9 = vmul.f32 %v252_v4, %v323_v30  ;;  %v113_v13 = vadd.f32 %v211_v0, %v102_v8 }
 0x13a   :  { %v123_v10 = vpack.c.bf16 %v116_v6, %v115_v5  ;;  %v103_v11 = vmul.f32 %v210_v59, %v92_v7 }
 0x13b   :  { %v106_v12 = vmul.f32 %v210_v59, %v95_v9 }
 0x13c   :  { %230 = vmatmul.mubr.msk.bf16.vlgmr.msra.gmra.mxu1 %vm28_vm0, %v123_v10  ;;  %v114_v14 = vadd.f32 %v211_v0, %v103_v11 }
 0x13d   :  { %233 = vmatprep.mubr.msk.bf16.mxu1 %vm254_vm2, %v253_v35  ;;  %v117_v16 = vadd.f32 %v211_v0, %v106_v12 }
 0x13e   :  { %v122_v15 = vpack.c.bf16 %v114_v14, %v113_v13 }
 0x13f   :  { %v124_v17 = vpack.c.bf16 %v117_v16, %v117_v16 }
 0x140   :  { %226 = vmatmul.mubr.msk.bf16.vlgmr.msra.gmra.mxu0 %vm28_vm0, %v122_v15 }
 0x144   :  { %234 = vmatmul.mubr.msk.bf16.gmra.mxu1 %vm28_vm0, %v124_v17 }
 0x1fc   :  { %v185_v19 = vpop.f32.mrf.mxu1 }
 0x1fd   :  { %v186_v20 = vadd.f32 %v212_v18, %v185_v19 }
 0x1fe   :  { %v231_v21 = vpop.f32.mrf.mxu1 }
 0x1ff   :  { %202 = vst.msk [vmem:[%s393_s5 + $0x10] sm:$0xff] %vm199_vm3, %v186_v20 }
 0x200   :  { %v177_v22 = vpop.f32.mrf.mxu0  ;;  %v188_v23 = vpop.f32.mrf.mxu1 }
 0x201   :  { %v178_v24 = vadd.f32 %v212_v18, %v177_v22  ;;  %v189_v25 = vadd.f32 %v212_v18, %v188_v23 }
 0x202   :  { %v227_v26 = vpop.f32.mrf.mxu0  ;;  %v232_v27 = vpop.f32.mrf.mxu1 }
 0x203   :  { %200 = vst.msk [vmem:[%s393_s5] sm:$0xff] %vm199_vm3, %v178_v24  ;;  %203 = vst.msk [vmem:[%s393_s5 + $0x18] sm:$0xff] %vm199_vm3, %v189_v25 }
 0x204   :  { %v180_v28 = vpop.f32.mrf.mxu0  ;;  %v193_v29 = vpop.f32.mrf.mxu1 }
 0x205   :  { %v181_v30 = vadd.f32 %v212_v18, %v180_v28  ;;  %v194_v31 = vadd.f32 %v212_v18, %v193_v29 }
 0x206   :  { %v228_v32 = vpop.f32.mrf.mxu0  ;;  %v235_v33 = vpop.f32.mrf.mxu1 }
 0x207   :  { %201 = vst.msk [vmem:[%s393_s5 + $0x8] sm:$0xff] %vm199_vm3, %v181_v30 }
 0x208   :  { %205 = vst.msk [vmem:[%s393_s5 + $0x20] sm:$0x3f] %vm204_vm4, %v194_v31  ;;  %v196_v34 = vpop.f32.mrf.mxu1 }
 0x20a   :  { %v236_v35 = vpop.f32.mrf.mxu1 }

// kernel: forward.18
= control target key start
LH: loop header
LB: loop body
LE: loop exit
PB: predicated region body
PF: predicated region fallthrough
CT: control target
= control target key end

     0   :  { %v333_v0 = vmov 0.0   ;;  %vm334_vm0 = vmmov 0   ;;  %vm55_vm1 = vcmask 785408   ;;  %vm234_vm2 = vcmask 261120   ;;  %s572_s1 = inlined_call_operand.vmem [shape: f32[96,32], index: 1, kind: input, shape index: {}]   ;;  %s573_s0 = inlined_call_operand.vmem [shape: f32[78,96], index: 0, kind: input, shape index: {}]   ;;  %s574_s2 = inlined_call_operand.vmem [shape: f32[1,32], index: 2, kind: input, shape index: {}]   ;;  %s575_s3 = inlined_call_operand.vmem [shape: f32[78,32], index: 3, kind: output, shape index: {}]  }
   0x1   :  { %267 = vmatprep.subr.bf16.mxu0 %v333_v0  ;;  %299 = vmatprep.subr.bf16.mxu1 %v333_v0  ;;  %v35_v1 = vld [vmem:[%s572_s1 + $0x50] sm:$0xff]  ;;  %v36_v2 = vld [vmem:[%s572_s1 + $0x58] sm:$0xff]  ;;  %v33_v3 = vld [vmem:[%s572_s1 + $0x40] sm:$0xff]  ;;  %vm244_vm3 = vcmask 259072  }
   0x2   :  { %v47_v4 = vpack.c.bf16 %v36_v2, %v35_v1  ;;  %v34_v5 = vld [vmem:[%s572_s1 + $0x48] sm:$0xff]  ;;  %279 = vmatprep.mubr.msk.bf16.mxu0 %vm334_vm0, %v333_v0  ;;  %291 = vmatprep.mubr.msk.bf16.mxu1 %vm334_vm0, %v333_v0  ;;  %v31_v7 = vld [vmem:[%s572_s1 + $0x30] sm:$0xff]  ;;  %v32_v8 = vld [vmem:[%s572_s1 + $0x38] sm:$0xff] }
   0x3   :  { %v46_v6 = vpack.c.bf16 %v34_v5, %v33_v3  ;;  %v45_v9 = vpack.c.bf16 %v32_v8, %v31_v7  ;;  %v29_v10 = vld [vmem:[%s572_s1 + $0x20] sm:$0xff]  ;;  %v30_v11 = vld [vmem:[%s572_s1 + $0x28] sm:$0xff]  ;;  %v27_v13 = vld [vmem:[%s572_s1 + $0x10] sm:$0xff] }
   0x4   :  { %268 = vmatpush3.bf16.msra.mxu0 %v47_v4  ;;  %305 = vmatpush3.bf16.msra.mxu1 %v47_v4  ;;  %v44_v12 = vpack.c.bf16 %v30_v11, %v29_v10  ;;  %v28_v14 = vld [vmem:[%s572_s1 + $0x18] sm:$0xff]  ;;  %v25_v16 = vld [vmem:[%s572_s1] sm:$0xff]  ;;  %v26_v17 = vld [vmem:[%s572_s1 + $0x8] sm:$0xff] }
   0x5   :  { %269 = vmatprep.subr.bf16.mxu0 %v333_v0  ;;  %300 = vmatprep.subr.bf16.mxu1 %v333_v0  ;;  %v43_v15 = vpack.c.bf16 %v28_v14, %v27_v13  ;;  %v15_v18 = vld [vmem:[%s573_s0] sm:$0xff]  ;;  %v42_v19 = vpack.c.bf16 %v26_v17, %v25_v16  ;;  %v16_v20 = vld [vmem:[%s573_s0 + $0x8] sm:$0xff]  ;;  %v21_v21 = vld [vmem:[%s573_s0 + $0x30] sm:$0xff] }
   0x6   :  { %v22_v22 = vld [vmem:[%s573_s0 + $0x38] sm:$0xff]  ;;  %v37_v23 = vpack.c.bf16 %v16_v20, %v15_v18  ;;  %v17_v25 = vld [vmem:[%s573_s0 + $0x10] sm:$0xff]  ;;  %v23_v27 = vld [vmem:[%s573_s0 + $0x40] sm:$0xff] }
   0x7   :  { %v40_v24 = vpack.c.bf16 %v22_v22, %v21_v21  ;;  %v18_v26 = vld [vmem:[%s573_s0 + $0x18] sm:$0xff]  ;;  %v24_v28 = vld [vmem:[%s573_s0 + $0x48] sm:$0x3f]  ;;  %v19_v31 = vld [vmem:[%s573_s0 + $0x20] sm:$0xff] }
   0x8   :  { %270 = vmatpush3.bf16.msra.mxu0 %v46_v6  ;;  %306 = vmatpush3.bf16.msra.mxu1 %v46_v6  ;;  %v38_v29 = vpack.c.bf16 %v18_v26, %v17_v25  ;;  %v41_v30 = vpack.c.bf16 %v24_v28, %v23_v27  ;;  %v20_v32 = vld [vmem:[%s573_s0 + $0x28] sm:$0xff]  ;;  %v451_v34 = vld [vmem:[%s574_s2] ss:$0 sm:$0xff] }
   0x9   :  { %271 = vmatprep.subr.bf16.mxu0 %v333_v0  ;;  %301 = vmatprep.subr.bf16.mxu1 %v333_v0  ;;  %v39_v33 = vpack.c.bf16 %v20_v32, %v19_v31 }
   0xc   :  { %272 = vmatpush3.bf16.msra.mxu0 %v45_v9  ;;  %307 = vmatpush3.bf16.msra.mxu1 %v45_v9 }
   0xd   :  { %273 = vmatprep.subr.bf16.mxu0 %v333_v0  ;;  %302 = vmatprep.subr.bf16.mxu1 %v333_v0 }
  0x10   :  { %274 = vmatpush3.bf16.msra.mxu0 %v44_v12  ;;  %308 = vmatpush3.bf16.msra.mxu1 %v44_v12 }
  0x11   :  { %275 = vmatprep.subr.bf16.mxu0 %v333_v0  ;;  %303 = vmatprep.subr.bf16.mxu1 %v333_v0 }
  0x14   :  { %276 = vmatpush3.bf16.msra.mxu0 %v43_v15  ;;  %309 = vmatpush3.bf16.msra.mxu1 %v43_v15 }
  0x15   :  { %277 = vmatprep.subr.bf16.mxu0 %v333_v0  ;;  %304 = vmatprep.subr.bf16.mxu1 %v333_v0 }
  0x18   :  { %278 = vmatpush3.bf16.msra.mxu0 %v42_v19  ;;  %310 = vmatpush3.bf16.msra.mxu1 %v42_v19 }
  0x1b   :  { %280 = vmatmul.mubr.msk.bf16.vlgmr.msra.gmra.mxu0 %vm55_vm1, %v37_v23  ;;  %292 = vmatmul.mubr.msk.bf16.vlgmr.msra.gmra.mxu1 %vm55_vm1, %v40_v24 }
  0x1c   :  { %283 = vmatprep.mubr.msk.bf16.mxu0 %vm334_vm0, %v333_v0  ;;  %295 = vmatprep.mubr.msk.bf16.mxu1 %vm334_vm0, %v333_v0 }
  0x23   :  { %284 = vmatmul.mubr.msk.bf16.gmra.mxu0 %vm55_vm1, %v38_v29  ;;  %296 = vmatmul.mubr.msk.bf16.gmra.mxu1 %vm55_vm1, %v41_v30 }
  0x24   :  { %287 = vmatprep.mubr.msk.bf16.mxu0 %vm334_vm0, %v333_v0 }
  0x2b   :  { %288 = vmatmul.mubr.msk.bf16.gmra.mxu0 %vm55_vm1, %v39_v33 }
  0xdb   :  { %v105_v35 = vpop.f32.mrf.mxu0  ;;  %v129_v36 = vpop.f32.mrf.mxu1 }
  0xdc   :  { %v454_v37 = vadd.f32 %v451_v34, %v105_v35  ;;  %v457_v38 = vadd.f32 %v451_v34, %v129_v36 }
  0xdd   :  { %v281_v39 = vpop.f32.mrf.mxu0  ;;  %v293_v40 = vpop.f32.mrf.mxu1 }
  0xde   :  { %v144_v41 = vmul.f32 %v454_v37, %v454_v37  ;;  %v150_v42 = vmul.f32 %v457_v38, %v457_v38 }
  0xdf   :  { %v108_v43 = vpop.f32.mrf.mxu0  ;;  %v132_v44 = vpop.f32.mrf.mxu1 }
  0xe0   :  { %v154_v45 = vmul.f32 %v144_v41, %v454_v37  ;;  %v160_v46 = vmul.f32 %v150_v42, %v457_v38  ;;  %v466_v47 = vadd.f32 %v451_v34, %v108_v43  ;;  %v469_v48 = vadd.f32 %v451_v34, %v132_v44 }
  0xe1   :  { %v282_v49 = vpop.f32.mrf.mxu0  ;;  %v294_v50 = vpop.f32.mrf.mxu1 }
  0xe2   :  { %v164_v51 = vmul.f32 0.044715, %v154_v45  ;;  %v170_v52 = vmul.f32 0.044715, %v160_v46  ;;  %v145_v53 = vmul.f32 %v466_v47, %v466_v47  ;;  %v151_v54 = vmul.f32 %v469_v48, %v469_v48 }
  0xe3   :  { %v113_v55 = vpop.f32.mrf.mxu0  ;;  %v137_v56 = vpop.f32.mrf.mxu1 }
  0xe4   :  { %v174_v57 = vadd.f32 %v164_v51, %v454_v37  ;;  %v180_v58 = vadd.f32 %v170_v52, %v457_v38  ;;  %v155_v59 = vmul.f32 %v145_v53, %v466_v47  ;;  %v161_v60 = vmul.f32 %v151_v54, %v469_v48 }
  0xe5   :  { %v480_v61 = vadd.f32 %v451_v34, %v113_v55  ;;  %v483_v62 = vadd.f32 %v451_v34, %v137_v56  ;;  %v285_v63 = vpop.f32.mrf.mxu0  ;;  %v297_v0 = vpop.f32.mrf.mxu1 }
  0xe6   :  { %v184_v1 = vmul.f32 0.7978846, %v174_v57  ;;  %v190_v2 = vmul.f32 0.7978846, %v180_v58  ;;  %v165_v3 = vmul.f32 0.044715, %v155_v59 }
  0xe7   :  { %v171_v4 = vmul.f32 0.044715, %v161_v60  ;;  %v146_v5 = vmul.f32 %v480_v61, %v480_v61  ;;  %v152_v6 = vmul.f32 %v483_v62, %v483_v62  ;;  %v116_v7 = vpop.f32.mrf.mxu0  ;;  %v140_v8 = vpop.f32.mrf.mxu1 }
  0xe8   :  { %313 = vtanh.f32 %v184_v1  ;;  %v175_v9 = vadd.f32 %v165_v3, %v466_v47  ;;  %v491_v10 = vadd.f32 %v451_v34, %v116_v7  ;;  %v494_v11 = vadd.f32 %v451_v34, %v140_v8 }
  0xe9   :  { %315 = vtanh.f32 %v190_v2  ;;  %v181_v12 = vadd.f32 %v171_v4, %v469_v48  ;;  %v156_v13 = vmul.f32 %v146_v5, %v480_v61  ;;  %v162_v14 = vmul.f32 %v152_v6, %v483_v62  ;;  %v286_v15 = vpop.f32.mrf.mxu0  ;;  %v298_v16 = vpop.f32.mrf.mxu1 }
  0xea   :  { %v185_v17 = vmul.f32 0.7978846, %v175_v9  ;;  %v147_v18 = vmul.f32 %v491_v10, %v491_v10  ;;  %v153_v19 = vmul.f32 %v494_v11, %v494_v11 }
  0xeb   :  { %v191_v20 = vmul.f32 0.7978846, %v181_v12  ;;  %v166_v21 = vmul.f32 0.044715, %v156_v13  ;;  %v172_v22 = vmul.f32 0.044715, %v162_v14  ;;  %v121_v23 = vpop.f32.mrf.mxu0 }
  0xec   :  { %317 = vtanh.f32 %v185_v17  ;;  %v157_v24 = vmul.f32 %v147_v18, %v491_v10  ;;  %v163_v25 = vmul.f32 %v153_v19, %v494_v11  ;;  %v506_v26 = vadd.f32 %v451_v34, %v121_v23 }
  0xed   :  { %319 = vtanh.f32 %v191_v20  ;;  %v176_v27 = vadd.f32 %v166_v21, %v480_v61  ;;  %v182_v28 = vadd.f32 %v172_v22, %v483_v62  ;;  %v289_v29 = vpop.f32.mrf.mxu0 }
  0xee   :  { %v167_v30 = vmul.f32 0.044715, %v157_v24  ;;  %v173_v31 = vmul.f32 0.044715, %v163_v25  ;;  %v148_v32 = vmul.f32 %v506_v26, %v506_v26 }
  0xef   :  { %v186_v33 = vmul.f32 0.7978846, %v176_v27  ;;  %v192_v35 = vmul.f32 0.7978846, %v182_v28  ;;  %v124_v36 = vpop.f32.mrf.mxu0 }
  0xf0   :  { %v177_v39 = vadd.f32 %v167_v30, %v491_v10  ;;  %v183_v40 = vadd.f32 %v173_v31, %v494_v11  ;;  %v158_v41 = vmul.f32 %v148_v32, %v506_v26  ;;  %v516_v42 = vadd.f32 %v451_v34, %v124_v36 }
  0xf1   :  { %321 = vtanh.f32 %v186_v33  ;;  %v290_v43 = vpop.f32.mrf.mxu0 }
  0xf2   :  { %323 = vtanh.f32 %v192_v35  ;;  %v187_v44 = vmul.f32 0.7978846, %v177_v39  ;;  %v193_v45 = vmul.f32 0.7978846, %v183_v40  ;;  %v168_v46 = vmul.f32 0.044715, %v158_v41 }
  0xf3   :  { %v149_v49 = vmul.f32 %v516_v42, %v516_v42 }
  0xf4   :  { %325 = vtanh.f32 %v187_v44  ;;  %v178_v50 = vadd.f32 %v168_v46, %v506_v26 }
  0xf5   :  { %v314_v51 = vpop.eup %313  ;;  %327 = vtanh.f32 %v193_v45  ;;  %v159_v52 = vmul.f32 %v149_v49, %v516_v42 }
  0xf6   :  { %v316_v53 = vpop.eup %315  ;;  %v204_v54 = vadd.f32 1.0, %v314_v51  ;;  %v188_v34 = vmul.f32 0.7978846, %v178_v50 }
  0xf7   :  { %v210_v55 = vadd.f32 1.0, %v316_v53  ;;  %v169_v56 = vmul.f32 0.044715, %v159_v52 }
  0xf8   :  { %v214_v57 = vmul.f32 0.5, %v204_v54  ;;  %329 = vtanh.f32 %v188_v34 }
  0xf9   :  { %v318_v58 = vpop.eup %317  ;;  %v220_v59 = vmul.f32 0.5, %v210_v55  ;;  %v179_v60 = vadd.f32 %v169_v56, %v516_v42 }
  0xfa   :  { %v320_v63 = vpop.eup %319  ;;  %v224_v0 = vmul.f32 %v214_v57, %v454_v37  ;;  %v205_v1 = vadd.f32 1.0, %v318_v58 }
  0xfb   :  { %v230_v2 = vmul.f32 %v220_v59, %v457_v38  ;;  %v211_v3 = vadd.f32 1.0, %v320_v63  ;;  %v189_v4 = vmul.f32 0.7978846, %v179_v60 }
  0xfc   :  { %235 = vst.msk [vmem:[%s575_s3] sm:$0xff] %vm234_vm2, %v224_v0  ;;  %v215_v5 = vmul.f32 0.5, %v205_v1 }
  0xfd   :  { %241 = vst.msk [vmem:[%s575_s3 + $0x30] sm:$0xff] %vm234_vm2, %v230_v2  ;;  %v221_v6 = vmul.f32 0.5, %v211_v3  ;;  %331 = vtanh.f32 %v189_v4 }
  0xfe   :  { %v322_v7 = vpop.eup %321  ;;  %v225_v37 = vmul.f32 %v215_v5, %v466_v47 }
  0xff   :  { %v324_v8 = vpop.eup %323  ;;  %v231_v38 = vmul.f32 %v221_v6, %v469_v48  ;;  %v206_v9 = vadd.f32 1.0, %v322_v7 }
 0x100   :  { %236 = vst.msk [vmem:[%s575_s3 + $0x8] sm:$0xff] %vm234_vm2, %v225_v37  ;;  %v212_v12 = vadd.f32 1.0, %v324_v8 }
 0x101   :  { %v326_v13 = vpop.eup %325  ;;  %242 = vst.msk [vmem:[%s575_s3 + $0x38] sm:$0xff] %vm234_vm2, %v231_v38  ;;  %v216_v14 = vmul.f32 0.5, %v206_v9 }
 0x102   :  { %v328_v15 = vpop.eup %327  ;;  %v222_v16 = vmul.f32 0.5, %v212_v12  ;;  %v207_v47 = vadd.f32 1.0, %v326_v13 }
 0x103   :  { %v226_v17 = vmul.f32 %v216_v14, %v480_v61  ;;  %v213_v48 = vadd.f32 1.0, %v328_v15 }
 0x104   :  { %v232_v18 = vmul.f32 %v222_v16, %v483_v62  ;;  %v217_v19 = vmul.f32 0.5, %v207_v47 }
 0x105   :  { %v330_v20 = vpop.eup %329  ;;  %237 = vst.msk [vmem:[%s575_s3 + $0x10] sm:$0xff] %vm234_vm2, %v226_v17  ;;  %v223_v21 = vmul.f32 0.5, %v213_v48 }
 0x106   :  { %243 = vst.msk [vmem:[%s575_s3 + $0x40] sm:$0xff] %vm234_vm2, %v232_v18  ;;  %v227_v22 = vmul.f32 %v217_v19, %v491_v10  ;;  %v208_v61 = vadd.f32 1.0, %v330_v20 }
 0x107   :  { %v233_v23 = vmul.f32 %v223_v21, %v494_v11 }
 0x108   :  { %238 = vst.msk [vmem:[%s575_s3 + $0x18] sm:$0xff] %vm234_vm2, %v227_v22  ;;  %v218_v62 = vmul.f32 0.5, %v208_v61 }
 0x109   :  { %245 = vst.msk [vmem:[%s575_s3 + $0x48] sm:$0x3f] %vm244_vm3, %v233_v23 }
 0x10a   :  { %v332_v24 = vpop.eup %331  ;;  %v228_v25 = vmul.f32 %v218_v62, %v506_v26 }
 0x10b   :  { %v209_v27 = vadd.f32 1.0, %v332_v24 }
 0x10c   :  { %239 = vst.msk [vmem:[%s575_s3 + $0x20] sm:$0xff] %vm234_vm2, %v228_v25 }
 0x10d   :  { %v219_v10 = vmul.f32 0.5, %v209_v27 }
 0x10f   :  { %v229_v11 = vmul.f32 %v219_v10, %v516_v42 }
 0x111   :  { %240 = vst.msk [vmem:[%s575_s3 + $0x28] sm:$0xff] %vm234_vm2, %v229_v11 }

// kernel: forward.19
= control target key start
LH: loop header
LB: loop body
LE: loop exit
PB: predicated region body
PF: predicated region fallthrough
CT: control target
= control target key end

     0   :  { %v215_v0 = vmov 0.0   ;;  %vm216_vm0 = vmmov 0   ;;  %vm42_vm1 = vcmask 523264   ;;  %vm153_vm2 = vcmask 261120   ;;  %s301_s1 = inlined_call_operand.vmem [shape: f32[64,32], index: 1, kind: input, shape index: {}]   ;;  %s302_s0 = inlined_call_operand.vmem [shape: f32[38,64], index: 0, kind: input, shape index: {}]   ;;  %s303_s2 = inlined_call_operand.vmem [shape: f32[1,32], index: 2, kind: input, shape index: {}]   ;;  %s304_s3 = inlined_call_operand.vmem [shape: f32[38,32], index: 3, kind: output, shape index: {}]  }
   0x1   :  { %175 = vmatprep.subr.bf16.mxu0 %v215_v0  ;;  %195 = vmatprep.subr.bf16.mxu1 %v215_v0  ;;  %v26_v1 = vld [vmem:[%s301_s1 + $0x30] sm:$0xff]  ;;  %v27_v2 = vld [vmem:[%s301_s1 + $0x38] sm:$0xff]  ;;  %v24_v3 = vld [vmem:[%s301_s1 + $0x20] sm:$0xff]  ;;  %vm158_vm3 = vcmask 259072  }
   0x2   :  { %v34_v4 = vpack.c.bf16 %v27_v2, %v26_v1  ;;  %v25_v5 = vld [vmem:[%s301_s1 + $0x28] sm:$0xff]  ;;  %183 = vmatprep.mubr.msk.bf16.mxu0 %vm216_vm0, %v215_v0  ;;  %187 = vmatprep.mubr.msk.bf16.mxu1 %vm216_vm0, %v215_v0  ;;  %v22_v7 = vld [vmem:[%s301_s1 + $0x10] sm:$0xff]  ;;  %v23_v8 = vld [vmem:[%s301_s1 + $0x18] sm:$0xff] }
   0x3   :  { %v33_v6 = vpack.c.bf16 %v25_v5, %v24_v3  ;;  %v32_v9 = vpack.c.bf16 %v23_v8, %v22_v7  ;;  %v20_v10 = vld [vmem:[%s301_s1] sm:$0xff]  ;;  %v21_v11 = vld [vmem:[%s301_s1 + $0x8] sm:$0xff]  ;;  %v17_v15 = vld [vmem:[%s302_s0 + $0x10] sm:$0xff] }
   0x4   :  { %176 = vmatpush3.bf16.msra.mxu0 %v34_v4  ;;  %199 = vmatpush3.bf16.msra.mxu1 %v34_v4  ;;  %v15_v12 = vld [vmem:[%s302_s0] sm:$0xff]  ;;  %v31_v13 = vpack.c.bf16 %v21_v11, %v20_v10  ;;  %v16_v14 = vld [vmem:[%s302_s0 + $0x8] sm:$0xff]  ;;  %v18_v16 = vld [vmem:[%s302_s0 + $0x18] sm:$0xff] }
   0x5   :  { %177 = vmatprep.subr.bf16.mxu0 %v215_v0  ;;  %196 = vmatprep.subr.bf16.mxu1 %v215_v0  ;;  %v28_v17 = vpack.c.bf16 %v16_v14, %v15_v12  ;;  %v29_v18 = vpack.c.bf16 %v18_v16, %v17_v15  ;;  %v19_v19 = vld [vmem:[%s302_s0 + $0x20] sm:$0x3f] }
   0x6   :  { %v30_v20 = vpack.c.bf16 %v19_v19, %v19_v19  ;;  %v164_v21 = vld [vmem:[%s303_s2] ss:$0 sm:$0xff] }
   0x8   :  { %178 = vmatpush3.bf16.msra.mxu0 %v33_v6  ;;  %200 = vmatpush3.bf16.msra.mxu1 %v33_v6 }
   0x9   :  { %179 = vmatprep.subr.bf16.mxu0 %v215_v0  ;;  %197 = vmatprep.subr.bf16.mxu1 %v215_v0 }
   0xc   :  { %180 = vmatpush3.bf16.msra.mxu0 %v32_v9  ;;  %201 = vmatpush3.bf16.msra.mxu1 %v32_v9 }
   0xd   :  { %181 = vmatprep.subr.bf16.mxu0 %v215_v0  ;;  %198 = vmatprep.subr.bf16.mxu1 %v215_v0 }
  0x10   :  { %182 = vmatpush3.bf16.msra.mxu0 %v31_v13  ;;  %202 = vmatpush3.bf16.msra.mxu1 %v31_v13 }
  0x13   :  { %184 = vmatmul.mubr.msk.bf16.vlgmr.msra.gmra.mxu0 %vm42_vm1, %v28_v17  ;;  %188 = vmatmul.mubr.msk.bf16.vlgmr.msra.gmra.mxu1 %vm42_vm1, %v29_v18 }
  0x14   :  { %191 = vmatprep.mubr.msk.bf16.mxu1 %vm216_vm0, %v215_v0 }
  0x1b   :  { %192 = vmatmul.mubr.msk.bf16.gmra.mxu1 %vm42_vm1, %v30_v20 }
  0xd3   :  { %v86_v22 = vpop.f32.mrf.mxu0  ;;  %v94_v23 = vpop.f32.mrf.mxu1 }
  0xd4   :  { %v87_v24 = vadd.f32 %v164_v21, %v86_v22  ;;  %v95_v25 = vadd.f32 %v164_v21, %v94_v23 }
  0xd5   :  { %v185_v26 = vpop.f32.mrf.mxu0  ;;  %v189_v27 = vpop.f32.mrf.mxu1 }
  0xd6   :  { %v108_v28 = vmul.f32 %v87_v24, %v87_v24  ;;  %v110_v29 = vmul.f32 %v95_v25, %v95_v25 }
  0xd7   :  { %v89_v30 = vpop.f32.mrf.mxu0  ;;  %v97_v31 = vpop.f32.mrf.mxu1 }
  0xd8   :  { %v113_v32 = vmul.f32 %v108_v28, %v87_v24  ;;  %v115_v33 = vmul.f32 %v110_v29, %v95_v25  ;;  %v90_v34 = vadd.f32 %v164_v21, %v89_v30  ;;  %v98_v35 = vadd.f32 %v164_v21, %v97_v31 }
  0xd9   :  { %v186_v36 = vpop.f32.mrf.mxu0  ;;  %v190_v37 = vpop.f32.mrf.mxu1 }
  0xda   :  { %v118_v38 = vmul.f32 0.044715, %v113_v32  ;;  %v120_v39 = vmul.f32 0.044715, %v115_v33  ;;  %v109_v40 = vmul.f32 %v90_v34, %v90_v34  ;;  %v111_v41 = vmul.f32 %v98_v35, %v98_v35 }
  0xdb   :  { %v102_v42 = vpop.f32.mrf.mxu1 }
  0xdc   :  { %v123_v43 = vadd.f32 %v118_v38, %v87_v24  ;;  %v125_v44 = vadd.f32 %v120_v39, %v95_v25  ;;  %v114_v45 = vmul.f32 %v109_v40, %v90_v34  ;;  %v116_v46 = vmul.f32 %v111_v41, %v98_v35 }
  0xdd   :  { %v103_v47 = vadd.f32 %v164_v21, %v102_v42  ;;  %v193_v48 = vpop.f32.mrf.mxu1 }
  0xde   :  { %v128_v49 = vmul.f32 0.7978846, %v123_v43  ;;  %v130_v50 = vmul.f32 0.7978846, %v125_v44  ;;  %v119_v51 = vmul.f32 0.044715, %v114_v45 }
  0xdf   :  { %v121_v52 = vmul.f32 0.044715, %v116_v46  ;;  %v112_v53 = vmul.f32 %v103_v47, %v103_v47  ;;  %v105_v54 = vpop.f32.mrf.mxu1 }
  0xe0   :  { %205 = vtanh.f32 %v128_v49  ;;  %v124_v55 = vadd.f32 %v119_v51, %v90_v34 }
  0xe1   :  { %207 = vtanh.f32 %v130_v50  ;;  %v126_v56 = vadd.f32 %v121_v52, %v98_v35  ;;  %v117_v57 = vmul.f32 %v112_v53, %v103_v47  ;;  %v194_v58 = vpop.f32.mrf.mxu1 }
  0xe2   :  { %v129_v59 = vmul.f32 0.7978846, %v124_v55 }
  0xe3   :  { %v131_v60 = vmul.f32 0.7978846, %v126_v56  ;;  %v122_v61 = vmul.f32 0.044715, %v117_v57 }
  0xe4   :  { %209 = vtanh.f32 %v129_v59 }
  0xe5   :  { %211 = vtanh.f32 %v131_v60  ;;  %v127_v62 = vadd.f32 %v122_v61, %v103_v47 }
  0xe7   :  { %v132_v63 = vmul.f32 0.7978846, %v127_v62 }
  0xe9   :  { %213 = vtanh.f32 %v132_v63 }
  0xed   :  { %v206_v0 = vpop.eup %205 }
  0xee   :  { %v208_v1 = vpop.eup %207  ;;  %v138_v2 = vadd.f32 1.0, %v206_v0 }
  0xef   :  { %v140_v3 = vadd.f32 1.0, %v208_v1 }
  0xf0   :  { %v143_v4 = vmul.f32 0.5, %v138_v2 }
  0xf1   :  { %v210_v5 = vpop.eup %209  ;;  %v145_v6 = vmul.f32 0.5, %v140_v3 }
  0xf2   :  { %v212_v7 = vpop.eup %211  ;;  %v148_v8 = vmul.f32 %v143_v4, %v87_v24  ;;  %v139_v9 = vadd.f32 1.0, %v210_v5 }
  0xf3   :  { %v150_v10 = vmul.f32 %v145_v6, %v95_v25  ;;  %v141_v11 = vadd.f32 1.0, %v212_v7 }
  0xf4   :  { %154 = vst.msk [vmem:[%s304_s3] sm:$0xff] %vm153_vm2, %v148_v8  ;;  %v144_v12 = vmul.f32 0.5, %v139_v9 }
  0xf5   :  { %156 = vst.msk [vmem:[%s304_s3 + $0x10] sm:$0xff] %vm153_vm2, %v150_v10  ;;  %v146_v13 = vmul.f32 0.5, %v141_v11 }
  0xf6   :  { %v214_v14 = vpop.eup %213  ;;  %v149_v15 = vmul.f32 %v144_v12, %v90_v34 }
  0xf7   :  { %v151_v16 = vmul.f32 %v146_v13, %v98_v35  ;;  %v142_v17 = vadd.f32 1.0, %v214_v14 }
  0xf8   :  { %155 = vst.msk [vmem:[%s304_s3 + $0x8] sm:$0xff] %vm153_vm2, %v149_v15 }
  0xf9   :  { %157 = vst.msk [vmem:[%s304_s3 + $0x18] sm:$0xff] %vm153_vm2, %v151_v16  ;;  %v147_v18 = vmul.f32 0.5, %v142_v17 }
  0xfb   :  { %v152_v19 = vmul.f32 %v147_v18, %v103_v47 }
  0xfd   :  { %159 = vst.msk [vmem:[%s304_s3 + $0x20] sm:$0x3f] %vm158_vm3, %v152_v19 }

// kernel: forward.21
= control target key start
LH: loop header
LB: loop body
LE: loop exit
PB: predicated region body
PF: predicated region fallthrough
CT: control target
= control target key end

     0   :  { %vm307_vm0 = vcmask 523264   ;;  %s705_s1 = inlined_call_operand.vmem [shape: f32[512,64], index: 1, kind: input, shape index: {}]   ;;  %s706_s0 = inlined_call_operand.vmem [shape: f32[40,512], index: 0, kind: input, shape index: {}]   ;;  %s707_s2 = inlined_call_operand.vmem [shape: f32[1,64], index: 2, kind: input, shape index: {}]   ;;  %s708_s3 = inlined_call_operand.vmem [shape: f32[40,64], index: 3, kind: output, shape index: {}]  }
   0x1   :  { %v65_v0 = vld [vmem:[%s705_s1 + $0xf0] sm:$0xff]  ;;  %v66_v1 = vld [vmem:[%s705_s1 + $0xf8] sm:$0xff]  ;;  %v63_v11 = vld [vmem:[%s705_s1 + $0xe0] sm:$0xff] }
   0x2   :  { %v97_v2 = vld [vmem:[%s705_s1 + $0x1f0] sm:$0xff]  ;;  %v126_v3 = vpack.c.bf16 %v66_v1, %v65_v0  ;;  %v98_v4 = vld [vmem:[%s705_s1 + $0x1f8] sm:$0xff]  ;;  %v64_v13 = vld [vmem:[%s705_s1 + $0xe8] sm:$0xff] }
   0x3   :  { %v49_v5 = vld [vmem:[%s705_s1 + $0x70] sm:$0xff]  ;;  %v50_v6 = vld [vmem:[%s705_s1 + $0x78] sm:$0xff]  ;;  %v142_v7 = vpack.c.bf16 %v98_v4, %v97_v2  ;;  %v95_v14 = vld [vmem:[%s705_s1 + $0x1e0] sm:$0xff]  ;;  %v125_v16 = vpack.c.bf16 %v64_v13, %v63_v11 }
   0x4   :  { %v118_v8 = vpack.c.bf16 %v50_v6, %v49_v5  ;;  %v81_v9 = vld [vmem:[%s705_s1 + $0x170] sm:$0xff]  ;;  %v82_v10 = vld [vmem:[%s705_s1 + $0x178] sm:$0xff]  ;;  %318 = vmatprep.subr.bf16.mxu0 %v126_v3  ;;  %v96_v15 = vld [vmem:[%s705_s1 + $0x1e8] sm:$0xff] }
   0x5   :  { %v134_v12 = vpack.c.bf16 %v82_v10, %v81_v9  ;;  %352 = vmatprep.subr.bf16.mxu1 %v142_v7  ;;  %v141_v17 = vpack.c.bf16 %v96_v15, %v95_v14  ;;  %v47_v18 = vld [vmem:[%s705_s1 + $0x60] sm:$0xff]  ;;  %v48_v19 = vld [vmem:[%s705_s1 + $0x68] sm:$0xff]  ;;  %v61_v23 = vld [vmem:[%s705_s1 + $0xd0] sm:$0xff] }
   0x6   :  { %319 = vmatpush3.bf16.msra.mxu0 %v118_v8  ;;  %v79_v20 = vld [vmem:[%s705_s1 + $0x160] sm:$0xff]  ;;  %v117_v21 = vpack.c.bf16 %v48_v19, %v47_v18  ;;  %v80_v22 = vld [vmem:[%s705_s1 + $0x168] sm:$0xff]  ;;  %v62_v24 = vld [vmem:[%s705_s1 + $0xd8] sm:$0xff] }
   0x7   :  { %353 = vmatpush3.bf16.msra.mxu1 %v134_v12  ;;  %320 = vmatprep.subr.bf16.mxu0 %v125_v16  ;;  %v133_v25 = vpack.c.bf16 %v80_v22, %v79_v20  ;;  %v124_v26 = vpack.c.bf16 %v62_v24, %v61_v23  ;;  %v93_v27 = vld [vmem:[%s705_s1 + $0x1d0] sm:$0xff]  ;;  %v94_v28 = vld [vmem:[%s705_s1 + $0x1d8] sm:$0xff]  ;;  %v59_v35 = vld [vmem:[%s705_s1 + $0xc0] sm:$0xff] }
   0x8   :  { %354 = vmatprep.subr.bf16.mxu1 %v141_v17  ;;  %v45_v29 = vld [vmem:[%s705_s1 + $0x50] sm:$0xff]  ;;  %v140_v30 = vpack.c.bf16 %v94_v28, %v93_v27  ;;  %v46_v31 = vld [vmem:[%s705_s1 + $0x58] sm:$0xff]  ;;  %v60_v36 = vld [vmem:[%s705_s1 + $0xc8] sm:$0xff] }
   0x9   :  { %v77_v32 = vld [vmem:[%s705_s1 + $0x150] sm:$0xff]  ;;  %v78_v33 = vld [vmem:[%s705_s1 + $0x158] sm:$0xff]  ;;  %v116_v34 = vpack.c.bf16 %v46_v31, %v45_v29  ;;  %v91_v37 = vld [vmem:[%s705_s1 + $0x1c0] sm:$0xff]  ;;  %v123_v39 = vpack.c.bf16 %v60_v36, %v59_v35 }
   0xa   :  { %321 = vmatpush3.bf16.msra.mxu0 %v117_v21  ;;  %v132_v38 = vpack.c.bf16 %v78_v33, %v77_v32  ;;  %v92_v40 = vld [vmem:[%s705_s1 + $0x1c8] sm:$0xff]  ;;  %v43_v41 = vld [vmem:[%s705_s1 + $0x40] sm:$0xff]  ;;  %v57_v46 = vld [vmem:[%s705_s1 + $0xb0] sm:$0xff] }
   0xb   :  { %355 = vmatpush3.bf16.msra.mxu1 %v133_v25  ;;  %322 = vmatprep.subr.bf16.mxu0 %v124_v26  ;;  %v44_v42 = vld [vmem:[%s705_s1 + $0x48] sm:$0xff]  ;;  %v139_v43 = vpack.c.bf16 %v92_v40, %v91_v37  ;;  %v75_v44 = vld [vmem:[%s705_s1 + $0x140] sm:$0xff]  ;;  %v58_v47 = vld [vmem:[%s705_s1 + $0xb8] sm:$0xff] }
   0xc   :  { %356 = vmatprep.subr.bf16.mxu1 %v140_v30  ;;  %v76_v45 = vld [vmem:[%s705_s1 + $0x148] sm:$0xff]  ;;  %v89_v48 = vld [vmem:[%s705_s1 + $0x1b0] sm:$0xff]  ;;  %v90_v49 = vld [vmem:[%s705_s1 + $0x1b8] sm:$0xff]  ;;  %v115_v50 = vpack.c.bf16 %v44_v42, %v43_v41  ;;  %v122_v52 = vpack.c.bf16 %v58_v47, %v57_v46 }
   0xd   :  { %v131_v51 = vpack.c.bf16 %v76_v45, %v75_v44  ;;  %v41_v53 = vld [vmem:[%s705_s1 + $0x30] sm:$0xff]  ;;  %v42_v54 = vld [vmem:[%s705_s1 + $0x38] sm:$0xff]  ;;  %v138_v56 = vpack.c.bf16 %v90_v49, %v89_v48  ;;  %v55_v58 = vld [vmem:[%s705_s1 + $0xa0] sm:$0xff] }
   0xe   :  { %323 = vmatpush3.bf16.msra.mxu0 %v116_v34  ;;  %v73_v55 = vld [vmem:[%s705_s1 + $0x130] sm:$0xff]  ;;  %v74_v57 = vld [vmem:[%s705_s1 + $0x138] sm:$0xff]  ;;  %v56_v59 = vld [vmem:[%s705_s1 + $0xa8] sm:$0xff]  ;;  %v114_v62 = vpack.c.bf16 %v42_v54, %v41_v53 }
   0xf   :  { %357 = vmatpush3.bf16.msra.mxu1 %v132_v38  ;;  %324 = vmatprep.subr.bf16.mxu0 %v123_v39  ;;  %v87_v60 = vld [vmem:[%s705_s1 + $0x1a0] sm:$0xff]  ;;  %v88_v61 = vld [vmem:[%s705_s1 + $0x1a8] sm:$0xff]  ;;  %v130_v63 = vpack.c.bf16 %v74_v57, %v73_v55  ;;  %v121_v0 = vpack.c.bf16 %v56_v59, %v55_v58  ;;  %v53_v6 = vld [vmem:[%s705_s1 + $0x90] sm:$0xff] }
  0x10   :  { %358 = vmatprep.subr.bf16.mxu1 %v139_v43  ;;  %v39_v1 = vld [vmem:[%s705_s1 + $0x20] sm:$0xff]  ;;  %v40_v2 = vld [vmem:[%s705_s1 + $0x28] sm:$0xff]  ;;  %v137_v4 = vpack.c.bf16 %v88_v61, %v87_v60  ;;  %v54_v7 = vld [vmem:[%s705_s1 + $0x98] sm:$0xff] }
  0x11   :  { %v71_v3 = vld [vmem:[%s705_s1 + $0x120] sm:$0xff]  ;;  %v72_v5 = vld [vmem:[%s705_s1 + $0x128] sm:$0xff]  ;;  %v85_v8 = vld [vmem:[%s705_s1 + $0x190] sm:$0xff]  ;;  %v113_v11 = vpack.c.bf16 %v40_v2, %v39_v1  ;;  %v120_v16 = vpack.c.bf16 %v54_v7, %v53_v6 }
  0x12   :  { %325 = vmatpush3.bf16.msra.mxu0 %v115_v50  ;;  %v86_v9 = vld [vmem:[%s705_s1 + $0x198] sm:$0xff]  ;;  %v37_v10 = vld [vmem:[%s705_s1 + $0x10] sm:$0xff]  ;;  %v129_v15 = vpack.c.bf16 %v72_v5, %v71_v3  ;;  %v51_v17 = vld [vmem:[%s705_s1 + $0x80] sm:$0xff] }
  0x13   :  { %359 = vmatpush3.bf16.msra.mxu1 %v131_v51  ;;  %326 = vmatprep.subr.bf16.mxu0 %v122_v52  ;;  %v38_v12 = vld [vmem:[%s705_s1 + $0x18] sm:$0xff]  ;;  %v69_v13 = vld [vmem:[%s705_s1 + $0x110] sm:$0xff]  ;;  %v16_v18 = vld [vmem:[%s706_s0 + $0x8] sm:$0xff]  ;;  %v136_v20 = vpack.c.bf16 %v86_v9, %v85_v8 }
  0x14   :  { %360 = vmatprep.subr.bf16.mxu1 %v138_v56  ;;  %v70_v14 = vld [vmem:[%s705_s1 + $0x118] sm:$0xff]  ;;  %v20_v19 = vld [vmem:[%s706_s0 + $0x28] sm:$0xff]  ;;  %v83_v25 = vld [vmem:[%s705_s1 + $0x180] sm:$0xff]  ;;  %v112_v28 = vpack.c.bf16 %v38_v12, %v37_v10 }
  0x15   :  { %v52_v21 = vld [vmem:[%s705_s1 + $0x88] sm:$0xff]  ;;  %v100_v22 = vpack.c.bf16 %v20_v19, %v16_v18  ;;  %v18_v23 = vld [vmem:[%s706_s0 + $0x18] sm:$0xff]  ;;  %v128_v29 = vpack.c.bf16 %v70_v14, %v69_v13  ;;  %v35_v31 = vld [vmem:[%s705_s1] sm:$0xff] }
  0x16   :  { %327 = vmatpush3.bf16.msra.mxu0 %v114_v62  ;;  %v22_v24 = vld [vmem:[%s706_s0 + $0x38] sm:$0xff]  ;;  %v84_v26 = vld [vmem:[%s705_s1 + $0x188] sm:$0xff]  ;;  %v119_v30 = vpack.c.bf16 %v52_v21, %v51_v17  ;;  %v67_v34 = vld [vmem:[%s705_s1 + $0x100] sm:$0xff] }
  0x17   :  { %361 = vmatpush3.bf16.msra.mxu1 %v130_v63  ;;  %328 = vmatprep.subr.bf16.mxu0 %v121_v0  ;;  %v102_v27 = vpack.c.bf16 %v22_v24, %v18_v23  ;;  %v36_v32 = vld [vmem:[%s705_s1 + $0x8] sm:$0xff]  ;;  %v135_v33 = vpack.c.bf16 %v84_v26, %v83_v25  ;;  %v15_v37 = vld [vmem:[%s706_s0] sm:$0xff]  ;;  %v17_v39 = vld [vmem:[%s706_s0 + $0x10] sm:$0xff] }
  0x18   :  { %362 = vmatprep.subr.bf16.mxu1 %v137_v4  ;;  %182 = vmatprep.mubr.bf16.mxu0 %v100_v22  ;;  %v68_v35 = vld [vmem:[%s705_s1 + $0x108] sm:$0xff]  ;;  %v111_v36 = vpack.c.bf16 %v36_v32, %v35_v31  ;;  %v19_v38 = vld [vmem:[%s706_s0 + $0x20] sm:$0xff]  ;;  %v21_v41 = vld [vmem:[%s706_s0 + $0x30] sm:$0xff] }
  0x19   :  { %238 = vmatprep.mubr.bf16.mxu1 %v102_v27  ;;  %v127_v40 = vpack.c.bf16 %v68_v35, %v67_v34  ;;  %v24_v42 = vld [vmem:[%s706_s0 + $0x48] sm:$0xff]  ;;  %v26_v44 = vld [vmem:[%s706_s0 + $0x58] sm:$0xff]  ;;  %v99_v46 = vpack.c.bf16 %v19_v38, %v15_v37  ;;  %v101_v47 = vpack.c.bf16 %v21_v41, %v17_v39  ;;  %v23_v50 = vld [vmem:[%s706_s0 + $0x40] sm:$0xff] }
  0x1a   :  { %329 = vmatpush3.bf16.msra.mxu0 %v113_v11  ;;  %v28_v43 = vld [vmem:[%s706_s0 + $0x68] sm:$0xff]  ;;  %v30_v45 = vld [vmem:[%s706_s0 + $0x78] sm:$0xff]  ;;  %v27_v51 = vld [vmem:[%s706_s0 + $0x60] sm:$0xff] }
  0x1b   :  { %363 = vmatpush3.bf16.msra.mxu1 %v129_v15  ;;  %330 = vmatprep.subr.bf16.mxu0 %v120_v16  ;;  %v104_v48 = vpack.c.bf16 %v28_v43, %v24_v42  ;;  %v106_v49 = vpack.c.bf16 %v30_v45, %v26_v44  ;;  %v25_v52 = vld [vmem:[%s706_s0 + $0x50] sm:$0xff]  ;;  %v32_v54 = vld [vmem:[%s706_s0 + $0x88] sm:$0xff]  ;;  %v34_v55 = vld [vmem:[%s706_s0 + $0x98] sm:$0xff]  ;;  %v103_v56 = vpack.c.bf16 %v27_v51, %v23_v50 }
  0x1c   :  { %364 = vmatprep.subr.bf16.mxu1 %v136_v20  ;;  %v29_v53 = vld [vmem:[%s706_s0 + $0x70] sm:$0xff]  ;;  %v108_v58 = vpack.c.bf16 %v32_v54, %v32_v54  ;;  %v110_v59 = vpack.c.bf16 %v34_v55, %v34_v55  ;;  %v31_v60 = vld [vmem:[%s706_s0 + $0x80] sm:$0xff] }
  0x1d   :  { %v105_v57 = vpack.c.bf16 %v29_v53, %v25_v52  ;;  %v33_v61 = vld [vmem:[%s706_s0 + $0x90] sm:$0xff]  ;;  %v107_v62 = vpack.c.bf16 %v31_v60, %v31_v60  ;;  %v317_v2 = vld [vmem:[%s707_s2] ss:$0 sm:$0xff] }
  0x1e   :  { %331 = vmatpush3.bf16.msra.mxu0 %v112_v28  ;;  %v109_v63 = vpack.c.bf16 %v33_v61, %v33_v61 }
  0x1f   :  { %365 = vmatpush3.bf16.msra.mxu1 %v128_v29  ;;  %332 = vmatprep.subr.bf16.mxu0 %v119_v30 }
  0x20   :  { %366 = vmatprep.subr.bf16.mxu1 %v135_v33 }
  0x22   :  { %333 = vmatpush3.bf16.msra.mxu0 %v111_v36 }
  0x23   :  { %367 = vmatpush3.bf16.msra.mxu1 %v127_v40 }
  0x25   :  { %183 = vmatmul.mubr.bf16.vlgmr.msra.gmra.mxu0 %v99_v46 }
  0x26   :  { %239 = vmatmul.mubr.bf16.vlgmr.msra.gmra.mxu1 %v101_v47  ;;  %190 = vmatprep.mubr.bf16.mxu0 %v104_v48 }
  0x27   :  { %246 = vmatprep.mubr.bf16.mxu1 %v106_v49 }
  0x2d   :  { %191 = vmatmul.mubr.bf16.gmra.mxu0 %v103_v56 }
  0x2e   :  { %247 = vmatmul.mubr.bf16.gmra.mxu1 %v105_v57  ;;  %198 = vmatprep.mubr.bf16.mxu0 %v108_v58 }
  0x2f   :  { %254 = vmatprep.mubr.bf16.mxu1 %v110_v59 }
  0x35   :  { %199 = vmatmul.mubr.bf16.gmra.mxu0 %v107_v62 }
  0x36   :  { %255 = vmatmul.mubr.bf16.gmra.mxu1 %v109_v63 }
  0xe5   :  { %v334_v0 = vpop.f32.mrf.mxu0 }
  0xe6   :  { %v368_v1 = vpop.f32.mrf.mxu1 }
  0xe7   :  { %v335_v3 = vpop.f32.mrf.mxu0 }
  0xe8   :  { %v336_v4 = vadd.f32 %v335_v3, %v334_v0  ;;  %v369_v5 = vpop.f32.mrf.mxu1 }
  0xe9   :  { %v337_v6 = vpop.f32.mrf.mxu0  ;;  %v370_v8 = vadd.f32 %v369_v5, %v368_v1 }
  0xea   :  { %v185_v7 = vadd.f32 %v336_v4, %v317_v2  ;;  %v371_v9 = vpop.f32.mrf.mxu1 }
  0xeb   :  { %v338_v10 = vpop.f32.mrf.mxu0 }
  0xec   :  { %v671_v11 = vadd.f32 %v370_v8, %v185_v7  ;;  %v339_v12 = vadd.f32 %v338_v10, %v337_v6  ;;  %v372_v13 = vpop.f32.mrf.mxu1 }
  0xed   :  { %v340_v14 = vpop.f32.mrf.mxu0  ;;  %v373_v17 = vadd.f32 %v372_v13, %v371_v9 }
  0xee   :  { %v262_v15 = vmul.f32 %v671_v11, %v671_v11  ;;  %v188_v16 = vadd.f32 %v339_v12, %v317_v2  ;;  %v374_v18 = vpop.f32.mrf.mxu1 }
  0xef   :  { %v341_v19 = vpop.f32.mrf.mxu0 }
  0xf0   :  { %v267_v20 = vmul.f32 %v262_v15, %v671_v11  ;;  %v676_v21 = vadd.f32 %v373_v17, %v188_v16  ;;  %v342_v22 = vadd.f32 %v341_v19, %v340_v14  ;;  %v375_v23 = vpop.f32.mrf.mxu1 }
  0xf1   :  { %v343_v24 = vpop.f32.mrf.mxu0  ;;  %v376_v28 = vadd.f32 %v375_v23, %v374_v18 }
  0xf2   :  { %v272_v25 = vmul.f32 0.044715, %v267_v20  ;;  %v263_v26 = vmul.f32 %v676_v21, %v676_v21  ;;  %v193_v27 = vadd.f32 %v342_v22, %v317_v2  ;;  %v377_v29 = vpop.f32.mrf.mxu1 }
  0xf3   :  { %v344_v30 = vpop.f32.mrf.mxu0 }
  0xf4   :  { %v277_v31 = vadd.f32 %v272_v25, %v671_v11  ;;  %v268_v32 = vmul.f32 %v263_v26, %v676_v21  ;;  %v249_v33 = vadd.f32 %v376_v28, %v193_v27  ;;  %v345_v34 = vadd.f32 %v344_v30, %v343_v24  ;;  %v378_v35 = vpop.f32.mrf.mxu1 }
  0xf5   :  { %v379_v36 = vadd.f32 %v378_v35, %v377_v29  ;;  %v346_v37 = vpop.f32.mrf.mxu0 }
  0xf6   :  { %v282_v38 = vmul.f32 0.7978846, %v277_v31  ;;  %v273_v39 = vmul.f32 0.044715, %v268_v32  ;;  %v264_v40 = vmul.f32 %v249_v33, %v249_v33  ;;  %v196_v41 = vadd.f32 %v345_v34, %v317_v2  ;;  %v380_v42 = vpop.f32.mrf.mxu1 }
  0xf7   :  { %v347_v43 = vpop.f32.mrf.mxu0 }
  0xf8   :  { %386 = vtanh.f32 %v282_v38  ;;  %v278_v44 = vadd.f32 %v273_v39, %v676_v21  ;;  %v269_v45 = vmul.f32 %v264_v40, %v249_v33  ;;  %v252_v46 = vadd.f32 %v379_v36, %v196_v41  ;;  %v381_v47 = vpop.f32.mrf.mxu1 }
  0xf9   :  { %v348_v48 = vadd.f32 %v347_v43, %v346_v37  ;;  %v349_v49 = vpop.f32.mrf.mxu0  ;;  %v382_v55 = vadd.f32 %v381_v47, %v380_v42 }
  0xfa   :  { %v283_v50 = vmul.f32 0.7978846, %v278_v44  ;;  %v274_v51 = vmul.f32 0.044715, %v269_v45  ;;  %v265_v52 = vmul.f32 %v252_v46, %v252_v46  ;;  %v383_v53 = vpop.f32.mrf.mxu1 }
  0xfb   :  { %v201_v54 = vadd.f32 %v348_v48, %v317_v2  ;;  %v350_v56 = vpop.f32.mrf.mxu0 }
  0xfc   :  { %388 = vtanh.f32 %v283_v50  ;;  %v279_v57 = vadd.f32 %v274_v51, %v249_v33  ;;  %v270_v58 = vmul.f32 %v265_v52, %v252_v46  ;;  %v384_v59 = vpop.f32.mrf.mxu1 }
  0xfd   :  { %v257_v60 = vadd.f32 %v382_v55, %v201_v54 }
  0xfe   :  { %v284_v61 = vmul.f32 0.7978846, %v279_v57  ;;  %v275_v62 = vmul.f32 0.044715, %v270_v58 }
  0xff   :  { %v266_v63 = vmul.f32 %v257_v60, %v257_v60 }
 0x100   :  { %390 = vtanh.f32 %v284_v61  ;;  %v280_v0 = vadd.f32 %v275_v62, %v252_v46 }
 0x101   :  { %v271_v1 = vmul.f32 %v266_v63, %v257_v60 }
 0x102   :  { %v285_v3 = vmul.f32 0.7978846, %v280_v0 }
 0x103   :  { %v276_v4 = vmul.f32 0.044715, %v271_v1 }
 0x104   :  { %392 = vtanh.f32 %v285_v3 }
 0x105   :  { %v387_v5 = vpop.eup %386  ;;  %v281_v6 = vadd.f32 %v276_v4, %v257_v60 }
 0x106   :  { %v292_v7 = vadd.f32 1.0, %v387_v5 }
 0x107   :  { %v286_v2 = vmul.f32 0.7978846, %v281_v6 }
 0x108   :  { %v297_v8 = vmul.f32 0.5, %v292_v7 }
 0x109   :  { %v389_v9 = vpop.eup %388  ;;  %394 = vtanh.f32 %v286_v2 }
 0x10a   :  { %v302_v10 = vmul.f32 %v297_v8, %v671_v11  ;;  %v293_v12 = vadd.f32 1.0, %v389_v9 }
 0x10c   :  { %308 = vst.msk [vmem:[%s708_s3] sm:$0xff] %vm307_vm0, %v302_v10  ;;  %v298_v13 = vmul.f32 0.5, %v293_v12 }
 0x10d   :  { %v391_v14 = vpop.eup %390 }
 0x10e   :  { %v303_v15 = vmul.f32 %v298_v13, %v676_v21  ;;  %v294_v16 = vadd.f32 1.0, %v391_v14 }
 0x110   :  { %309 = vst.msk [vmem:[%s708_s3 + $0x8] sm:$0xff] %vm307_vm0, %v303_v15  ;;  %v299_v17 = vmul.f32 0.5, %v294_v16 }
 0x111   :  { %v393_v18 = vpop.eup %392 }
 0x112   :  { %v304_v19 = vmul.f32 %v299_v17, %v249_v33  ;;  %v295_v11 = vadd.f32 1.0, %v393_v18 }
 0x114   :  { %310 = vst.msk [vmem:[%s708_s3 + $0x10] sm:$0xff] %vm307_vm0, %v304_v19  ;;  %v300_v20 = vmul.f32 0.5, %v295_v11 }
 0x116   :  { %v395_v22 = vpop.eup %394  ;;  %v305_v23 = vmul.f32 %v300_v20, %v252_v46 }
 0x117   :  { %v296_v24 = vadd.f32 1.0, %v395_v22 }
 0x118   :  { %311 = vst.msk [vmem:[%s708_s3 + $0x18] sm:$0xff] %vm307_vm0, %v305_v23 }
 0x119   :  { %v301_v21 = vmul.f32 0.5, %v296_v24 }
 0x11b   :  { %v306_v25 = vmul.f32 %v301_v21, %v257_v60 }
 0x11d   :  { %312 = vst.msk [vmem:[%s708_s3 + $0x20] sm:$0xff] %vm307_vm0, %v306_v25 }

// kernel: forward.22
= control target key start
LH: loop header
LB: loop body
LE: loop exit
PB: predicated region body
PF: predicated region fallthrough
CT: control target
= control target key end

     0   :  { %vm34_vm0 = vcmask 523264   ;;  %vm47_vm1 = vcmask 521216   ;;  %s236_s0 = inlined_call_operand.vmem [shape: f32[38,64], index: 0, kind: input, shape index: {}]   ;;  %s237_s1 = inlined_call_operand.vmem [shape: f32[38,64], index: 1, kind: input, shape index: {}]   ;;  %s238_s2 = inlined_call_operand.vmem [shape: f32[1,64], index: 2, kind: input, shape index: {}]   ;;  %s239_s3 = inlined_call_operand.vmem [shape: f32[1,64], index: 3, kind: input, shape index: {}]   ;;  %s240_s4 = inlined_call_operand.vmem [shape: f32[38,64], index: 4, kind: output, shape index: {}]  }
   0x1   :  { %v17_v0 = vld [vmem:[%s236_s0] sm:$0xff]  ;;  %v19_v2 = vld [vmem:[%s236_s0 + $0x10] sm:$0xff]  ;;  %v18_v5 = vld [vmem:[%s236_s0 + $0x8] sm:$0xff] }
   0x2   :  { %v22_v1 = vld [vmem:[%s237_s1] sm:$0xff]  ;;  %v24_v4 = vld [vmem:[%s237_s1 + $0x10] sm:$0xff]  ;;  %v23_v6 = vld [vmem:[%s237_s1 + $0x8] sm:$0xff] }
   0x3   :  { %v27_v3 = vadd.f32 %v22_v1, %v17_v0  ;;  %v29_v7 = vadd.f32 %v24_v4, %v19_v2  ;;  %v28_v8 = vadd.f32 %v23_v6, %v18_v5  ;;  %v20_v9 = vld [vmem:[%s236_s0 + $0x18] sm:$0xff]  ;;  %v21_v11 = vld [vmem:[%s236_s0 + $0x20] sm:$0x3f] }
   0x4   :  { %v25_v10 = vld [vmem:[%s237_s1 + $0x18] sm:$0xff]  ;;  %v26_v14 = vld [vmem:[%s237_s1 + $0x20] sm:$0x3f] }
   0x5   :  { %v35_v12 = vsel %vm34_vm0, %v27_v3, 0.0  ;;  %v30_v13 = vadd.f32 %v25_v10, %v20_v9  ;;  %v41_v15 = vsel %vm34_vm0, %v29_v7, 0.0  ;;  %v38_v16 = vsel %vm34_vm0, %v28_v8, 0.0  ;;  %v133_v61 = vld [vmem:[%s238_s2] ss:$0 sm:$0xff] }
   0x6   :  { %36 = vadd.xlane.f32.xlu0 %v35_v12  ;;  %42 = vadd.xlane.f32.xlu1 %v41_v15  ;;  %v31_v17 = vadd.f32 %v26_v14, %v21_v11  ;;  %v134_v63 = vld [vmem:[%s239_s3] ss:$0 sm:$0xff] }
   0x7   :  { %v44_v18 = vsel %vm34_vm0, %v30_v13, 0.0 }
   0x8   :  { %v48_v19 = vsel %vm47_vm1, %v31_v17, 0.0 }
   0xa   :  { %39 = vadd.xlane.f32.xlu0 %v38_v16  ;;  %45 = vadd.xlane.f32.xlu1 %v44_v18 }
   0xe   :  { %49 = vadd.xlane.f32.xlu0 %v48_v19 }
  0x8f   :  { %v37_v20 = vpop.xlane.xlu0 %36  ;;  %v43_v22 = vpop.xlane.xlu1 %42 }
  0x90   :  { %v52_v21 = vmul.f32 0.015625, %v37_v20  ;;  %v54_v23 = vmul.f32 0.015625, %v43_v22 }
  0x92   :  { %v57_v24 = vsub.f32 %v27_v3, %v52_v21  ;;  %v59_v25 = vsub.f32 %v29_v7, %v54_v23 }
  0x93   :  { %v40_v26 = vpop.xlane.xlu0 %39  ;;  %v46_v28 = vpop.xlane.xlu1 %45 }
  0x94   :  { %v53_v27 = vmul.f32 0.015625, %v40_v26  ;;  %v62_v29 = vmul.f32 %v57_v24, %v57_v24  ;;  %v55_v30 = vmul.f32 0.015625, %v46_v28  ;;  %v64_v31 = vmul.f32 %v59_v25, %v59_v25 }
  0x96   :  { %v58_v32 = vsub.f32 %v28_v8, %v53_v27  ;;  %v67_v33 = vsel %vm34_vm0, %v62_v29, 0.0  ;;  %v60_v34 = vsub.f32 %v30_v13, %v55_v30  ;;  %v73_v37 = vsel %vm34_vm0, %v64_v31, 0.0 }
  0x97   :  { %68 = vadd.xlane.f32.xlu1 %v67_v33  ;;  %v50_v35 = vpop.xlane.xlu0 %49 }
  0x98   :  { %v56_v36 = vmul.f32 0.015625, %v50_v35  ;;  %v63_v38 = vmul.f32 %v58_v32, %v58_v32  ;;  %v65_v39 = vmul.f32 %v60_v34, %v60_v34 }
  0x9a   :  { %v61_v40 = vsub.f32 %v31_v17, %v56_v36  ;;  %v70_v41 = vsel %vm34_vm0, %v63_v38, 0.0  ;;  %v76_v42 = vsel %vm34_vm0, %v65_v39, 0.0 }
  0x9b   :  { %74 = vadd.xlane.f32.xlu1 %v73_v37  ;;  %71 = vadd.xlane.f32.xlu0 %v70_v41 }
  0x9c   :  { %v66_v43 = vmul.f32 %v61_v40, %v61_v40 }
  0x9e   :  { %v79_v44 = vsel %vm47_vm1, %v66_v43, 0.0 }
  0x9f   :  { %77 = vadd.xlane.f32.xlu0 %v76_v42  ;;  %80 = vadd.xlane.f32.xlu1 %v79_v44 }
 0x120   :  { %v69_v45 = vpop.xlane.xlu1 %68 }
 0x121   :  { %v82_v46 = vmul.f32 0.015625, %v69_v45 }
 0x123   :  { %v87_v47 = vadd.f32 1e-05, %v82_v46 }
 0x124   :  { %v75_v48 = vpop.xlane.xlu1 %74  ;;  %v72_v49 = vpop.xlane.xlu0 %71 }
 0x125   :  { %135 = vrsqrt.f32 %v87_v47  ;;  %v84_v50 = vmul.f32 0.015625, %v75_v48  ;;  %v83_v51 = vmul.f32 0.015625, %v72_v49 }
 0x127   :  { %v89_v52 = vadd.f32 1e-05, %v84_v50  ;;  %v88_v53 = vadd.f32 1e-05, %v83_v51 }
 0x128   :  { %v81_v54 = vpop.xlane.xlu1 %80  ;;  %v78_v55 = vpop.xlane.xlu0 %77 }
 0x129   :  { %137 = vrsqrt.f32 %v89_v52  ;;  %v86_v56 = vmul.f32 0.015625, %v81_v54  ;;  %v85_v57 = vmul.f32 0.015625, %v78_v55 }
 0x12a   :  { %139 = vrsqrt.f32 %v88_v53 }
 0x12b   :  { %v91_v58 = vadd.f32 1e-05, %v86_v56  ;;  %v90_v59 = vadd.f32 1e-05, %v85_v57 }
 0x12d   :  { %141 = vrsqrt.f32 %v91_v58 }
 0x12e   :  { %143 = vrsqrt.f32 %v90_v59 }
 0x132   :  { %v136_v60 = vpop.eup %135 }
 0x133   :  { %v97_v62 = vmul.f32 %v136_v60, %v57_v24 }
 0x135   :  { %v108_v0 = vmul.f32 %v133_v61, %v97_v62 }
 0x136   :  { %v138_v1 = vpop.eup %137 }
 0x137   :  { %v140_v2 = vpop.eup %139  ;;  %v119_v3 = vadd.f32 %v134_v63, %v108_v0  ;;  %v99_v4 = vmul.f32 %v138_v1, %v59_v25 }
 0x138   :  { %v98_v5 = vmul.f32 %v140_v2, %v58_v32 }
 0x139   :  { %124 = vst.msk [vmem:[%s240_s4] sm:$0xff] %vm34_vm0, %v119_v3  ;;  %v110_v6 = vmul.f32 %v133_v61, %v99_v4 }
 0x13a   :  { %v142_v7 = vpop.eup %141  ;;  %v109_v8 = vmul.f32 %v133_v61, %v98_v5 }
 0x13b   :  { %v144_v9 = vpop.eup %143  ;;  %v121_v10 = vadd.f32 %v134_v63, %v110_v6  ;;  %v101_v11 = vmul.f32 %v142_v7, %v61_v40 }
 0x13c   :  { %v120_v12 = vadd.f32 %v134_v63, %v109_v8  ;;  %v100_v13 = vmul.f32 %v144_v9, %v60_v34 }
 0x13d   :  { %126 = vst.msk [vmem:[%s240_s4 + $0x10] sm:$0xff] %vm34_vm0, %v121_v10  ;;  %v112_v14 = vmul.f32 %v133_v61, %v101_v11 }
 0x13e   :  { %125 = vst.msk [vmem:[%s240_s4 + $0x8] sm:$0xff] %vm34_vm0, %v120_v12  ;;  %v111_v15 = vmul.f32 %v133_v61, %v100_v13 }
 0x13f   :  { %v123_v16 = vadd.f32 %v134_v63, %v112_v14 }
 0x140   :  { %v122_v17 = vadd.f32 %v134_v63, %v111_v15 }
 0x141   :  { %128 = vst.msk [vmem:[%s240_s4 + $0x20] sm:$0x3f] %vm47_vm1, %v123_v16 }
 0x142   :  { %127 = vst.msk [vmem:[%s240_s4 + $0x18] sm:$0xff] %vm34_vm0, %v122_v17 }

// kernel: forward.23
= control target key start
LH: loop header
LB: loop body
LE: loop exit
PB: predicated region body
PF: predicated region fallthrough
CT: control target
= control target key end

     0   :  { %v157_v3 = vmov 0   ;;  %vm59_vm0 = vcmask 523264   ;;  %v49_v33 = vlaneseq  ;;  %vm139_vm1 = vcmask 521216   ;;  %s281_s1 = inlined_call_operand.vmem [shape: f32[64,192], index: 1, kind: input, shape index: {}]   ;;  %s282_s0 = inlined_call_operand.vmem [shape: f32[38,64], index: 0, kind: input, shape index: {}]   ;;  %s283_s2 = inlined_call_operand.vmem [shape: f32[1,192], index: 2, kind: input, shape index: {}]   ;;  %s284_s3 = inlined_call_operand.vmem [shape: f32[38,192], index: 3, kind: output, shape index: {}]  }
   0x1   :  { %v33_v0 = vld [vmem:[%s281_s1 + $0x68] sm:$0xff]  ;;  %v35_v1 = vld [vmem:[%s281_s1 + $0x78] sm:$0xff]  ;;  %v32_v2 = vld [vmem:[%s281_s1 + $0x60] sm:$0xff]  ;;  %101 = vmatprep.mubr.bf16.mxu0 %v157_v3  ;;  %111 = vmatprep.mubr.bf16.mxu1 %v157_v3 }
   0x2   :  { %v46_v4 = vpack.c.bf16 %v35_v1, %v33_v0  ;;  %v34_v5 = vld [vmem:[%s281_s1 + $0x70] sm:$0xff]  ;;  %v29_v6 = vld [vmem:[%s281_s1 + $0x48] sm:$0xff]  ;;  %v31_v7 = vld [vmem:[%s281_s1 + $0x58] sm:$0xff]  ;;  %v50_v34 = vshrl.u32 %v49_v33, 7 }
   0x3   :  { %v45_v8 = vpack.c.bf16 %v34_v5, %v32_v2  ;;  %v44_v9 = vpack.c.bf16 %v31_v7, %v29_v6  ;;  %v28_v10 = vld [vmem:[%s281_s1 + $0x40] sm:$0xff]  ;;  %v30_v11 = vld [vmem:[%s281_s1 + $0x50] sm:$0xff]  ;;  %v25_v12 = vld [vmem:[%s281_s1 + $0x28] sm:$0xff] }
   0x4   :  { %77 = vmatprep.subr.bf16.mxu0 %v46_v4  ;;  %148 = vmatprep.subr.bf16.mxu1 %v46_v4  ;;  %v27_v13 = vld [vmem:[%s281_s1 + $0x38] sm:$0xff]  ;;  %v43_v14 = vpack.c.bf16 %v30_v11, %v28_v10  ;;  %v24_v16 = vld [vmem:[%s281_s1 + $0x20] sm:$0xff]  ;;  %v26_v17 = vld [vmem:[%s281_s1 + $0x30] sm:$0xff]  ;;  %v51_v35 = vsub.s32 0, %v50_v34  ;;  %v55_v37 = vsub.s32 1, %v50_v34 }
   0x5   :  { %78 = vmatpush1.bf16.msra.mxu0 %v45_v8  ;;  %152 = vmatpush1.bf16.msra.mxu1 %v45_v8  ;;  %v42_v15 = vpack.c.bf16 %v27_v13, %v25_v12  ;;  %v21_v18 = vld [vmem:[%s281_s1 + $0x8] sm:$0xff]  ;;  %v23_v19 = vld [vmem:[%s281_s1 + $0x18] sm:$0xff]  ;;  %v41_v20 = vpack.c.bf16 %v26_v17, %v24_v16  ;;  %v20_v22 = vld [vmem:[%s281_s1] sm:$0xff] }
   0x6   :  { %79 = vmatprep.subr.bf16.mxu0 %v44_v9  ;;  %149 = vmatprep.subr.bf16.mxu1 %v44_v9  ;;  %v40_v21 = vpack.c.bf16 %v23_v19, %v21_v18  ;;  %v22_v23 = vld [vmem:[%s281_s1 + $0x10] sm:$0xff]  ;;  %v15_v24 = vld [vmem:[%s282_s0] sm:$0xff]  ;;  %v16_v26 = vld [vmem:[%s282_s0 + $0x8] sm:$0xff] }
   0x7   :  { %v39_v25 = vpack.c.bf16 %v22_v23, %v20_v22  ;;  %v17_v27 = vld [vmem:[%s282_s0 + $0x10] sm:$0xff]  ;;  %v18_v28 = vld [vmem:[%s282_s0 + $0x18] sm:$0xff]  ;;  %v36_v29 = vpack.c.bf16 %v16_v26, %v15_v24  ;;  %v19_v31 = vld [vmem:[%s282_s0 + $0x20] sm:$0x3f] }
   0x8   :  { %v37_v30 = vpack.c.bf16 %v18_v28, %v17_v27  ;;  %v38_v32 = vpack.c.bf16 %v19_v31, %v19_v31  ;;  %v47_v36 = vld [vmem:[%s283_s2] sm:$0x3] }
   0x9   :  { %80 = vmatpush1.bf16.msra.mxu0 %v43_v14  ;;  %153 = vmatpush1.bf16.msra.mxu1 %v43_v14  ;;  %v52_v38 = vrot.slane %v47_v36, %v51_v35  ;;  %v56_v39 = vrot.slane %v47_v36, %v55_v37 }
   0xa   :  { %81 = vmatprep.subr.bf16.mxu0 %v42_v15  ;;  %150 = vmatprep.subr.bf16.mxu1 %v42_v15 }
   0xd   :  { %82 = vmatpush1.bf16.msra.mxu0 %v41_v20  ;;  %154 = vmatpush1.bf16.msra.mxu1 %v41_v20 }
   0xe   :  { %83 = vmatprep.subr.bf16.mxu0 %v40_v21  ;;  %151 = vmatprep.subr.bf16.mxu1 %v40_v21 }
  0x11   :  { %84 = vmatpush1.bf16.msra.mxu0 %v39_v25  ;;  %155 = vmatpush1.bf16.msra.mxu1 %v39_v25 }
  0x14   :  { %145 = vmatmul.mubr.msk.bf16.vlgmr.msra.gmra.mxu0 %vm59_vm0, %v36_v29  ;;  %146 = vmatmul.mubr.msk.bf16.vlgmr.msra.gmra.mxu1 %vm59_vm0, %v37_v30 }
  0x15   :  { %121 = vmatprep.mubr.bf16.mxu1 %v157_v3 }
  0x1c   :  { %147 = vmatmul.mubr.msk.bf16.gmra.mxu1 %vm59_vm0, %v38_v32 }
  0xd4   :  { %v103_v40 = vpop.f32.mrf.mxu0  ;;  %v113_v41 = vpop.f32.mrf.mxu1 }
  0xd5   :  { %v104_v42 = vadd.f32 %v103_v40, %v52_v38  ;;  %v114_v43 = vadd.f32 %v113_v41, %v52_v38 }
  0xd6   :  { %v105_v44 = vpop.f32.mrf.mxu0  ;;  %v115_v45 = vpop.f32.mrf.mxu1 }
  0xd7   :  { %130 = vst [vmem:[%s284_s3] sm:$0xff] %v104_v42  ;;  %134 = vst [vmem:[%s284_s3 + $0x20] sm:$0xff] %v114_v43  ;;  %v106_v46 = vadd.f32 %v105_v44, %v56_v39  ;;  %v116_v47 = vadd.f32 %v115_v45, %v56_v39 }
  0xd8   :  { %v107_v48 = vpop.f32.mrf.mxu0  ;;  %v117_v49 = vpop.f32.mrf.mxu1 }
  0xd9   :  { %131 = vst.msk [vmem:[%s284_s3 + $0x8] sm:$0xff] %vm59_vm0, %v106_v46  ;;  %135 = vst.msk [vmem:[%s284_s3 + $0x28] sm:$0xff] %vm59_vm0, %v116_v47  ;;  %v108_v50 = vadd.f32 %v107_v48, %v52_v38  ;;  %v118_v51 = vadd.f32 %v117_v49, %v52_v38 }
  0xda   :  { %v109_v52 = vpop.f32.mrf.mxu0  ;;  %v119_v53 = vpop.f32.mrf.mxu1 }
  0xdb   :  { %132 = vst [vmem:[%s284_s3 + $0x10] sm:$0xff] %v108_v50  ;;  %136 = vst [vmem:[%s284_s3 + $0x30] sm:$0xff] %v118_v51  ;;  %v110_v54 = vadd.f32 %v109_v52, %v56_v39  ;;  %v120_v55 = vadd.f32 %v119_v53, %v56_v39 }
  0xdc   :  { %v123_v56 = vpop.f32.mrf.mxu1 }
  0xdd   :  { %133 = vst.msk [vmem:[%s284_s3 + $0x18] sm:$0xff] %vm59_vm0, %v110_v54  ;;  %137 = vst.msk [vmem:[%s284_s3 + $0x38] sm:$0xff] %vm59_vm0, %v120_v55  ;;  %v124_v57 = vadd.f32 %v123_v56, %v52_v38 }
  0xde   :  { %v125_v58 = vpop.f32.mrf.mxu1 }
  0xdf   :  { %138 = vst [vmem:[%s284_s3 + $0x40] sm:$0x3f] %v124_v57  ;;  %v126_v59 = vadd.f32 %v125_v58, %v56_v39 }
  0xe0   :  { %v127_v60 = vpop.f32.mrf.mxu1 }
  0xe1   :  { %140 = vst.msk [vmem:[%s284_s3 + $0x48] sm:$0x3f] %vm139_vm1, %v126_v59 }
  0xe2   :  { %v128_v61 = vpop.f32.mrf.mxu1 }

// kernel: forward.24
= control target key start
LH: loop header
LB: loop body
LE: loop exit
PB: predicated region body
PF: predicated region fallthrough
CT: control target
= control target key end

     0   :  { %s550_s12 = smov 0   ;;  %s590_s0 = inlined_call_operand.vmem [shape: f32[8,19,16], index: 0, kind: input, shape index: {}]   ;;  %s591_s1 = inlined_call_operand.vmem [shape: f32[8,16,19], index: 1, kind: input, shape index: {}]   ;;  %s592_s2 = inlined_call_operand.vmem [shape: f32[8,19,16], index: 2, kind: input, shape index: {}]   ;;  %s593_s3 = inlined_call_operand.vmem [shape: f32[8,19,16], index: 3, kind: output, shape index: {}]  }
   0x1 LB: > { %s461_s13 = sadd.s32 4294967295, %s527_s12   ;;  %p465_p0 = scmp.ge.s32.totalorder %s527_s12, 1  ;;  %s527_s12 = sphi %s550_s12, %s13_s12  }
   0x2   : > { %p157_p1 = scmp.lt.s32.totalorder %s527_s12, 9 }
   0x4   : > { %p158_p2 = pnand %p465_p0, %p157_p1 }
   0x5   : > { %p191_p3 = scmp.lt.s32.totalorder (!%p158_p2), %s461_s13, 7 }
   0x6   : > { %161 = sbr.rel (%p158_p2) target bundleno = 736 (0x2e0), region = 32 }
   0xb   : > { %s595_s13 = smov (!%p191_p3, %s461_s13), 7  ;;  %vm223_vm0 = vcmask 130048   ;;  %vm285_vm1 = vcmask 149504   ;;  %vm278_vm2 = vcmask 154624   ;;  %vm323_vm3 = vcmask 1040384  }
   0xc   : > { %s558_s14 = smul.u32 24, %s595_s13  ;;  %s477_s15 = sshll.u32 %s595_s13, 4  ;;  %vm324_vm4 = vcmask 1041408   ;;  %v529_v31 = vmov 65535   ;;  %vm380_vm5 = vcmask 124928  }
   0xd   : > { %s200_s18 = scalar_lea.vmem %s591_s1, %s477_s15  ;;  %v325_v32 = vsel %vm323_vm3, 4294967295, %v529_v31 }
   0xe   : > { %v215_v0 = vld [vmem:[%s200_s18] sm:$0xff]  ;;  %v216_v1 = vld [vmem:[%s200_s18 + $0x8] sm:$0xff]  ;;  %s195_s21 = scalar_lea.vmem %s590_s0, %s558_s14  ;;  %s205_s24 = scalar_lea.vmem %s592_s2, %s558_s14  ;;  %v326_v36 = vsel %vm324_vm4, %v325_v32, 0 }
   0xf   : > { %v222_v2 = vpack.c.bf16 %v216_v1, %v215_v0  ;;  %v212_v3 = vld [vmem:[%s195_s21] sm:$0xff]  ;;  %v213_v4 = vld [vmem:[%s195_s21 + $0x8] sm:$0xff]  ;;  %v214_v5 = vld [vmem:[%s195_s21 + $0x10] sm:$0x7]  ;;  %s210_s27 = scalar_lea.vmem %s593_s3, %s558_s14 }
  0x10   : > { %v220_v6 = vpack.c.bf16 %v213_v4, %v212_v3  ;;  %v221_v7 = vpack.c.bf16 %v214_v5, %v214_v5  ;;  %v219_v30 = vld [vmem:[%s205_s24 + $0x10] sm:$0x7]  ;;  %v217_v33 = vld [vmem:[%s205_s24] sm:$0xff]  ;;  %v218_v34 = vld [vmem:[%s205_s24 + $0x8] sm:$0xff] }
  0x11   : > { %485 = vmatprep.subr.bf16.mxu0 %v222_v2  ;;  %v316_v35 = vpack.c.bf16 %v219_v30, %v219_v30  ;;  %v315_v38 = vpack.c.bf16 %v218_v34, %v217_v33 }
  0x12   : > { %486 = vmatpush3.bf16.msra.mxu0 %v222_v2  ;;  %487 = vmatprep.mubr.msk.bf16.mxu0 %vm223_vm0, %v220_v6 }
  0x13   : > { %v328_v37 = vand.u32 %v326_v36, %v316_v35 }
  0x15   : > { %488 = vmatmul.mubr.msk.bf16.vlgmr.msra.gmra.mxu0 %vm223_vm0, %v221_v7  ;;  %491 = vmatprep.subr.bf16.mxu1 %v328_v37 }
  0x16   : > { %492 = vmatpush3.bf16.msra.mxu1 %v328_v37 }
  0x17   : > { %493 = vmatprep.subr.bf16.mxu1 %v315_v38 }
  0x1a   : > { %494 = vmatpush3.bf16.msra.mxu1 %v315_v38 }
  0xd5   : > { %v489_v8 = vpop.f32.mrf.mxu0 }
  0xd6   : > { %v286_v9 = vsel %vm285_vm1, %v489_v8, -inf }
  0xd7   : > { %287 = vmax.xlane.f32.xlu1 %v286_v9  ;;  %v264_v10 = vpop.f32.mrf.mxu0 }
  0xd8   : > { %v279_v11 = vsel %vm278_vm2, %v264_v10, -inf }
  0xd9   : > { %280 = vmax.xlane.f32.xlu0 %v279_v11  ;;  %v490_v12 = vpop.f32.mrf.mxu0 }
  0xdb   : > { %v267_v13 = vpop.f32.mrf.mxu0 }
  0xdc   : > { %v282_v14 = vsel %vm278_vm2, %v267_v13, -inf }
  0xdd   : > { %283 = vmax.xlane.f32.xlu0 %v282_v14 }
 0x160   : > { %v288_v15 = vpop.xlane.xlu1 %287 }
 0x161   : > { %v291_v16 = vsub.f32 %v489_v8, %v288_v15 }
 0x162   : > { %v281_v17 = vpop.xlane.xlu0 %280 }
 0x163   : > { %v289_v18 = vsub.f32 %v264_v10, %v281_v17  ;;  %v296_v19 = vmul.f32 1.442695, %v291_v16 }
 0x165   : > { %v292_v20 = vmul.f32 1.442695, %v289_v18 }
 0x166   : > { %v284_v21 = vpop.xlane.xlu0 %283 }
 0x167   : > { %509 = vpow2.f32 %v292_v20  ;;  %v290_v22 = vsub.f32 %v267_v13, %v284_v21 }
 0x168   : > { %511 = vpow2.f32 %v296_v19 }
 0x169   : > { %v294_v23 = vmul.f32 1.442695, %v290_v22 }
 0x16b   : > { %513 = vpow2.f32 %v294_v23 }
 0x174   : > { %v510_v24 = vpop.eup %509 }
 0x175   : > { %v298_v25 = vsel %vm278_vm2, %v510_v24, 0.0  ;;  %v512_v26 = vpop.eup %511 }
 0x176   : > { %299 = vadd.xlane.f32.xlu1 %v298_v25  ;;  %v304_v28 = vsel %vm285_vm1, %v512_v26, 0.0 }
 0x178   : > { %v514_v27 = vpop.eup %513 }
 0x179   : > { %v301_v29 = vsel %vm278_vm2, %v514_v27, 0.0 }
 0x17a   : > { %305 = vadd.xlane.f32.xlu1 %v304_v28  ;;  %302 = vadd.xlane.f32.xlu0 %v301_v29 }
 0x1ff   : > { %v300_v39 = vpop.xlane.xlu1 %299 }
 0x200   : > { %515 = vrcp.f32 %v300_v39 }
 0x203   : > { %v306_v40 = vpop.xlane.xlu1 %305  ;;  %v303_v41 = vpop.xlane.xlu0 %302 }
 0x204   : > { %517 = vrcp.f32 %v306_v40 }
 0x205   : > { %519 = vrcp.f32 %v303_v41 }
 0x20d   : > { %v516_v42 = vpop.eup %515 }
 0x20e   : > { %v310_v46 = vmul.f32 %v516_v42, %v510_v24 }
 0x211   : > { %v518_v43 = vpop.eup %517 }
 0x212   : > { %v520_v44 = vpop.eup %519  ;;  %v312_v45 = vmul.f32 %v518_v43, %v512_v26 }
 0x213   : > { %v311_v47 = vmul.f32 %v520_v44, %v514_v27 }
 0x214   : > { %v314_v48 = vpack.c.bf16 %v312_v45, %v312_v45 }
 0x215   : > { %v313_v49 = vpack.c.bf16 %v311_v47, %v310_v46 }
 0x217   : > { %495 = vmatprep.mubr.msk.bf16.mxu1 %vm278_vm2, %v313_v49 }
 0x218   : > { %496 = vmatmul.mubr.msk.bf16.vlgmr.msra.gmra.mxu1 %vm278_vm2, %v314_v48 }
 0x2d8   : > { %v497_v50 = vpop.f32.mrf.mxu1 }
 0x2d9   : > { %381 = vst.msk [vmem:[%s210_s27 + $0x10] sm:$0x7] %vm380_vm5, %v497_v50 }
 0x2da   : > { %v364_v51 = vpop.f32.mrf.mxu1 }
 0x2db   : > { %378 = vst.msk [vmem:[%s210_s27] sm:$0xff] %vm223_vm0, %v364_v51 }
 0x2dc   : > { %v498_v52 = vpop.f32.mrf.mxu1 }
 0x2de   : > { %v367_v53 = vpop.f32.mrf.mxu1 }
 0x2df   : > { %379 = vst.msk [vmem:[%s210_s27 + $0x8] sm:$0xff] %vm223_vm0, %v367_v53 }
 0x2e0 PF: > { %s13_s12 = sadd.s32 1, %s527_s12  }
 0x2e1   : > { %p10_p4 = scmp.ge.s32.totalorder %s13_s12, 10  }
 0x2e3   :  { %12 = sbr.rel (!%p10_p4) target bundleno = 1 (0x1), region = 68 }

// kernel: forward.31
= control target key start
LH: loop header
LB: loop body
LE: loop exit
PB: predicated region body
PF: predicated region fallthrough
CT: control target
= control target key end

     0   :  { %v400_v3 = vmov 0.0   ;;  %vm401_vm0 = vmmov 0   ;;  %s517_s0 = inlined_call_operand.vmem [shape: f32[38,64], index: 0, kind: input, shape index: {}]   ;;  %s518_s1 = inlined_call_operand.vmem [shape: f32[64,32], index: 1, kind: input, shape index: {}]   ;;  %s519_s2 = inlined_call_operand.vmem [shape: f32[1,32], index: 2, kind: input, shape index: {}]   ;;  %s520_s3 = inlined_call_operand.vmem [shape: f32[32,7], index: 3, kind: input, shape index: {}]   ;;  %s521_s4 = inlined_call_operand.vmem [shape: f32[1,7], index: 4, kind: input, shape index: {}]   ;;  %s522_s5 = inlined_call_operand.hbm [shape: f32[2,7], index: 5, kind: output, shape index: {}]  }
   0x1   :  { %v33_v0 = vld [vmem:[%s518_s1 + $0x30] sm:$0xff]  ;;  %v34_v1 = vld [vmem:[%s518_s1 + $0x38] sm:$0xff]  ;;  %v31_v2 = vld [vmem:[%s518_s1 + $0x20] sm:$0xff]  ;;  %331 = vmatprep.subr.bf16.mxu0 %v400_v3  ;;  %339 = vmatprep.mubr.msk.bf16.mxu0 %vm401_vm0, %v400_v3 }
   0x2   :  { %v41_v4 = vpack.c.bf16 %v34_v1, %v33_v0  ;;  %v32_v5 = vld [vmem:[%s518_s1 + $0x28] sm:$0xff]  ;;  %351 = vmatprep.subr.mxu1 %v400_v3  ;;  %361 = vmatprep.mubr.msk.f32.mxu1 %vm401_vm0, %v400_v3  ;;  %v29_v7 = vld [vmem:[%s518_s1 + $0x10] sm:$0xff]  ;;  %v30_v8 = vld [vmem:[%s518_s1 + $0x18] sm:$0xff] }
   0x3   :  { %v40_v6 = vpack.c.bf16 %v32_v5, %v31_v2 }
   0x4   :  { %332 = vmatpush3.bf16.msra.mxu0 %v41_v4 }
   0x5   :  { %333 = vmatprep.subr.bf16.mxu0 %v400_v3 }
   0x6   :  { %10 = vsyncpa [#allocation3], 0  ;;  %v39_v9 = vpack.c.bf16 %v30_v8, %v29_v7  ;;  %v27_v10 = vld [vmem:[%s518_s1] sm:$0xff]  ;;  %v28_v11 = vld [vmem:[%s518_s1 + $0x8] sm:$0xff]  ;;  %vm49_vm1 = vcmask 523264   ;;  %v115_v23 = vlaneseq  ;;  %vm130_vm2 = vcmask 1045504  }
   0x7   :  { %v38_v12 = vpack.c.bf16 %v28_v11, %v27_v10  ;;  %v22_v13 = vld [vmem:[%s517_s0] sm:$0xff]  ;;  %v23_v14 = vld [vmem:[%s517_s0 + $0x8] sm:$0xff]  ;;  %v24_v16 = vld [vmem:[%s517_s0 + $0x10] sm:$0xff]  ;;  %vm126_vm6 = vcmask 310272   ;;  %vm215_vm7 = vcmask 261120   ;;  %s402_s28 = smov [#allocation2]  }
   0x8   :  { %334 = vmatpush3.bf16.msra.mxu0 %v40_v6  ;;  %v35_v15 = vpack.c.bf16 %v23_v14, %v22_v13  ;;  %v25_v17 = vld [vmem:[%s517_s0 + $0x18] sm:$0xff]  ;;  %v26_v19 = vld [vmem:[%s517_s0 + $0x20] sm:$0x3f]  ;;  %v116_v26 = vshrl.u32 %v115_v23, 7  ;;  %v118_v32 = vand.u32 127, %v115_v23  ;;  %v206_v47 = vld [vmem:[%s520_s3 + $0x10] sm:$0xff] }
   0x9   :  { %335 = vmatprep.subr.bf16.mxu0 %v400_v3  ;;  %v36_v18 = vpack.c.bf16 %v25_v17, %v24_v16  ;;  %v37_v20 = vpack.c.bf16 %v26_v19, %v26_v19  ;;  %v305_v35 = vld [vmem:[%s519_s2] ss:$0 sm:$0xff]  ;;  %v207_v46 = vld [vmem:[%s520_s3 + $0x18] sm:$0xff]  ;;  %v205_v48 = vld [vmem:[%s520_s3 + $0x8] sm:$0xff]  ;;  %s297_s29 = sshll.u32 %s402_s28, 4  ;;  %vm289_vm8 = vcmask 50176   ;;  %s298_s29 = int_to_ptr.vmem [resolvable:$true] %s297_s29 }
   0xa   :  { %v121_v29 = vadd.s32 1, %v116_v26  ;;  %v119_v33 = vmul.u32 19, %v116_v26  ;;  %v204_v49 = vld [vmem:[%s520_s3] sm:$0xff]  ;;  %s378_s30 = scalar_lea.vmem %s298_s29, 32  ;;  %p383_p1 = scmp.lt.s32.totalorder %s298_s29, %s298_s29 }
   0xb   :  { %v311_v52 = vld [vmem:[%s521_s4] ss:$0 sm:$0xff]  ;;  %p379_p0 = scmp.ne.s32.totalorder %s298_s29, %s378_s30  ;;  %p384_p2 = scmp.lt.s32.totalorder %s378_s30, %s378_s30 }
   0xc   :  { %336 = vmatpush3.bf16.msra.mxu0 %v39_v9  ;;  %v122_v34 = vmul.u32 19, %v121_v29  ;;  %vm120_vm3 = vcmp.ge.s32.totalorder %v118_v32, %v119_v33 }
   0xd   :  { %337 = vmatprep.subr.bf16.mxu0 %v400_v3  ;;  %p385_p3 = por %p384_p2, %p383_p1 }
   0xe   :  { %vm123_vm4 = vcmp.lt.s32.totalorder %v118_v32, %v122_v34 }
   0xf   :  { %vm124_vm5 = vmand %vm120_vm3, %vm123_vm4  ;;  %p386_p4 = pnand %p385_p3, %p379_p0 }
  0x10   :  { %338 = vmatpush3.bf16.msra.mxu0 %v38_v12  ;;  %v125_v45 = vsel %vm124_vm5, 0.05263158, %v400_v3 }
  0x13   :  { %340 = vmatmul.mubr.msk.bf16.vlgmr.msra.gmra.mxu0 %vm49_vm1, %v35_v15 }
  0x14   :  { %343 = vmatprep.mubr.msk.bf16.mxu0 %vm401_vm0, %v400_v3 }
  0x1b   :  { %344 = vmatmul.mubr.msk.bf16.gmra.mxu0 %vm49_vm1, %v36_v18 }
  0x1c   :  { %347 = vmatprep.mubr.msk.bf16.mxu0 %vm401_vm0, %v400_v3 }
  0x23   :  { %348 = vmatmul.mubr.msk.bf16.gmra.mxu0 %vm49_vm1, %v37_v20 }
  0xd3   :  { %v93_v21 = vpop.f32.mrf.mxu0 }
  0xd4   :  { %v94_v44 = vadd.f32 %v305_v35, %v93_v21 }
  0xd5   :  { %v341_v22 = vpop.f32.mrf.mxu0 }
  0xd7   :  { %v96_v24 = vpop.f32.mrf.mxu0 }
  0xd8   :  { %v97_v43 = vadd.f32 %v305_v35, %v96_v24 }
  0xd9   :  { %v342_v25 = vpop.f32.mrf.mxu0 }
  0xdb   :  { %v101_v27 = vpop.f32.mrf.mxu0 }
  0xdc   :  { %v102_v41 = vadd.f32 %v305_v35, %v101_v27 }
  0xdd   :  { %v345_v28 = vpop.f32.mrf.mxu0 }
  0xdf   :  { %v104_v30 = vpop.f32.mrf.mxu0 }
  0xe0   :  { %v105_v39 = vadd.f32 %v305_v35, %v104_v30 }
  0xe1   :  { %v346_v31 = vpop.f32.mrf.mxu0 }
  0xe3   :  { %v109_v36 = vpop.f32.mrf.mxu0 }
  0xe4   :  { %v110_v37 = vadd.f32 %v305_v35, %v109_v36 }
  0xe5   :  { %v349_v38 = vpop.f32.mrf.mxu0 }
  0xe6   :  { %352 = vmatpush3.msk.msra.mxu1 %vm130_vm2, %v110_v37 }
  0xe7   :  { %v112_v40 = vpop.f32.mrf.mxu0  ;;  %353 = vmatprep.subr.mxu1 %v400_v3 }
  0xe8   :  { %354 = vmatpush3.msra.mxu1 %v105_v39 }
  0xe9   :  { %v350_v42 = vpop.f32.mrf.mxu0  ;;  %355 = vmatprep.subr.mxu1 %v400_v3 }
  0xea   :  { %356 = vmatpush3.msra.mxu1 %v102_v41 }
  0xeb   :  { %357 = vmatprep.subr.mxu1 %v400_v3 }
  0xec   :  { %358 = vmatpush3.msra.mxu1 %v97_v43 }
  0xed   :  { %359 = vmatprep.subr.mxu1 %v400_v3 }
  0xee   :  { %360 = vmatpush3.msra.mxu1 %v94_v44 }
  0xef   :  { %362 = vmatmul.mubr.msk.f32.vlgmr.msra.gmra.mxu1 %vm126_vm6, %v125_v45  ;;  %364 = vmatprep.subr.mxu1 %v400_v3 }
  0xf0   :  { %365 = vmatpush3.msra.mxu1 %v207_v46  ;;  %372 = vmatprep.mubr.msk.f32.mxu1 %vm401_vm0, %v400_v3 }
  0xf1   :  { %366 = vmatprep.subr.mxu1 %v400_v3 }
  0xf2   :  { %367 = vmatpush3.msra.mxu1 %v206_v47 }
  0xf3   :  { %368 = vmatprep.subr.mxu1 %v400_v3 }
  0xf4   :  { %369 = vmatpush3.msra.mxu1 %v205_v48 }
  0xf5   :  { %370 = vmatprep.subr.mxu1 %v400_v3 }
  0xf6   :  { %371 = vmatpush3.msra.mxu1 %v204_v49 }
 0x1af   :  { %v200_v50 = vpop.f32.mrf.mxu1 }
 0x1b0   :  { %373 = vmatmul.mubr.msk.f32.vlgmr.msra.gmra.mxu1 %vm215_vm7, %v200_v50 }
 0x1b1   :  { %v363_v51 = vpop.f32.mrf.mxu1 }
 0x270   :  { %v285_v53 = vpop.f32.mrf.mxu1 }
 0x271   :  { %v286_v54 = vadd.f32 %v311_v52, %v285_v53 }
 0x272   :  { %v374_v55 = vpop.f32.mrf.mxu1 }
 0x273   :  { %290 = vst.msk [vmem:[#allocation2] sm:$0x3] %vm289_vm8, %v286_v54 }
 0x274   :  { %389 = shalt.err (!%p386_p4)
}
 0x275   :  { %300 = dma.vmem_to_hbm [thread:$0]  %s298_s29, 32, %s522_s5, [#allocation3]  }
 0x276   :  { %398 = dma.done.wait [#allocation3], 32  }
 0x277   :  { %399 = vsyncadd [#allocation3], 4294967264 }
 0x278   :  { %304 = vsyncpa [#allocation3], 1 }

// kernel: forward.25
= control target key start
LH: loop header
LB: loop body
LE: loop exit
PB: predicated region body
PF: predicated region fallthrough
CT: control target
= control target key end

     0   :  { %v280_v0 = vmov 0.0   ;;  %vm281_vm0 = vmmov 0   ;;  %vm51_vm1 = vcmask 523264   ;;  %vm141_vm2 = vcmask 521216   ;;  %s416_s1 = inlined_call_operand.vmem [shape: f32[64,64], index: 1, kind: input, shape index: {}]   ;;  %s417_s0 = inlined_call_operand.vmem [shape: f32[38,64], index: 0, kind: input, shape index: {}]   ;;  %s418_s2 = inlined_call_operand.vmem [shape: f32[1,64], index: 2, kind: input, shape index: {}]   ;;  %s419_s3 = inlined_call_operand.vmem [shape: f32[38,64], index: 3, kind: input, shape index: {}]   ;;  %s420_s4 = inlined_call_operand.vmem [shape: f32[1,64], index: 4, kind: input, shape index: {}]   ;;  %s421_s5 = inlined_call_operand.vmem [shape: f32[1,64], index: 5, kind: input, shape index: {}]   ;;  %s422_s6 = inlined_call_operand.vmem [shape: f32[38,64], index: 6, kind: output, shape index: {}]  }
   0x1   :  { %240 = vmatprep.subr.bf16.mxu0 %v280_v0  ;;  %260 = vmatprep.subr.bf16.mxu1 %v280_v0  ;;  %v35_v1 = vld [vmem:[%s416_s1 + $0x30] sm:$0xff]  ;;  %v36_v2 = vld [vmem:[%s416_s1 + $0x38] sm:$0xff]  ;;  %v33_v3 = vld [vmem:[%s416_s1 + $0x20] sm:$0xff] }
   0x2   :  { %v43_v4 = vpack.c.bf16 %v36_v2, %v35_v1  ;;  %v34_v5 = vld [vmem:[%s416_s1 + $0x28] sm:$0xff]  ;;  %248 = vmatprep.mubr.msk.bf16.mxu0 %vm281_vm0, %v280_v0  ;;  %252 = vmatprep.mubr.msk.bf16.mxu1 %vm281_vm0, %v280_v0  ;;  %v31_v7 = vld [vmem:[%s416_s1 + $0x10] sm:$0xff]  ;;  %v32_v8 = vld [vmem:[%s416_s1 + $0x18] sm:$0xff] }
   0x3   :  { %v42_v6 = vpack.c.bf16 %v34_v5, %v33_v3  ;;  %v41_v9 = vpack.c.bf16 %v32_v8, %v31_v7  ;;  %v29_v10 = vld [vmem:[%s416_s1] sm:$0xff]  ;;  %v30_v11 = vld [vmem:[%s416_s1 + $0x8] sm:$0xff]  ;;  %v26_v15 = vld [vmem:[%s417_s0 + $0x10] sm:$0xff] }
   0x4   :  { %241 = vmatpush3.bf16.msra.mxu0 %v43_v4  ;;  %264 = vmatpush3.bf16.msra.mxu1 %v43_v4  ;;  %v24_v12 = vld [vmem:[%s417_s0] sm:$0xff]  ;;  %v40_v13 = vpack.c.bf16 %v30_v11, %v29_v10  ;;  %v25_v14 = vld [vmem:[%s417_s0 + $0x8] sm:$0xff]  ;;  %v27_v16 = vld [vmem:[%s417_s0 + $0x18] sm:$0xff] }
   0x5   :  { %242 = vmatprep.subr.bf16.mxu0 %v280_v0  ;;  %261 = vmatprep.subr.bf16.mxu1 %v280_v0  ;;  %v37_v17 = vpack.c.bf16 %v25_v14, %v24_v12  ;;  %v38_v18 = vpack.c.bf16 %v27_v16, %v26_v15  ;;  %v28_v19 = vld [vmem:[%s417_s0 + $0x20] sm:$0x3f]  ;;  %v119_v24 = vld [vmem:[%s419_s3 + $0x10] sm:$0xff]  ;;  %v120_v34 = vld [vmem:[%s419_s3 + $0x18] sm:$0xff] }
   0x6   :  { %v39_v20 = vpack.c.bf16 %v28_v19, %v28_v19  ;;  %v227_v21 = vld [vmem:[%s418_s2] ss:$0 sm:$0xff]  ;;  %v118_v35 = vld [vmem:[%s419_s3 + $0x8] sm:$0xff] }
   0x7   :  { %v117_v25 = vld [vmem:[%s419_s3] sm:$0xff] }
   0x8   :  { %243 = vmatpush3.bf16.msra.mxu0 %v42_v6  ;;  %265 = vmatpush3.bf16.msra.mxu1 %v42_v6  ;;  %v121_v45 = vld [vmem:[%s419_s3 + $0x20] sm:$0x3f] }
   0x9   :  { %244 = vmatprep.subr.bf16.mxu0 %v280_v0  ;;  %262 = vmatprep.subr.bf16.mxu1 %v280_v0 }
   0xc   :  { %245 = vmatpush3.bf16.msra.mxu0 %v41_v9  ;;  %266 = vmatpush3.bf16.msra.mxu1 %v41_v9 }
   0xd   :  { %246 = vmatprep.subr.bf16.mxu0 %v280_v0  ;;  %263 = vmatprep.subr.bf16.mxu1 %v280_v0 }
  0x10   :  { %247 = vmatpush3.bf16.msra.mxu0 %v40_v13  ;;  %267 = vmatpush3.bf16.msra.mxu1 %v40_v13 }
  0x13   :  { %249 = vmatmul.mubr.msk.bf16.vlgmr.msra.gmra.mxu0 %vm51_vm1, %v37_v17  ;;  %253 = vmatmul.mubr.msk.bf16.vlgmr.msra.gmra.mxu1 %vm51_vm1, %v38_v18 }
  0x14   :  { %256 = vmatprep.mubr.msk.bf16.mxu1 %vm281_vm0, %v280_v0 }
  0x1b   :  { %257 = vmatmul.mubr.msk.bf16.gmra.mxu1 %vm51_vm1, %v39_v20 }
  0xd3   :  { %v95_v22 = vpop.f32.mrf.mxu0  ;;  %v103_v23 = vpop.f32.mrf.mxu1 }
  0xd4   :  { %v96_v26 = vadd.f32 %v227_v21, %v95_v22  ;;  %v104_v27 = vadd.f32 %v227_v21, %v103_v23 }
  0xd5   :  { %v250_v28 = vpop.f32.mrf.mxu0  ;;  %v254_v29 = vpop.f32.mrf.mxu1 }
  0xd6   :  { %v124_v30 = vadd.f32 %v119_v24, %v104_v27  ;;  %v122_v31 = vadd.f32 %v117_v25, %v96_v26 }
  0xd7   :  { %v98_v32 = vpop.f32.mrf.mxu0  ;;  %v106_v33 = vpop.f32.mrf.mxu1 }
  0xd8   :  { %v99_v36 = vadd.f32 %v227_v21, %v98_v32  ;;  %v107_v37 = vadd.f32 %v227_v21, %v106_v33  ;;  %v135_v38 = vsel %vm51_vm1, %v124_v30, 0.0  ;;  %v129_v39 = vsel %vm51_vm1, %v122_v31, 0.0  ;;  %v232_v33 = vld [vmem:[%s421_s5] ss:$0 sm:$0xff] }
  0xd9   :  { %136 = vadd.xlane.f32.xlu1 %v135_v38  ;;  %v255_v40 = vpop.f32.mrf.mxu1  ;;  %130 = vadd.xlane.f32.xlu0 %v129_v39  ;;  %v251_v41 = vpop.f32.mrf.mxu0 }
  0xda   :  { %v125_v42 = vadd.f32 %v120_v34, %v107_v37  ;;  %v123_v43 = vadd.f32 %v118_v35, %v99_v36 }
  0xdb   :  { %v111_v44 = vpop.f32.mrf.mxu1 }
  0xdc   :  { %v112_v46 = vadd.f32 %v227_v21, %v111_v44  ;;  %v138_v47 = vsel %vm51_vm1, %v125_v42, 0.0  ;;  %v132_v48 = vsel %vm51_vm1, %v123_v43, 0.0 }
  0xdd   :  { %139 = vadd.xlane.f32.xlu1 %v138_v47  ;;  %v258_v49 = vpop.f32.mrf.mxu1  ;;  %133 = vadd.xlane.f32.xlu0 %v132_v48 }
  0xde   :  { %v126_v50 = vadd.f32 %v121_v45, %v112_v46 }
  0xdf   :  { %v114_v51 = vpop.f32.mrf.mxu1 }
  0xe0   :  { %v142_v52 = vsel %vm141_vm2, %v126_v50, 0.0 }
  0xe1   :  { %v259_v53 = vpop.f32.mrf.mxu1  ;;  %143 = vadd.xlane.f32.xlu0 %v142_v52 }
 0x162   :  { %v137_v54 = vpop.xlane.xlu1 %136  ;;  %v131_v55 = vpop.xlane.xlu0 %130 }
 0x163   :  { %v148_v56 = vmul.f32 0.015625, %v137_v54  ;;  %v146_v57 = vmul.f32 0.015625, %v131_v55 }
 0x165   :  { %v153_v58 = vsub.f32 %v124_v30, %v148_v56  ;;  %v151_v59 = vsub.f32 %v122_v31, %v146_v57  ;;  %v231_v31 = vld [vmem:[%s420_s4] ss:$0 sm:$0xff] }
 0x166   :  { %v140_v60 = vpop.xlane.xlu1 %139  ;;  %v134_v61 = vpop.xlane.xlu0 %133 }
 0x167   :  { %v149_v62 = vmul.f32 0.015625, %v140_v60  ;;  %v147_v63 = vmul.f32 0.015625, %v134_v61  ;;  %v156_v0 = vmul.f32 %v151_v59, %v151_v59  ;;  %v158_v4 = vmul.f32 %v153_v58, %v153_v58 }
 0x169   :  { %v154_v1 = vsub.f32 %v125_v42, %v149_v62  ;;  %v152_v2 = vsub.f32 %v123_v43, %v147_v63  ;;  %v161_v3 = vsel %vm51_vm1, %v156_v0, 0.0  ;;  %v167_v9 = vsel %vm51_vm1, %v158_v4, 0.0 }
 0x16a   :  { %162 = vadd.xlane.f32.xlu1 %v161_v3  ;;  %v144_v5 = vpop.xlane.xlu0 %143 }
 0x16b   :  { %v150_v6 = vmul.f32 0.015625, %v144_v5  ;;  %v157_v7 = vmul.f32 %v152_v2, %v152_v2  ;;  %v159_v11 = vmul.f32 %v154_v1, %v154_v1 }
 0x16d   :  { %v155_v8 = vsub.f32 %v126_v50, %v150_v6  ;;  %v164_v10 = vsel %vm51_vm1, %v157_v7, 0.0  ;;  %v170_v13 = vsel %vm51_vm1, %v159_v11, 0.0 }
 0x16e   :  { %168 = vadd.xlane.f32.xlu1 %v167_v9  ;;  %165 = vadd.xlane.f32.xlu0 %v164_v10 }
 0x16f   :  { %v160_v12 = vmul.f32 %v155_v8, %v155_v8 }
 0x171   :  { %v173_v14 = vsel %vm141_vm2, %v160_v12, 0.0 }
 0x172   :  { %171 = vadd.xlane.f32.xlu0 %v170_v13  ;;  %174 = vadd.xlane.f32.xlu1 %v173_v14 }
 0x1f3   :  { %v163_v15 = vpop.xlane.xlu1 %162 }
 0x1f4   :  { %v176_v16 = vmul.f32 0.015625, %v163_v15 }
 0x1f6   :  { %v181_v17 = vadd.f32 1e-05, %v176_v16 }
 0x1f7   :  { %v169_v18 = vpop.xlane.xlu1 %168  ;;  %v166_v19 = vpop.xlane.xlu0 %165 }
 0x1f8   :  { %270 = vrsqrt.f32 %v181_v17  ;;  %v178_v20 = vmul.f32 0.015625, %v169_v18  ;;  %v177_v21 = vmul.f32 0.015625, %v166_v19 }
 0x1fa   :  { %v183_v22 = vadd.f32 1e-05, %v178_v20  ;;  %v182_v23 = vadd.f32 1e-05, %v177_v21 }
 0x1fb   :  { %v175_v24 = vpop.xlane.xlu1 %174  ;;  %v172_v25 = vpop.xlane.xlu0 %171 }
 0x1fc   :  { %272 = vrsqrt.f32 %v183_v22  ;;  %v180_v26 = vmul.f32 0.015625, %v175_v24  ;;  %v179_v27 = vmul.f32 0.015625, %v172_v25 }
 0x1fd   :  { %274 = vrsqrt.f32 %v182_v23 }
 0x1fe   :  { %v185_v28 = vadd.f32 1e-05, %v180_v26  ;;  %v184_v29 = vadd.f32 1e-05, %v179_v27 }
 0x200   :  { %276 = vrsqrt.f32 %v185_v28 }
 0x201   :  { %278 = vrsqrt.f32 %v184_v29 }
 0x205   :  { %v271_v30 = vpop.eup %270 }
 0x206   :  { %v191_v32 = vmul.f32 %v271_v30, %v151_v59 }
 0x208   :  { %v202_v34 = vmul.f32 %v231_v31, %v191_v32 }
 0x209   :  { %v273_v35 = vpop.eup %272 }
 0x20a   :  { %v275_v36 = vpop.eup %274  ;;  %v213_v37 = vadd.f32 %v232_v33, %v202_v34  ;;  %v193_v38 = vmul.f32 %v273_v35, %v153_v58 }
 0x20b   :  { %v192_v39 = vmul.f32 %v275_v36, %v152_v2 }
 0x20c   :  { %218 = vst.msk [vmem:[%s422_s6] sm:$0xff] %vm51_vm1, %v213_v37  ;;  %v204_v40 = vmul.f32 %v231_v31, %v193_v38 }
 0x20d   :  { %v277_v41 = vpop.eup %276  ;;  %v203_v42 = vmul.f32 %v231_v31, %v192_v39 }
 0x20e   :  { %v279_v43 = vpop.eup %278  ;;  %v215_v44 = vadd.f32 %v232_v33, %v204_v40  ;;  %v195_v45 = vmul.f32 %v277_v41, %v155_v8 }
 0x20f   :  { %v214_v46 = vadd.f32 %v232_v33, %v203_v42  ;;  %v194_v47 = vmul.f32 %v279_v43, %v154_v1 }
 0x210   :  { %220 = vst.msk [vmem:[%s422_s6 + $0x10] sm:$0xff] %vm51_vm1, %v215_v44  ;;  %v206_v48 = vmul.f32 %v231_v31, %v195_v45 }
 0x211   :  { %219 = vst.msk [vmem:[%s422_s6 + $0x8] sm:$0xff] %vm51_vm1, %v214_v46  ;;  %v205_v49 = vmul.f32 %v231_v31, %v194_v47 }
 0x212   :  { %v217_v50 = vadd.f32 %v232_v33, %v206_v48 }
 0x213   :  { %v216_v51 = vadd.f32 %v232_v33, %v205_v49 }
 0x214   :  { %222 = vst.msk [vmem:[%s422_s6 + $0x20] sm:$0x3f] %vm141_vm2, %v217_v50 }
 0x215   :  { %221 = vst.msk [vmem:[%s422_s6 + $0x18] sm:$0xff] %vm51_vm1, %v216_v51 }

// kernel: forward.26
= control target key start
LH: loop header
LB: loop body
LE: loop exit
PB: predicated region body
PF: predicated region fallthrough
CT: control target
= control target key end

     0   :  { %v455_v0 = vmov 0.0   ;;  %vm456_vm0 = vmmov 0   ;;  %vm54_vm1 = vcmask 523264   ;;  %vm274_vm2 = vcmask 521216   ;;  %s674_s1 = inlined_call_operand.vmem [shape: f32[64,128], index: 1, kind: input, shape index: {}]   ;;  %s675_s0 = inlined_call_operand.vmem [shape: f32[38,64], index: 0, kind: input, shape index: {}]   ;;  %s676_s3 = inlined_call_operand.vmem [shape: f32[128,64], index: 3, kind: input, shape index: {}]   ;;  %s677_s2 = inlined_call_operand.vmem [shape: f32[1,128], index: 2, kind: input, shape index: {}]   ;;  %s678_s4 = inlined_call_operand.vmem [shape: f32[1,64], index: 4, kind: input, shape index: {}]   ;;  %s679_s5 = inlined_call_operand.vmem [shape: f32[1,64], index: 5, kind: input, shape index: {}]   ;;  %s680_s6 = inlined_call_operand.vmem [shape: f32[1,64], index: 6, kind: input, shape index: {}]   ;;  %s681_s7 = inlined_call_operand.vmem [shape: f32[38,64], index: 7, kind: output, shape index: {}]  }
   0x1   :  { %385 = vmatprep.subr.bf16.mxu0 %v455_v0  ;;  %v38_v1 = vld [vmem:[%s674_s1 + $0x30] sm:$0xff]  ;;  %v39_v2 = vld [vmem:[%s674_s1 + $0x38] sm:$0xff]  ;;  %v36_v3 = vld [vmem:[%s674_s1 + $0x20] sm:$0xff]  ;;  %393 = vmatprep.mubr.msk.bf16.mxu0 %vm456_vm0, %v455_v0 }
   0x2   :  { %v46_v4 = vpack.c.bf16 %v39_v2, %v38_v1  ;;  %v37_v5 = vld [vmem:[%s674_s1 + $0x28] sm:$0xff]  ;;  %405 = vmatprep.subr.bf16.mxu1 %v455_v0  ;;  %421 = vmatprep.mubr.msk.bf16.mxu1 %vm456_vm0, %v455_v0  ;;  %v34_v7 = vld [vmem:[%s674_s1 + $0x10] sm:$0xff]  ;;  %v35_v8 = vld [vmem:[%s674_s1 + $0x18] sm:$0xff] }
   0x3   :  { %v45_v6 = vpack.c.bf16 %v37_v5, %v36_v3  ;;  %v44_v9 = vpack.c.bf16 %v35_v8, %v34_v7  ;;  %v32_v10 = vld [vmem:[%s674_s1] sm:$0xff]  ;;  %v33_v11 = vld [vmem:[%s674_s1 + $0x8] sm:$0xff]  ;;  %v548_v16 = vld [vmem:[%s675_s0 + $0x10] sm:$0xff] }
   0x4   :  { %386 = vmatpush3.bf16.msra.mxu0 %v46_v4  ;;  %v43_v12 = vpack.c.bf16 %v33_v11, %v32_v10  ;;  %v532_v13 = vld [vmem:[%s675_s0] sm:$0xff]  ;;  %v537_v14 = vld [vmem:[%s675_s0 + $0x8] sm:$0xff]  ;;  %v553_v17 = vld [vmem:[%s675_s0 + $0x18] sm:$0xff] }
   0x5   :  { %387 = vmatprep.subr.bf16.mxu0 %v455_v0  ;;  %v40_v15 = vpack.c.bf16 %v537_v14, %v532_v13  ;;  %v41_v18 = vpack.c.bf16 %v553_v17, %v548_v16  ;;  %v563_v19 = vld [vmem:[%s675_s0 + $0x20] sm:$0x3f]  ;;  %v179_v21 = vld [vmem:[%s676_s3 + $0x70] sm:$0xff]  ;;  %v180_v22 = vld [vmem:[%s676_s3 + $0x78] sm:$0xff] }
   0x6   :  { %v42_v20 = vpack.c.bf16 %v563_v19, %v563_v19  ;;  %v191_v23 = vpack.c.bf16 %v180_v22, %v179_v21  ;;  %v177_v24 = vld [vmem:[%s676_s3 + $0x60] sm:$0xff]  ;;  %v178_v25 = vld [vmem:[%s676_s3 + $0x68] sm:$0xff]  ;;  %v175_v27 = vld [vmem:[%s676_s3 + $0x50] sm:$0xff] }
   0x7   :  { %v190_v26 = vpack.c.bf16 %v178_v25, %v177_v24  ;;  %v176_v28 = vld [vmem:[%s676_s3 + $0x58] sm:$0xff]  ;;  %v173_v30 = vld [vmem:[%s676_s3 + $0x40] sm:$0xff]  ;;  %v174_v31 = vld [vmem:[%s676_s3 + $0x48] sm:$0xff] }
   0x8   :  { %388 = vmatpush3.bf16.msra.mxu0 %v45_v6  ;;  %406 = vmatpush3.bf16.msra.mxu1 %v191_v23  ;;  %v189_v29 = vpack.c.bf16 %v176_v28, %v175_v27  ;;  %v188_v32 = vpack.c.bf16 %v174_v31, %v173_v30  ;;  %v171_v33 = vld [vmem:[%s676_s3 + $0x30] sm:$0xff]  ;;  %v172_v34 = vld [vmem:[%s676_s3 + $0x38] sm:$0xff]  ;;  %v169_v36 = vld [vmem:[%s676_s3 + $0x20] sm:$0xff] }
   0x9   :  { %389 = vmatprep.subr.bf16.mxu0 %v455_v0  ;;  %407 = vmatprep.subr.bf16.mxu1 %v455_v0  ;;  %v187_v35 = vpack.c.bf16 %v172_v34, %v171_v33  ;;  %v170_v37 = vld [vmem:[%s676_s3 + $0x28] sm:$0xff]  ;;  %v167_v39 = vld [vmem:[%s676_s3 + $0x10] sm:$0xff]  ;;  %v168_v40 = vld [vmem:[%s676_s3 + $0x18] sm:$0xff] }
   0xa   :  { %v186_v38 = vpack.c.bf16 %v170_v37, %v169_v36  ;;  %v165_v41 = vld [vmem:[%s676_s3] sm:$0xff]  ;;  %v185_v42 = vpack.c.bf16 %v168_v40, %v167_v39  ;;  %v166_v43 = vld [vmem:[%s676_s3 + $0x8] sm:$0xff] }
   0xb   :  { %v184_v44 = vpack.c.bf16 %v166_v43, %v165_v41  ;;  %v360_v45 = vld [vmem:[%s677_s2] ss:$0 sm:$0xff] }
   0xc   :  { %390 = vmatpush3.bf16.msra.mxu0 %v44_v9  ;;  %408 = vmatpush3.bf16.msra.mxu1 %v190_v26 }
   0xd   :  { %391 = vmatprep.subr.bf16.mxu0 %v455_v0  ;;  %409 = vmatprep.subr.bf16.mxu1 %v455_v0 }
  0x10   :  { %392 = vmatpush3.bf16.msra.mxu0 %v43_v12  ;;  %410 = vmatpush3.bf16.msra.mxu1 %v189_v29 }
  0x11   :  { %411 = vmatprep.subr.bf16.mxu1 %v455_v0 }
  0x13   :  { %394 = vmatmul.mubr.msk.bf16.vlgmr.msra.gmra.mxu0 %vm54_vm1, %v40_v15 }
  0x14   :  { %397 = vmatprep.mubr.msk.bf16.mxu0 %vm456_vm0, %v455_v0  ;;  %412 = vmatpush3.bf16.msra.mxu1 %v188_v32 }
  0x15   :  { %413 = vmatprep.subr.bf16.mxu1 %v455_v0 }
  0x18   :  { %414 = vmatpush3.bf16.msra.mxu1 %v187_v35 }
  0x19   :  { %415 = vmatprep.subr.bf16.mxu1 %v455_v0 }
  0x1b   :  { %398 = vmatmul.mubr.msk.bf16.gmra.mxu0 %vm54_vm1, %v41_v18 }
  0x1c   :  { %401 = vmatprep.mubr.msk.bf16.mxu0 %vm456_vm0, %v455_v0  ;;  %416 = vmatpush3.bf16.msra.mxu1 %v186_v38 }
  0x1d   :  { %417 = vmatprep.subr.bf16.mxu1 %v455_v0 }
  0x20   :  { %418 = vmatpush3.bf16.msra.mxu1 %v185_v42 }
  0x21   :  { %419 = vmatprep.subr.bf16.mxu1 %v455_v0 }
  0x23   :  { %402 = vmatmul.mubr.msk.bf16.gmra.mxu0 %vm54_vm1, %v42_v20 }
  0x24   :  { %420 = vmatpush3.bf16.msra.mxu1 %v184_v44 }
  0xd3   :  { %v98_v46 = vpop.f32.mrf.mxu0 }
  0xd4   :  { %v99_v47 = vadd.f32 %v360_v45, %v98_v46 }
  0xd5   :  { %v395_v48 = vpop.f32.mrf.mxu0 }
  0xd6   :  { %v120_v49 = vmul.f32 %v99_v47, %v99_v47 }
  0xd7   :  { %v101_v50 = vpop.f32.mrf.mxu0 }
  0xd8   :  { %v125_v51 = vmul.f32 %v120_v49, %v99_v47  ;;  %v102_v52 = vadd.f32 %v360_v45, %v101_v50 }
  0xd9   :  { %v396_v53 = vpop.f32.mrf.mxu0 }
  0xda   :  { %v130_v54 = vmul.f32 0.044715, %v125_v51  ;;  %v121_v55 = vmul.f32 %v102_v52, %v102_v52  ;;  %v364_v53 = vld [vmem:[%s678_s4] ss:$0 sm:$0xff] }
  0xdb   :  { %v106_v56 = vpop.f32.mrf.mxu0 }
  0xdc   :  { %v135_v57 = vadd.f32 %v130_v54, %v99_v47  ;;  %v126_v58 = vmul.f32 %v121_v55, %v102_v52  ;;  %v107_v59 = vadd.f32 %v360_v45, %v106_v56 }
  0xdd   :  { %v399_v60 = vpop.f32.mrf.mxu0 }
  0xde   :  { %v140_v61 = vmul.f32 0.7978846, %v135_v57  ;;  %v131_v62 = vmul.f32 0.044715, %v126_v58  ;;  %v122_v63 = vmul.f32 %v107_v59, %v107_v59 }
  0xdf   :  { %v109_v1 = vpop.f32.mrf.mxu0 }
  0xe0   :  { %435 = vtanh.f32 %v140_v61  ;;  %v136_v2 = vadd.f32 %v131_v62, %v102_v52  ;;  %v127_v3 = vmul.f32 %v122_v63, %v107_v59  ;;  %v110_v4 = vadd.f32 %v360_v45, %v109_v1 }
  0xe1   :  { %v400_v5 = vpop.f32.mrf.mxu0 }
  0xe2   :  { %v141_v6 = vmul.f32 0.7978846, %v136_v2  ;;  %v132_v7 = vmul.f32 0.044715, %v127_v3  ;;  %v123_v8 = vmul.f32 %v110_v4, %v110_v4 }
  0xe3   :  { %v114_v9 = vpop.f32.mrf.mxu0 }
  0xe4   :  { %437 = vtanh.f32 %v141_v6  ;;  %v137_v10 = vadd.f32 %v132_v7, %v107_v59  ;;  %v128_v11 = vmul.f32 %v123_v8, %v110_v4  ;;  %v115_v12 = vadd.f32 %v360_v45, %v114_v9 }
  0xe5   :  { %v403_v15 = vpop.f32.mrf.mxu0 }
  0xe6   :  { %v142_v18 = vmul.f32 0.7978846, %v137_v10  ;;  %v133_v20 = vmul.f32 0.044715, %v128_v11  ;;  %v124_v21 = vmul.f32 %v115_v12, %v115_v12 }
  0xe7   :  { %v117_v22 = vpop.f32.mrf.mxu0 }
  0xe8   :  { %439 = vtanh.f32 %v142_v18  ;;  %v138_v23 = vadd.f32 %v133_v20, %v110_v4  ;;  %v129_v24 = vmul.f32 %v124_v21, %v115_v12 }
  0xe9   :  { %v404_v25 = vpop.f32.mrf.mxu0 }
  0xea   :  { %v143_v26 = vmul.f32 0.7978846, %v138_v23  ;;  %v134_v27 = vmul.f32 0.044715, %v129_v24 }
  0xec   :  { %441 = vtanh.f32 %v143_v26  ;;  %v139_v28 = vadd.f32 %v134_v27, %v115_v12 }
  0xed   :  { %v436_v29 = vpop.eup %435 }
  0xee   :  { %v144_v30 = vmul.f32 0.7978846, %v139_v28  ;;  %v150_v31 = vadd.f32 1.0, %v436_v29 }
  0xf0   :  { %443 = vtanh.f32 %v144_v30  ;;  %v155_v34 = vmul.f32 0.5, %v150_v31 }
  0xf1   :  { %v438_v32 = vpop.eup %437 }
  0xf2   :  { %v151_v33 = vadd.f32 1.0, %v438_v32  ;;  %v160_v37 = vmul.f32 %v155_v34, %v99_v47 }
  0xf4   :  { %v156_v35 = vmul.f32 0.5, %v151_v33 }
  0xf5   :  { %v440_v36 = vpop.eup %439 }
  0xf6   :  { %v161_v38 = vmul.f32 %v156_v35, %v102_v52  ;;  %v152_v39 = vadd.f32 1.0, %v440_v36 }
  0xf8   :  { %v181_v40 = vpack.c.bf16 %v161_v38, %v160_v37  ;;  %v157_v43 = vmul.f32 0.5, %v152_v39 }
  0xf9   :  { %v442_v41 = vpop.eup %441 }
  0xfa   :  { %422 = vmatmul.mubr.bf16.vlgmr.msra.gmra.mxu1 %v181_v40  ;;  %v153_v42 = vadd.f32 1.0, %v442_v41  ;;  %v162_v46 = vmul.f32 %v157_v43, %v107_v59 }
  0xfb   :  { %425 = vmatprep.mubr.msk.bf16.mxu1 %vm456_vm0, %v455_v0 }
  0xfc   :  { %v158_v44 = vmul.f32 0.5, %v153_v42 }
  0xfd   :  { %v444_v45 = vpop.eup %443 }
  0xfe   :  { %v163_v48 = vmul.f32 %v158_v44, %v110_v4  ;;  %v154_v49 = vadd.f32 1.0, %v444_v45 }
 0x100   :  { %v182_v50 = vpack.c.bf16 %v163_v48, %v162_v46  ;;  %v159_v51 = vmul.f32 0.5, %v154_v49 }
 0x102   :  { %426 = vmatmul.mubr.bf16.gmra.mxu1 %v182_v50  ;;  %v164_v47 = vmul.f32 %v159_v51, %v115_v12 }
 0x103   :  { %429 = vmatprep.mubr.msk.bf16.mxu1 %vm456_vm0, %v455_v0 }
 0x104   :  { %v183_v52 = vpack.c.bf16 %v164_v47, %v164_v47 }
 0x10a   :  { %430 = vmatmul.mubr.bf16.gmra.mxu1 %v183_v52 }
 0x1ba   :  { %v233_v54 = vpop.f32.mrf.mxu1 }
 0x1bb   :  { %v234_v55 = vadd.f32 %v364_v53, %v233_v54 }
 0x1bc   :  { %v423_v56 = vpop.f32.mrf.mxu1 }
 0x1bd   :  { %v255_v57 = vadd.f32 %v234_v55, %v532_v13 }
 0x1be   :  { %v236_v58 = vpop.f32.mrf.mxu1 }
 0x1bf   :  { %v237_v59 = vadd.f32 %v364_v53, %v236_v58  ;;  %v262_v60 = vsel %vm54_vm1, %v255_v57, 0.0 }
 0x1c0   :  { %263 = vadd.xlane.f32.xlu0 %v262_v60  ;;  %v424_v61 = vpop.f32.mrf.mxu1  ;;  %v366_v60 = vld [vmem:[%s680_s6] ss:$0 sm:$0xff] }
 0x1c1   :  { %v256_v0 = vadd.f32 %v237_v59, %v537_v14 }
 0x1c2   :  { %v241_v62 = vpop.f32.mrf.mxu1 }
 0x1c3   :  { %v242_v63 = vadd.f32 %v364_v53, %v241_v62  ;;  %v265_v1 = vsel %vm54_vm1, %v256_v0, 0.0 }
 0x1c4   :  { %266 = vadd.xlane.f32.xlu0 %v265_v1  ;;  %v427_v2 = vpop.f32.mrf.mxu1 }
 0x1c5   :  { %v257_v3 = vadd.f32 %v242_v63, %v548_v16 }
 0x1c6   :  { %v244_v4 = vpop.f32.mrf.mxu1 }
 0x1c7   :  { %v245_v5 = vadd.f32 %v364_v53, %v244_v4  ;;  %v268_v13 = vsel %vm54_vm1, %v257_v3, 0.0 }
 0x1c8   :  { %269 = vadd.xlane.f32.xlu1 %v268_v13  ;;  %v428_v6 = vpop.f32.mrf.mxu1 }
 0x1c9   :  { %v258_v7 = vadd.f32 %v245_v5, %v553_v17 }
 0x1ca   :  { %v249_v8 = vpop.f32.mrf.mxu1 }
 0x1cb   :  { %v250_v9 = vadd.f32 %v364_v53, %v249_v8  ;;  %v271_v14 = vsel %vm54_vm1, %v258_v7, 0.0 }
 0x1cc   :  { %272 = vadd.xlane.f32.xlu1 %v271_v14  ;;  %v431_v10 = vpop.f32.mrf.mxu1 }
 0x1cd   :  { %v259_v11 = vadd.f32 %v250_v9, %v563_v19 }
 0x1ce   :  { %v252_v12 = vpop.f32.mrf.mxu1 }
 0x1cf   :  { %v275_v16 = vsel %vm274_vm2, %v259_v11, 0.0 }
 0x1d0   :  { %276 = vadd.xlane.f32.xlu0 %v275_v16  ;;  %v432_v15 = vpop.f32.mrf.mxu1 }
 0x249   :  { %v264_v18 = vpop.xlane.xlu0 %263 }
 0x24a   :  { %v279_v20 = vmul.f32 0.015625, %v264_v18 }
 0x24c   :  { %v284_v21 = vsub.f32 %v255_v57, %v279_v20  ;;  %v365_v57 = vld [vmem:[%s679_s5] ss:$0 sm:$0xff] }
 0x24d   :  { %v267_v22 = vpop.xlane.xlu0 %266 }
 0x24e   :  { %v280_v23 = vmul.f32 0.015625, %v267_v22  ;;  %v289_v17 = vmul.f32 %v284_v21, %v284_v21 }
 0x250   :  { %v285_v24 = vsub.f32 %v256_v0, %v280_v23  ;;  %v294_v25 = vsel %vm54_vm1, %v289_v17, 0.0 }
 0x251   :  { %v270_v26 = vpop.xlane.xlu1 %269  ;;  %295 = vadd.xlane.f32.xlu1 %v294_v25 }
 0x252   :  { %v281_v27 = vmul.f32 0.015625, %v270_v26  ;;  %v290_v28 = vmul.f32 %v285_v24, %v285_v24 }
 0x254   :  { %v286_v29 = vsub.f32 %v257_v3, %v281_v27  ;;  %v297_v19 = vsel %vm54_vm1, %v290_v28, 0.0 }
 0x255   :  { %v273_v30 = vpop.xlane.xlu1 %272  ;;  %298 = vadd.xlane.f32.xlu0 %v297_v19 }
 0x256   :  { %v282_v31 = vmul.f32 0.015625, %v273_v30  ;;  %v291_v32 = vmul.f32 %v286_v29, %v286_v29 }
 0x258   :  { %v287_v33 = vsub.f32 %v258_v7, %v282_v31  ;;  %v300_v34 = vsel %vm54_vm1, %v291_v32, 0.0 }
 0x259   :  { %301 = vadd.xlane.f32.xlu1 %v300_v34  ;;  %v277_v35 = vpop.xlane.xlu0 %276 }
 0x25a   :  { %v283_v36 = vmul.f32 0.015625, %v277_v35  ;;  %v292_v37 = vmul.f32 %v287_v33, %v287_v33 }
 0x25c   :  { %v288_v38 = vsub.f32 %v259_v11, %v283_v36  ;;  %v303_v39 = vsel %vm54_vm1, %v292_v37, 0.0 }
 0x25d   :  { %304 = vadd.xlane.f32.xlu0 %v303_v39 }
 0x25e   :  { %v293_v40 = vmul.f32 %v288_v38, %v288_v38 }
 0x260   :  { %v306_v41 = vsel %vm274_vm2, %v293_v40, 0.0 }
 0x261   :  { %307 = vadd.xlane.f32.xlu1 %v306_v41 }
 0x2da   :  { %v296_v42 = vpop.xlane.xlu1 %295 }
 0x2db   :  { %v309_v43 = vmul.f32 0.015625, %v296_v42 }
 0x2dd   :  { %v314_v44 = vadd.f32 1e-05, %v309_v43 }
 0x2de   :  { %v299_v45 = vpop.xlane.xlu0 %298 }
 0x2df   :  { %445 = vrsqrt.f32 %v314_v44  ;;  %v310_v46 = vmul.f32 0.015625, %v299_v45 }
 0x2e1   :  { %v315_v48 = vadd.f32 1e-05, %v310_v46 }
 0x2e2   :  { %v302_v49 = vpop.xlane.xlu1 %301 }
 0x2e3   :  { %447 = vrsqrt.f32 %v315_v48  ;;  %v311_v50 = vmul.f32 0.015625, %v302_v49 }
 0x2e5   :  { %v316_v51 = vadd.f32 1e-05, %v311_v50 }
 0x2e6   :  { %v305_v47 = vpop.xlane.xlu0 %304 }
 0x2e7   :  { %449 = vrsqrt.f32 %v316_v51  ;;  %v312_v52 = vmul.f32 0.015625, %v305_v47 }
 0x2e9   :  { %v317_v53 = vadd.f32 1e-05, %v312_v52 }
 0x2ea   :  { %v308_v54 = vpop.xlane.xlu1 %307 }
 0x2eb   :  { %451 = vrsqrt.f32 %v317_v53  ;;  %v313_v55 = vmul.f32 0.015625, %v308_v54 }
 0x2ec   :  { %v446_v56 = vpop.eup %445 }
 0x2ed   :  { %v324_v58 = vmul.f32 %v446_v56, %v284_v21  ;;  %v318_v59 = vadd.f32 1e-05, %v313_v55 }
 0x2ef   :  { %v335_v61 = vmul.f32 %v365_v57, %v324_v58  ;;  %453 = vrsqrt.f32 %v318_v59 }
 0x2f0   :  { %v448_v0 = vpop.eup %447 }
 0x2f1   :  { %v346_v62 = vadd.f32 %v366_v60, %v335_v61  ;;  %v325_v63 = vmul.f32 %v448_v0, %v285_v24 }
 0x2f3   :  { %351 = vst.msk [vmem:[%s681_s7] sm:$0xff] %vm54_vm1, %v346_v62  ;;  %v336_v1 = vmul.f32 %v365_v57, %v325_v63 }
 0x2f4   :  { %v450_v2 = vpop.eup %449 }
 0x2f5   :  { %v347_v3 = vadd.f32 %v366_v60, %v336_v1  ;;  %v326_v4 = vmul.f32 %v450_v2, %v286_v29 }
 0x2f7   :  { %352 = vst.msk [vmem:[%s681_s7 + $0x8] sm:$0xff] %vm54_vm1, %v347_v3  ;;  %v337_v5 = vmul.f32 %v365_v57, %v326_v4 }
 0x2f8   :  { %v452_v13 = vpop.eup %451 }
 0x2f9   :  { %v348_v6 = vadd.f32 %v366_v60, %v337_v5  ;;  %v327_v7 = vmul.f32 %v452_v13, %v287_v33 }
 0x2fb   :  { %353 = vst.msk [vmem:[%s681_s7 + $0x10] sm:$0xff] %vm54_vm1, %v348_v6  ;;  %v338_v8 = vmul.f32 %v365_v57, %v327_v7 }
 0x2fc   :  { %v454_v9 = vpop.eup %453 }
 0x2fd   :  { %v349_v14 = vadd.f32 %v366_v60, %v338_v8  ;;  %v328_v10 = vmul.f32 %v454_v9, %v288_v38 }
 0x2ff   :  { %354 = vst.msk [vmem:[%s681_s7 + $0x18] sm:$0xff] %vm54_vm1, %v349_v14  ;;  %v339_v11 = vmul.f32 %v365_v57, %v328_v10 }
 0x301   :  { %v350_v12 = vadd.f32 %v366_v60, %v339_v11 }
 0x303   :  { %355 = vst.msk [vmem:[%s681_s7 + $0x20] sm:$0x3f] %vm274_vm2, %v350_v12 }

</bundles_post_ra>
